<compile_context>
chip_gen: v7x
topology: tpu7x:2x2x1
jax: 0.10.0
libtpu: 0.0.40
codegen_flags: <defaults>
</compile_context>

<pallas_src>
import math
import numpy as np
import jax
import jax.numpy as jnp
from jax.experimental import pallas as pl
from jax.experimental.pallas import tpu as pltpu

# ---------------------------------------------------------------------------
# configuration
# ---------------------------------------------------------------------------
C0, C1 = 32, 16                   # multiplicities of 0e / 1e in node irreps
D_NODE = C0 + 3 * C1              # 80   node width, e3nn u-major layout
D_ATTR = 4                        # 1x0e + 1x1e
D_XA   = D_NODE + D_ATTR          # 84   in-kernel [x | attr] concat width
S1_OUT = C0 + C1                  # 48   fctp_1 0e slice (scalars + gates)
S2_OUT = C0                       # 32   fctp_2 0e slice

INV_SQRT3 = 1.0 / math.sqrt(3.0)
INV_SQRT2 = 1.0 / math.sqrt(2.0)

# K layout of the per-layer tensor-product feature slab  LHS = XREP * AREP
K_X0A0 = 0      # 32: x0 * a0          -> 0e outputs via W_a
K_P    = 32     # 48: x1_m * a1_m      -> 0e outputs via (1/sqrt3) W_d
K_X1A0 = 80     # 48: x1_m * a0        -> 1e comp m via W_c
K_Q1   = 128    # 48: x1_m * a1_{m+1}  -> 1e comp (m+2)%3 via +W_e/sqrt2
K_Q2   = 176    # 48: x1_m * a1_{m+2}  -> 1e comp (m+1)%3 via -W_e/sqrt2
K_X0A1 = 224    # 96: x0 * a1_m (3x32) -> 1e comp m via W_b
K_USED = 320
K_PAD  = 384                      # lane-group (128) aligned
N_COLS = 128                      # fused-dot output width per layer
W_ROWS = K_PAD + 8                # 392: K_PAD weight rows + 1 bias row + pad
SEL_ROWS = D_XA                   # 84

# e3nn normalize2mom constants  c = E_{x~N(0,1)}[act(x)^2]^{-1/2}
# (deterministic Gaussian quadrature instead of torch's MC sampling)
_xs  = np.linspace(-12.0, 12.0, 240001)
_dx  = _xs[1] - _xs[0]
_pdf = np.exp(-0.5 * _xs * _xs) / np.sqrt(2.0 * np.pi)
def _mom2(f):
    return float(np.sum(f(_xs) ** 2 * _pdf) * _dx)
C_SILU = float(1.0 / math.sqrt(_mom2(lambda x: x / (1.0 + np.exp(-x)))))
C_SIG  = float(1.0 / math.sqrt(_mom2(lambda x: 1.0 / (1.0 + np.exp(-x)))))


def _sigmoid(x):
    # tanh form: transcendental stays on the EUP, no VALU divide, no overflow
    return 0.5 * (jnp.tanh(0.5 * x) + 1.0)


def _mxu_dot(a, b):
    # float32 on the MXU (accurate); bf16 would only add cast work here.
    return jnp.dot(a, b, preferred_element_type=jnp.float32)


# ---------------------------------------------------------------------------
# constant 0/1 selection matrix: [x | attr] (84) -> [XREP | AREP] (2*K_PAD)
# Folds the e3nn (u,m) u-major -> component-major regroup and the replication.
# ---------------------------------------------------------------------------
def _build_sel():
    sel = np.zeros((SEL_ROWS, 2 * K_PAD), np.float32)
    # ----- XREP half (cols 0:K_PAD), sourced from x rows 0:80 ---------------
    # raw layout: col u = x0[u] (u<32);  col 32+3u+m = x1[u, m]
    sel[np.arange(C0), K_X0A0 + np.arange(C0)] = 1.0            # x0 copy
    for blk in (K_P, K_X1A0, K_Q1, K_Q2):                       # 4x X1 (cm)
        for m in range(3):
            for u in range(C1):
                sel[C0 + 3 * u + m, blk + C1 * m + u] = 1.0
    for m in range(3):                                          # 3x x0
        sel[np.arange(C0), K_X0A1 + C0 * m + np.arange(C0)] = 1.0
    # ----- AREP half (cols K_PAD:2K_PAD), sourced from attr rows 80:84 ------
    A = D_NODE
    sel[A + 0, K_PAD + K_X0A0: K_PAD + K_X0A0 + C0] = 1.0                 # a0
    sel[A + 0, K_PAD + K_X1A0: K_PAD + K_X1A0 + 3 * C1] = 1.0             # a0
    for m in range(3):
        sel[A + 1 + m,
            K_PAD + K_P + C1 * m: K_PAD + K_P + C1 * m + C1] = 1.0        # a1_m
        sel[A + 1 + (m + 1) % 3,
            K_PAD + K_Q1 + C1 * m: K_PAD + K_Q1 + C1 * m + C1] = 1.0      # a1_{m+1}
        sel[A + 1 + (m + 2) % 3,
            K_PAD + K_Q2 + C1 * m: K_PAD + K_Q2 + C1 * m + C1] = 1.0      # a1_{m+2}
        sel[A + 1 + m,
            K_PAD + K_X0A1 + C0 * m: K_PAD + K_X0A1 + C0 * m + C0] = 1.0  # a1_m
    return sel

_SEL_NP = _build_sel()

# fused-dot output column maps
_COLS_S1 = np.arange(C0)                                   # layer-1 scalars
_COLS_G1 = [C0 + 3 * np.arange(C1) + m for m in range(3)]  # gates, replicated x3
_COLS_V1 = [C0 + 3 * C1 + 3 * np.arange(C1) + m for m in range(3)]  # v1 u-major
_COLS_S2 = np.arange(C0)                                   # final scalars
_COLS_V2 = [C0 + 3 * np.arange(C1) + m for m in range(3)]  # final v2 u-major


def _fused_weight(Ws, Wv, scal_cols, gate_cols, vec_cols):
    """(K_PAD,128) fused per-layer weight: absorbs path coefficients, the
    cross-product permutation/sign, and the output column layout."""
    Wa, Wd = Ws[:C0], Ws[C0:]                       # (32,S), (16,S)
    Wb, Wc, We = Wv[:C0], Wv[C0:C0 + C1], Wv[C0 + C1:]   # (32,16),(16,16),(16,16)
    W = jnp.zeros((K_PAD, N_COLS), jnp.float32)

    def put_scalar(W, r0, rows, Wpart, scale):
        W = W.at[r0:r0 + rows, scal_cols].set(scale * Wpart[:, :C0])
        if gate_cols is not None:
            for m in range(3):
                W = W.at[r0:r0 + rows, gate_cols[m]].set(scale * Wpart[:, C0:])
        return W

    W = put_scalar(W, K_X0A0, C0, Wa, 1.0)
    for mb in range(3):
        W = put_scalar(W, K_P + C1 * mb, C1, Wd, INV_SQRT3)
        W = W.at[K_X1A0 + C1 * mb:K_X1A0 + C1 * mb + C1, vec_cols[mb]].set(Wc)
        W = W.at[K_Q1 + C1 * mb:K_Q1 + C1 * mb + C1,
                 vec_cols[(mb + 2) % 3]].set(INV_SQRT2 * We)
        W = W.at[K_Q2 + C1 * mb:K_Q2 + C1 * mb + C1,
                 vec_cols[(mb + 1) % 3]].set(-INV_SQRT2 * We)
        W = W.at[K_X0A1 + C0 * mb:K_X0A1 + C0 * mb + C0, vec_cols[mb]].set(Wb)
    return W


def _fused_bias(b, scal_cols, gate_cols):
    row = jnp.zeros((N_COLS,), jnp.float32).at[scal_cols].set(b[:C0])
    if gate_cols is not None:
        for m in range(3):
            row = row.at[gate_cols[m]].set(b[C0:])
    return row


def _build_constants(params):
    W1 = _fused_weight(params["Ws1"], params["Wv1"], _COLS_S1, _COLS_G1, _COLS_V1)
    W2 = _fused_weight(params["Ws2"], params["Wv2"], _COLS_S2, None, _COLS_V2)
    b1 = _fused_bias(params["b1"], _COLS_S1, _COLS_G1)
    b2 = _fused_bias(params["b2"], _COLS_S2, None)
    wslab = jnp.zeros((W_ROWS, 2 * N_COLS), jnp.float32)
    wslab = wslab.at[0:K_PAD, 0:N_COLS].set(W1)
    wslab = wslab.at[0:K_PAD, N_COLS:2 * N_COLS].set(W2)
    wslab = wslab.at[K_PAD, 0:N_COLS].set(b1)
    wslab = wslab.at[K_PAD, N_COLS:2 * N_COLS].set(b2)
    return jnp.asarray(_SEL_NP), wslab


# ---------------------------------------------------------------------------
# Pallas kernel: FCTP_1 + Gate + FCTP_2, one row-tile per grid step
# ---------------------------------------------------------------------------
def ffn_kernel(x_ref, a_ref, sel_ref, w_ref, o_ref):
    x    = x_ref[...]                                  # (TN, 80)  raw e3nn layout
    attr = a_ref[...]                                  # (TN, 4)
    sel  = sel_ref[...]                                # (84, 768) 0/1 selection
    Wall = w_ref[...]                                  # (392, 256) weights+bias

    W1 = Wall[0:K_PAD, 0:N_COLS]
    W2 = Wall[0:K_PAD, N_COLS:2 * N_COLS]
    b1 = Wall[K_PAD:K_PAD + 1, 0:N_COLS]
    b2 = Wall[K_PAD:K_PAD + 1, N_COLS:2 * N_COLS]

    # replication + (u,m)->component-major regroup + attr broadcast, all on MXU
    xa  = jnp.concatenate([x, attr], axis=-1)          # (TN, 84)
    big = _mxu_dot(xa, sel)                            # (TN, 768)
    xrep1 = big[:, 0:K_PAD]                            # (TN, 384) replicated x
    arep  = big[:, K_PAD:2 * K_PAD]                    # (TN, 384) replicated attr

    # ---- fctp_1 (one fused dot) + Gate -------------------------------------
    # out1 cols: [ s(32) | gates replicated x3 (48) | v1 u-major (48) ]
    out1 = _mxu_dot(xrep1 * arep, W1) + b1             # (TN, 128)
    sg   = _sigmoid(out1[:, 0:C0 + 3 * C1])            # sigmoid of scalars+gates
    mid0 = (C_SILU * out1[:, 0:C0]) * sg[:, 0:C0]      # normalize2mom(SiLU)
    mid1 = (C_SIG * out1[:, C0 + 3 * C1:N_COLS]) * sg[:, C0:C0 + 3 * C1]
    mid  = jnp.concatenate([mid0, mid1], axis=-1)      # (TN, 80) e3nn layout

    # ---- fctp_2 (one fused dot, output IS the final e3nn layout) -----------
    xrep2 = _mxu_dot(mid, sel[0:D_NODE, 0:K_PAD])      # (TN, 384)
    out2  = _mxu_dot(xrep2 * arep, W2) + b2            # (TN, 128): [out(80)|0]

    o_ref[...] = out2[:, 0:D_NODE]                     # single (TN, 80) store


# ---------------------------------------------------------------------------
# wrapper
# ---------------------------------------------------------------------------
def ffn_equiformer(node_input, node_attr, params, *, tile_rows=256):
    n = node_input.shape[0]
    tn = int(tile_rows)
    n_pad = ((n + tn - 1) // tn) * tn

    x = node_input.astype(jnp.float32)
    a = node_attr.astype(jnp.float32)
    if n_pad != n:
        x = jnp.pad(x, ((0, n_pad - n), (0, 0)))
        a = jnp.pad(a, ((0, n_pad - n), (0, 0)))

    sel_slab, w_slab = _build_constants(params)

    out = pl.pallas_call(
        ffn_kernel,
        out_shape=jax.ShapeDtypeStruct((n_pad, D_NODE), jnp.float32),
        grid_spec=pltpu.PrefetchScalarGridSpec(
            num_scalar_prefetch=0,
            grid=(n_pad // tn,),
            in_specs=[
                pl.BlockSpec((tn, D_NODE), lambda i: (i, 0)),        # node rows
                pl.BlockSpec((tn, D_ATTR), lambda i: (i, 0)),        # attr rows
                pl.BlockSpec((SEL_ROWS, 2 * K_PAD), lambda i: (0, 0)),   # const
                pl.BlockSpec((W_ROWS, 2 * N_COLS), lambda i: (0, 0)),    # const
            ],
            out_specs=pl.BlockSpec((tn, D_NODE), lambda i: (i, 0)),
        ),
        compiler_params=pltpu.CompilerParams(
            dimension_semantics=("parallel",)),
    )(x, a, sel_slab, w_slab)

    return out[:n] if n_pad != n else out


# ---------------------------------------------------------------------------
# plain-JAX reference (e3nn layouts, highest precision) for self-check
# ---------------------------------------------------------------------------
def ffn_reference(node_input, node_attr, p):
    HI = jax.lax.Precision.HIGHEST
    n = node_input.shape[0]
    a0 = node_attr[:, 0:1]
    a1 = node_attr[:, 1:4]

    def fctp(x, Ws, Wv, bias):
        x0 = x[:, :C0]
        x1 = x[:, C0:].reshape(n, C1, 3)
        Wa, Wd = Ws[:C0], Ws[C0:]
        Wb, Wc, We = Wv[:C0], Wv[C0:C0 + C1], Wv[C0 + C1:]
        s = (jnp.dot(x0 * a0, Wa, precision=HI)
             + INV_SQRT3 * jnp.dot((x1 * a1[:, None, :]).sum(-1), Wd, precision=HI)
             + bias)
        o_b = x0[:, :, None] * a1[:, None, :]                       # (n,32,3)
        o_c = x1 * a0[:, :, None]                                   # (n,16,3)
        # TODO(synk): overall sign of e3nn's real wigner_3j(1,1,1) basis is
        # assumed to follow the cross-product convention used here.
        o_e = jnp.cross(x1, jnp.broadcast_to(a1[:, None, :], x1.shape))
        v = (jnp.einsum("num,uw->nwm", o_b, Wb, precision=HI)
             + jnp.einsum("num,uw->nwm", o_c, Wc, precision=HI)
             + INV_SQRT2 * jnp.einsum("num,uw->nwm", o_e, We, precision=HI))
        return s, v

    s1, v1 = fctp(node_input, p["Ws1"], p["Wv1"], p["b1"])
    scal = C_SILU * s1[:, :C0] * jax.nn.sigmoid(s1[:, :C0])
    gate = C_SIG * jax.nn.sigmoid(s1[:, C0:])
    mid = jnp.concatenate(
        [scal, (v1 * gate[:, :, None]).reshape(n, 3 * C1)], axis=-1)
    s2, v2 = fctp(mid, p["Ws2"], p["Wv2"], p["b2"])
    return jnp.concatenate([s2, v2.reshape(n, 3 * C1)], axis=-1)


# ---------------------------------------------------------------------------
# deterministic parameter init (e3nn N(0,1) weights x Equiformer sqrt_k rescale)
# ---------------------------------------------------------------------------
def init_params(key):
    ks = jax.random.split(key, 6)
    f32 = jnp.float32
    sk0 = 1.0 / math.sqrt(C0 + C1)       # fan-in of the 0e output slice (48)
    sk1 = 1.0 / math.sqrt(C0 + 2 * C1)   # fan-in of the 1e output slice (64)
    return {
        # fctp_1: Ws rows = [0e*0e->0e (32) ; 1e*1e->0e (16)],
        #         Wv rows = [0e*1e->1e (32) ; 1e*0e->1e (16) ; 1e*1e->1e (16)]
        "Ws1": jax.random.normal(ks[0], (S1_OUT, S1_OUT), f32) * sk0,
        "Wv1": jax.random.normal(ks[1], (C0 + 2 * C1, C1), f32) * sk1,
        # torch initializes biases to zeros; nonzero here to exercise the path
        "b1":  jax.random.normal(ks[2], (S1_OUT,), f32) * 0.1,
        "Ws2": jax.random.normal(ks[3], (S1_OUT, S2_OUT), f32) * sk0,
        "Wv2": jax.random.normal(ks[4], (C0 + 2 * C1, C1), f32) * sk1,
        "b2":  jax.random.normal(ks[5], (S2_OUT,), f32) * 0.1,
    }


if __name__ == "__main__":
    N = 2048                      # rows; tile 256 -> grid of 8
    key = jax.random.PRNGKey(0)
    k_x, k_a, k_p = jax.random.split(key, 3)

    node_input = jax.random.normal(k_x, (N, D_NODE), jnp.float32)
    node_attr  = jax.random.normal(k_a, (N, D_ATTR), jnp.float32)
    params = init_params(k_p)

    out = jax.block_until_ready(
        ffn_equiformer(node_input, node_attr, params, tile_rows=256))
    ref = jax.block_until_ready(ffn_reference(node_input, node_attr, params))

    assert out.shape == (N, D_NODE), out.shape
    assert bool(jnp.all(jnp.isfinite(out)))
    # all-f32 path vs highest-precision reference (small slack for the EUP
    # tanh-based sigmoid approximation)
    np.testing.assert_allclose(np.asarray(out), np.asarray(ref),
                               rtol=1e-4, atol=1e-4)

    # ragged row count exercises the padded last tile
    N2 = 333
    out2 = jax.block_until_ready(
        ffn_equiformer(node_input[:N2], node_attr[:N2], params, tile_rows=256))
    np.testing.assert_allclose(np.asarray(out2), np.asarray(ref[:N2]),
                               rtol=1e-4, atol=1e-4)

    print("KERNEL_OK")
</pallas_src>

<mosaic_0001>
module attributes {stable_mosaic.version = 11 : i64} {
  func.func @ffn_kernel(%arg0: i32, %arg1: memref<256x80xf32, #tpu.memory_space<vmem>>, %arg2: memref<256x4xf32, #tpu.memory_space<vmem>>, %arg3: memref<84x768xf32, #tpu.memory_space<vmem>>, %arg4: memref<392x256xf32, #tpu.memory_space<vmem>>, %arg5: memref<256x80xf32, #tpu.memory_space<vmem>>) attributes {dimension_semantics = [#tpu.dimension_semantics<parallel>], iteration_bounds = array<i64: 8>, scalar_prefetch = 0 : i64, scratch_operands = 0 : i64, tpu.core_type = #tpu.core_type<tc>, window_params = [{transform_indices = @transform_0, window_bounds = array<i64: 256, 80>}, {transform_indices = @transform_1, window_bounds = array<i64: 256, 4>}, {pipeline_mode = #tpu.pipeline_mode<synchronous>, transform_indices = @transform_2, window_bounds = array<i64: 84, 768>}, {pipeline_mode = #tpu.pipeline_mode<synchronous>, transform_indices = @transform_3, window_bounds = array<i64: 392, 256>}, {transform_indices = @transform_4, window_bounds = array<i64: 256, 80>}]} {
    %c0 = arith.constant 0 : index
    %c0_0 = arith.constant 0 : index
    %0 = vector.load %arg1[%c0, %c0_0] : memref<256x80xf32, #tpu.memory_space<vmem>>, vector<256x80xf32>
    %c0_1 = arith.constant 0 : index
    %c0_2 = arith.constant 0 : index
    %1 = vector.load %arg2[%c0_1, %c0_2] : memref<256x4xf32, #tpu.memory_space<vmem>>, vector<256x4xf32>
    %c0_3 = arith.constant 0 : index
    %c0_4 = arith.constant 0 : index
    %2 = vector.load %arg3[%c0_3, %c0_4] : memref<84x768xf32, #tpu.memory_space<vmem>>, vector<84x768xf32>
    %c0_5 = arith.constant 0 : index
    %c0_6 = arith.constant 0 : index
    %3 = vector.load %arg4[%c0_5, %c0_6] : memref<392x256xf32, #tpu.memory_space<vmem>>, vector<392x256xf32>
    %4 = vector.extract_strided_slice %3 {offsets = [0, 0], sizes = [384, 128], strides = [1, 1]} : vector<392x256xf32> to vector<384x128xf32>
    %5 = vector.extract_strided_slice %3 {offsets = [0, 128], sizes = [384, 128], strides = [1, 1]} : vector<392x256xf32> to vector<384x128xf32>
    %6 = vector.extract_strided_slice %3 {offsets = [384, 0], sizes = [1, 128], strides = [1, 1]} : vector<392x256xf32> to vector<1x128xf32>
    %7 = vector.extract_strided_slice %3 {offsets = [384, 128], sizes = [1, 128], strides = [1, 1]} : vector<392x256xf32> to vector<1x128xf32>
    %8 = tpu.concatenate %0, %1 in 1 : vector<256x80xf32>, vector<256x4xf32> -> vector<256x84xf32>
    %cst = arith.constant dense<0.000000e+00> : vector<256x768xf32>
    %9 = tpu.matmul %8, %2, %cst {dimension_numbers = #tpu.dot_dimension_numbers<[1], [0], [0], [1], [0, 0, 1, 1], [], []>} : vector<256x84xf32>, vector<84x768xf32>, vector<256x768xf32> -> vector<256x768xf32>
    %10 = vector.extract_strided_slice %9 {offsets = [0, 0], sizes = [256, 384], strides = [1, 1]} : vector<256x768xf32> to vector<256x384xf32>
    %11 = vector.extract_strided_slice %9 {offsets = [0, 384], sizes = [256, 384], strides = [1, 1]} : vector<256x768xf32> to vector<256x384xf32>
    %12 = arith.mulf %10, %11 : vector<256x384xf32>
    %cst_7 = arith.constant dense<0.000000e+00> : vector<256x128xf32>
    %13 = tpu.matmul %12, %4, %cst_7 {dimension_numbers = #tpu.dot_dimension_numbers<[1], [0], [0], [1], [0, 0, 1, 1], [], []>} : vector<256x384xf32>, vector<384x128xf32>, vector<256x128xf32> -> vector<256x128xf32>
    %14 = vector.broadcast %6 : vector<1x128xf32> to vector<256x128xf32>
    %15 = arith.addf %13, %14 : vector<256x128xf32>
    %16 = vector.extract_strided_slice %15 {offsets = [0, 0], sizes = [256, 80], strides = [1, 1]} : vector<256x128xf32> to vector<256x80xf32>
    %cst_8 = arith.constant 5.000000e-01 : f32
    %17 = vector.broadcast %cst_8 : f32 to vector<256x80xf32>
    %18 = arith.mulf %17, %16 : vector<256x80xf32>
    %19 = math.tanh %18 : vector<256x80xf32>
    %cst_9 = arith.constant 1.000000e+00 : f32
    %20 = vector.broadcast %cst_9 : f32 to vector<256x80xf32>
    %21 = arith.addf %19, %20 : vector<256x80xf32>
    %cst_10 = arith.constant 5.000000e-01 : f32
    %22 = vector.broadcast %cst_10 : f32 to vector<256x80xf32>
    %23 = arith.mulf %22, %21 : vector<256x80xf32>
    %24 = vector.extract_strided_slice %15 {offsets = [0, 0], sizes = [256, 32], strides = [1, 1]} : vector<256x128xf32> to vector<256x32xf32>
    %cst_11 = arith.constant 1.67653251 : f32
    %25 = vector.broadcast %cst_11 : f32 to vector<256x32xf32>
    %26 = arith.mulf %25, %24 : vector<256x32xf32>
    %27 = vector.extract_strided_slice %23 {offsets = [0, 0], sizes = [256, 32], strides = [1, 1]} : vector<256x80xf32> to vector<256x32xf32>
    %28 = arith.mulf %26, %27 : vector<256x32xf32>
    %29 = vector.extract_strided_slice %15 {offsets = [0, 80], sizes = [256, 48], strides = [1, 1]} : vector<256x128xf32> to vector<256x48xf32>
    %cst_12 = arith.constant 1.8462286 : f32
    %30 = vector.broadcast %cst_12 : f32 to vector<256x48xf32>
    %31 = arith.mulf %30, %29 : vector<256x48xf32>
    %32 = vector.extract_strided_slice %23 {offsets = [0, 32], sizes = [256, 48], strides = [1, 1]} : vector<256x80xf32> to vector<256x48xf32>
    %33 = arith.mulf %31, %32 : vector<256x48xf32>
    %34 = tpu.concatenate %28, %33 in 1 : vector<256x32xf32>, vector<256x48xf32> -> vector<256x80xf32>
    %35 = vector.extract_strided_slice %2 {offsets = [0, 0], sizes = [80, 384], strides = [1, 1]} : vector<84x768xf32> to vector<80x384xf32>
    %cst_13 = arith.constant dense<0.000000e+00> : vector<256x384xf32>
    %36 = tpu.matmul %34, %35, %cst_13 {dimension_numbers = #tpu.dot_dimension_numbers<[1], [0], [0], [1], [0, 0, 1, 1], [], []>} : vector<256x80xf32>, vector<80x384xf32>, vector<256x384xf32> -> vector<256x384xf32>
    %37 = arith.mulf %36, %11 : vector<256x384xf32>
    %cst_14 = arith.constant dense<0.000000e+00> : vector<256x128xf32>
    %38 = tpu.matmul %37, %5, %cst_14 {dimension_numbers = #tpu.dot_dimension_numbers<[1], [0], [0], [1], [0, 0, 1, 1], [], []>} : vector<256x384xf32>, vector<384x128xf32>, vector<256x128xf32> -> vector<256x128xf32>
    %39 = vector.broadcast %7 : vector<1x128xf32> to vector<256x128xf32>
    %40 = arith.addf %38, %39 : vector<256x128xf32>
    %41 = vector.extract_strided_slice %40 {offsets = [0, 0], sizes = [256, 80], strides = [1, 1]} : vector<256x128xf32> to vector<256x80xf32>
    %c0_15 = arith.constant 0 : index
    %c0_16 = arith.constant 0 : index
    %42 = vector.load %arg5[%c0_15, %c0_16] : memref<256x80xf32, #tpu.memory_space<vmem>>, vector<256x80xf32>
    tpu.vector_store %arg5[%c0_15, %c0_16], %41 {strides = array<i32>} : memref<256x80xf32, #tpu.memory_space<vmem>>, vector<256x80xf32>,
    return
  }
  func.func @transform_0(%arg0: i32) -> (i32, i32) {
    %c0_i32 = arith.constant 0 : i32
    %c0_i32_0 = arith.constant 0 : i32
    return %arg0, %c0_i32 : i32, i32
  }
  func.func @transform_1(%arg0: i32) -> (i32, i32) {
    %c0_i32 = arith.constant 0 : i32
    %c0_i32_0 = arith.constant 0 : i32
    return %arg0, %c0_i32 : i32, i32
  }
  func.func @transform_2(%arg0: i32) -> (i32, i32) {
    %c0_i32 = arith.constant 0 : i32
    %c0_i32_0 = arith.constant 0 : i32
    %c0_i32_1 = arith.constant 0 : i32
    return %c0_i32, %c0_i32_0 : i32, i32
  }
  func.func @transform_3(%arg0: i32) -> (i32, i32) {
    %c0_i32 = arith.constant 0 : i32
    %c0_i32_0 = arith.constant 0 : i32
    %c0_i32_1 = arith.constant 0 : i32
    return %c0_i32, %c0_i32_0 : i32, i32
  }
  func.func @transform_4(%arg0: i32) -> (i32, i32) {
    %c0_i32 = arith.constant 0 : i32
    %c0_i32_0 = arith.constant 0 : i32
    return %arg0, %c0_i32 : i32, i32
  }
}

</mosaic_0001>

<bundles_post_ra>
// kernel: tpu_custom_call.1
= control target key start
LH: loop header
LB: loop body
LE: loop exit
PB: predicated region body
PF: predicated region fallthrough
CT: control target
= control target key end

     0   :  { %s4752_s15 = smov 0   ;;  %s7202_s0 = inlined_call_operand.vmem [shape: f32[2048,80], index: 0, kind: input, shape index: {}]   ;;  %s7203_s1 = inlined_call_operand.vmem [shape: f32[2048,4], index: 1, kind: input, shape index: {}]   ;;  %s7204_s2 = inlined_call_operand.vmem [shape: f32[84,768], index: 2, kind: input, shape index: {}]   ;;  %s7205_s3 = inlined_call_operand.vmem [shape: f32[392,256], index: 3, kind: input, shape index: {}]   ;;  %s7206_s4 = inlined_call_operand.vmem [shape: f32[2048,80], index: 4, kind: output, shape index: {}]  }
   0x1 LB: > { %s3822_s16 = sadd.s32 4294967295, %s4721_s15   ;;  %p3826_p0 = scmp.ge.s32.totalorder %s4721_s15, 1  ;;  %s4721_s15 = sphi %s4752_s15, %s14_s15  }
   0x2   : > { %p174_p1 = scmp.lt.s32.totalorder %s4721_s15, 9 }
   0x4   : > { %p175_p2 = pnand %p3826_p0, %p174_p1 }
   0x6   : > { %178 = sbr.rel (%p175_p2) target bundleno = 1474 (0x5c2), region = 36 }
   0xd   : > { %s3827_s17 = sshll.u32 %s3822_s16, 5  ;;  %v288_v0 = vld [vmem:[%s7204_s2 + $0x8] sm:$0xff]  ;;  %v294_v1 = vld [vmem:[%s7204_s2 + $0x38] sm:$0xff]  ;;  %v287_v2 = vld [vmem:[%s7204_s2] sm:$0xff]  ;;  %v7207_v11 = vmov 0.0   ;;  %s4724_s25 = smov 80  }
   0xe   : > { %p206_p3 = scmp.lt.s32.totalorder %s3827_s17, 255  ;;  %v4769_v3 = vpack.c.bf16 %v294_v1, %v288_v0  ;;  %v293_v4 = vld [vmem:[%s7204_s2 + $0x30] sm:$0xff]  ;;  %v300_v5 = vld [vmem:[%s7204_s2 + $0x68] sm:$0xff]  ;;  %v306_v6 = vld [vmem:[%s7204_s2 + $0x98] sm:$0xff]  ;;  %792 = vmatprep.mubr.f32.mxu0 %v7207_v11  ;;  %936 = vmatprep.mubr.f32.mxu1 %v7207_v11  ;;  %vm709_vm0 = vcmask 1043456   ;;  %vm579_vm1 = vcmask 654336  }
   0xf   : > { %v4780_v7 = vpack.c.bf16 %v293_v4, %v287_v2  ;;  %v4782_v8 = vpack.c.bf16 %v306_v6, %v300_v5  ;;  %v299_v9 = vld [vmem:[%s7204_s2 + $0x60] sm:$0xff]  ;;  %v305_v10 = vld [vmem:[%s7204_s2 + $0x90] sm:$0xff]  ;;  %v312_v12 = vld [vmem:[%s7204_s2 + $0xc8] sm:$0xff]  ;;  %vm612_vm2 = vcmask 687104   ;;  %s4726_s28 = smov 48   ;;  %vm2561_vm3 = vcmask 261120  }
  0x10   : > { %s7599_s17 = smov (!%p206_p3, %s3827_s17), 255  ;;  %4368 = vmatprep.subr.bf16.mxu0 %v4769_v3  ;;  %v318_v13 = vld [vmem:[%s7204_s2 + $0xf8] sm:$0xff]  ;;  %4627 = vmatprep.subr.bf16.mxu1 %v4769_v3  ;;  %v4805_v14 = vpack.c.bf16 %v305_v10, %v299_v9  ;;  %v311_v16 = vld [vmem:[%s7204_s2 + $0xc0] sm:$0xff]  ;;  %v317_v17 = vld [vmem:[%s7204_s2 + $0xf0] sm:$0xff] }
  0x11   : > { %4370 = vmatpush1.bf16.msra.mxu0 %v4780_v7  ;;  %4633 = vmatpush1.bf16.msra.mxu1 %v4780_v7  ;;  %s4802_s12 = sshll.u32 %s7599_s17, 3  ;;  %v4814_v15 = vpack.c.bf16 %v318_v13, %v312_v12  ;;  %v324_v18 = vld [vmem:[%s7204_s2 + $0x128] sm:$0xff]  ;;  %v330_v21 = vld [vmem:[%s7204_s2 + $0x158] sm:$0xff]  ;;  %v4835_v24 = vpack.c.bf16 %v317_v17, %v311_v16  ;;  %v323_v26 = vld [vmem:[%s7204_s2 + $0x120] sm:$0xff] }
  0x12   : > { %4372 = vmatprep.subr.bf16.mxu0 %v4782_v8  ;;  %4628 = vmatprep.subr.bf16.mxu1 %v4782_v8  ;;  %s4812_s16 = scalar_lea.vmem %s7203_s1, %s4802_s12  ;;  %v4839_v25 = vpack.c.bf16 %v330_v21, %v324_v18  ;;  %v329_v27 = vld [vmem:[%s7204_s2 + $0x150] sm:$0xff]  ;;  %v336_v28 = vld [vmem:[%s7204_s2 + $0x188] sm:$0xff]  ;;  %v342_v29 = vld [vmem:[%s7204_s2 + $0x1b8] sm:$0xff]  ;;  %s4960_s30 = scalar_lea.vmem %s7202_s0, %s4802_s12 }
  0x13   : > { %v257_v19 = vld [vmem:[%s4812_s16 + $0x10] sm:$0xff]  ;;  %v255_v20 = vld [vmem:[%s4812_s16] sm:$0xff]  ;;  %v258_v22 = vld [vmem:[%s4812_s16 + $0x18] sm:$0xff]  ;;  %v4859_v32 = vpack.c.bf16 %v329_v27, %v323_v26  ;;  %v4863_v33 = vpack.c.bf16 %v342_v29, %v336_v28  ;;  %s7103_s9 = scalar_lea.vmem %s7206_s4, %s4802_s12 }
  0x14   : > { %487 = vrot.lane.b32.xlu1 %v257_v19, %s4724_s25  ;;  %483 = vrot.lane.b32.xlu0 %v255_v20, %s4724_s25  ;;  %v256_v23 = vld [vmem:[%s4812_s16 + $0x8] sm:$0xff]  ;;  %v259_v31 = vld [vmem:[%s4812_s16 + $0x20] sm:$0xff] }
  0x15   : > { %4374 = vmatpush1.bf16.msra.mxu0 %v4805_v14  ;;  %4634 = vmatpush1.bf16.msra.mxu1 %v4805_v14  ;;  %v260_v30 = vld [vmem:[%s4812_s16 + $0x28] sm:$0xff]  ;;  %v335_v34 = vld [vmem:[%s7204_s2 + $0x180] sm:$0xff]  ;;  %v341_v35 = vld [vmem:[%s7204_s2 + $0x1b0] sm:$0xff] }
  0x16   : > { %4376 = vmatprep.subr.bf16.mxu0 %v4814_v15  ;;  %4629 = vmatprep.subr.bf16.mxu1 %v4814_v15  ;;  %v262_v36 = vld [vmem:[%s4812_s16 + $0x38] sm:$0xff]  ;;  %v261_v37 = vld [vmem:[%s4812_s16 + $0x30] sm:$0xff]  ;;  %v4877_v38 = vpack.c.bf16 %v341_v35, %v335_v34  ;;  %v348_v39 = vld [vmem:[%s7204_s2 + $0x1e8] sm:$0xf] }
  0x17   : > { %v292_v40 = vld [vmem:[%s7204_s2 + $0x28] sm:$0xff]  ;;  %v298_v41 = vld [vmem:[%s7204_s2 + $0x58] sm:$0xff]  ;;  %v263_v43 = vld [vmem:[%s4812_s16 + $0x40] sm:$0xff] }
  0x18   : > { %489 = vrot.lane.b32.xlu1 %v258_v22, %s4724_s25  ;;  %485 = vrot.lane.b32.xlu0 %v256_v23, %s4724_s25  ;;  %v264_v42 = vld [vmem:[%s4812_s16 + $0x48] sm:$0xff]  ;;  %v347_v44 = vld [vmem:[%s7204_s2 + $0x1e0] sm:$0xf]  ;;  %v4407_v45 = vpack.c.bf16 %v298_v41, %v292_v40 }
  0x19   : > { %4378 = vmatpush1.bf16.msra.mxu0 %v4835_v24  ;;  %4635 = vmatpush1.bf16.msra.mxu1 %v4835_v24  ;;  %v266_v46 = vld [vmem:[%s4812_s16 + $0x58] sm:$0xff]  ;;  %v265_v47 = vld [vmem:[%s4812_s16 + $0x50] sm:$0xff]  ;;  %v268_v48 = vld [vmem:[%s4812_s16 + $0x68] sm:$0xff] }
  0x1a   : > { %4380 = vmatprep.subr.bf16.mxu0 %v4839_v25  ;;  %4630 = vmatprep.subr.bf16.mxu1 %v4839_v25  ;;  %v267_v49 = vld [vmem:[%s4812_s16 + $0x60] sm:$0xff]  ;;  %v270_v50 = vld [vmem:[%s4812_s16 + $0x78] sm:$0xff]  ;;  %v269_v51 = vld [vmem:[%s4812_s16 + $0x70] sm:$0xff] }
  0x1b   : > { %v290_v52 = vld [vmem:[%s7204_s2 + $0x18] sm:$0xff]  ;;  %v296_v53 = vld [vmem:[%s7204_s2 + $0x48] sm:$0xff]  ;;  %v279_v55 = vld [vmem:[%s4812_s16 + $0xc0] sm:$0xff] }
  0x1c   : > { %493 = vrot.lane.b32.xlu1 %v260_v30, %s4724_s25  ;;  %491 = vrot.lane.b32.xlu0 %v259_v31, %s4724_s25  ;;  %v4387_v54 = vpack.c.bf16 %v296_v53, %v290_v52  ;;  %v271_v56 = vld [vmem:[%s4812_s16 + $0x80] sm:$0xff]  ;;  %v280_v57 = vld [vmem:[%s4812_s16 + $0xc8] sm:$0xff] }
  0x1d   : > { %4382 = vmatpush1.bf16.msra.mxu0 %v4859_v32  ;;  %4636 = vmatpush1.bf16.msra.mxu1 %v4859_v32  ;;  %v272_v58 = vld [vmem:[%s4812_s16 + $0x88] sm:$0xff]  ;;  %v281_v59 = vld [vmem:[%s4812_s16 + $0xd0] sm:$0xff]  ;;  %v282_v61 = vld [vmem:[%s4812_s16 + $0xd8] sm:$0xff] }
  0x1e   : > { %4384 = vmatprep.subr.bf16.mxu0 %v4863_v33  ;;  %4631 = vmatprep.subr.bf16.mxu1 %v4863_v33  ;;  %v273_v60 = vld [vmem:[%s4812_s16 + $0x90] sm:$0xff]  ;;  %v274_v62 = vld [vmem:[%s4812_s16 + $0x98] sm:$0xff]  ;;  %v283_v63 = vld [vmem:[%s4812_s16 + $0xe0] sm:$0xff] }
  0x1f   : > { %v275_v0 = vld [vmem:[%s4812_s16 + $0xa0] sm:$0xff]  ;;  %v284_v1 = vld [vmem:[%s4812_s16 + $0xe8] sm:$0xff]  ;;  %v285_v4 = vld [vmem:[%s4812_s16 + $0xf0] sm:$0xff] }
  0x20   : > { %497 = vrot.lane.b32.xlu1 %v262_v36, %s4724_s25  ;;  %495 = vrot.lane.b32.xlu0 %v261_v37, %s4724_s25  ;;  %v276_v2 = vld [vmem:[%s4812_s16 + $0xa8] sm:$0xff]  ;;  %v277_v5 = vld [vmem:[%s4812_s16 + $0xb0] sm:$0xff] }
  0x21   : > { %4386 = vmatpush1.bf16.msra.mxu0 %v4877_v38  ;;  %4637 = vmatpush1.bf16.msra.mxu1 %v4877_v38  ;;  %v286_v6 = vld [vmem:[%s4812_s16 + $0xf8] sm:$0xff]  ;;  %v291_v10 = vld [vmem:[%s7204_s2 + $0x20] sm:$0xff]  ;;  %v297_v12 = vld [vmem:[%s7204_s2 + $0x50] sm:$0xff] }
  0x22   : > { %3833 = vmatprep.subr.msk.mxu0 %vm709_vm0, %v348_v39  ;;  %4632 = vmatprep.subr.msk.mxu1 %vm709_vm0, %v348_v39  ;;  %v278_v9 = vld [vmem:[%s4812_s16 + $0xb8] sm:$0xff]  ;;  %v304_v13 = vld [vmem:[%s7204_s2 + $0x88] sm:$0xff]  ;;  %v223_v17 = vld [vmem:[%s4960_s30] sm:$0xff]  ;;  %v4409_v18 = vpack.c.bf16 %v297_v12, %v291_v10 }
  0x23   : > { %v310_v16 = vld [vmem:[%s7204_s2 + $0xb8] sm:$0xff]  ;;  %v303_v22 = vld [vmem:[%s7204_s2 + $0x80] sm:$0xff]  ;;  %v309_v23 = vld [vmem:[%s7204_s2 + $0xb0] sm:$0xff] }
  0x24   : > { %501 = vrot.lane.b32.xlu1 %v264_v42, %s4724_s25  ;;  %499 = vrot.lane.b32.xlu0 %v263_v43, %s4724_s25  ;;  %v4411_v21 = vpack.c.bf16 %v310_v16, %v304_v13  ;;  %v316_v27 = vld [vmem:[%s7204_s2 + $0xe8] sm:$0xff]  ;;  %v322_v28 = vld [vmem:[%s7204_s2 + $0x118] sm:$0xff]  ;;  %v4413_v30 = vpack.c.bf16 %v309_v23, %v303_v22 }
  0x25   : > { %3834 = vmatpush1.msk.msra.mxu0 %vm709_vm0, %v347_v44  ;;  %4638 = vmatpush1.msk.msra.mxu1 %vm709_vm0, %v347_v44  ;;  %v224_v29 = vld [vmem:[%s4960_s30 + $0x8] sm:$0xff]  ;;  %v225_v31 = vld [vmem:[%s4960_s30 + $0x10] sm:$0xff]  ;;  %v4415_v36 = vpack.c.bf16 %v322_v28, %v316_v27  ;;  %v315_v37 = vld [vmem:[%s7204_s2 + $0xe0] sm:$0xff] }
  0x26   : > { %4408 = vmatprep.subr.bf16.mxu0 %v4407_v45  ;;  %4388 = vmatprep.subr.bf16.mxu1 %v4387_v54  ;;  %v321_v39 = vld [vmem:[%s7204_s2 + $0x110] sm:$0xff]  ;;  %v328_v41 = vld [vmem:[%s7204_s2 + $0x148] sm:$0xff]  ;;  %v334_v42 = vld [vmem:[%s7204_s2 + $0x178] sm:$0xff] }
  0x27   : > { %v4417_v44 = vpack.c.bf16 %v321_v39, %v315_v37  ;;  %v226_v45 = vld [vmem:[%s4960_s30 + $0x18] sm:$0xff]  ;;  %v308_v23 = vld [vmem:[%s7204_s2 + $0xa8] sm:$0xff] }
  0x28   : > { %505 = vrot.lane.b32.xlu1 %v266_v46, %s4724_s25  ;;  %503 = vrot.lane.b32.xlu0 %v265_v47, %s4724_s25  ;;  %v4419_v47 = vpack.c.bf16 %v334_v42, %v328_v41  ;;  %v230_v10 = vld [vmem:[%s4960_s30 + $0x38] sm:$0xff]  ;;  %v232_v28 = vld [vmem:[%s4960_s30 + $0x48] sm:$0xff] }
  0x29   : > { %v302_v22 = vld [vmem:[%s7204_s2 + $0x78] sm:$0xff]  ;;  %v248_v37 = vld [vmem:[%s4960_s30 + $0xc8] sm:$0xff] }
  0x2a   : > { %v314_v41 = vld [vmem:[%s7204_s2 + $0xd8] sm:$0xff]  ;;  %v320_v42 = vld [vmem:[%s7204_s2 + $0x108] sm:$0xff] }
  0x2c   : > { %509 = vrot.lane.b32.xlu1 %v268_v48, %s4724_s25  ;;  %507 = vrot.lane.b32.xlu0 %v267_v49, %s4724_s25  ;;  %v327_v48 = vld [vmem:[%s7204_s2 + $0x140] sm:$0xff]  ;;  %v333_v49 = vld [vmem:[%s7204_s2 + $0x170] sm:$0xff] }
  0x2d   : > { %v4421_v53 = vpack.c.bf16 %v333_v49, %v327_v48  ;;  %v4395_v49 = vpack.c.bf16 %v320_v42, %v314_v41  ;;  %v252_v42 = vld [vmem:[%s4960_s30 + $0xe8] sm:$0xff] }
  0x30   : > { %513 = vrot.lane.b32.xlu1 %v270_v50, %s4724_s25  ;;  %511 = vrot.lane.b32.xlu0 %v269_v51, %s4724_s25  ;;  %v340_v50 = vld [vmem:[%s7204_s2 + $0x1a8] sm:$0xff]  ;;  %v346_v51 = vld [vmem:[%s7204_s2 + $0x1d8] sm:$0xff] }
  0x34   : > { %531 = vrot.lane.b32.xlu1 %v279_v55, %s4724_s25  ;;  %515 = vrot.lane.b32.xlu0 %v271_v56, %s4724_s25  ;;  %v227_v56 = vld [vmem:[%s4960_s30 + $0x20] sm:$0xff] }
  0x38   : > { %533 = vrot.lane.b32.xlu1 %v280_v57, %s4724_s25  ;;  %517 = vrot.lane.b32.xlu0 %v272_v58, %s4724_s25  ;;  %v4423_v57 = vpack.c.bf16 %v346_v51, %v340_v50  ;;  %v339_v58 = vld [vmem:[%s7204_s2 + $0x1a0] sm:$0xff]  ;;  %v313_v50 = vld [vmem:[%s7204_s2 + $0xd0] sm:$0xff] }
  0x39   : > { %v319_v51 = vld [vmem:[%s7204_s2 + $0x100] sm:$0xff] }
  0x3c   : > { %535 = vrot.lane.b32.xlu1 %v281_v59, %s4724_s25  ;;  %519 = vrot.lane.b32.xlu0 %v273_v60, %s4724_s25  ;;  %v345_v59 = vld [vmem:[%s7204_s2 + $0x1d0] sm:$0xff] }
  0x40   : > { %537 = vrot.lane.b32.xlu1 %v282_v61, %s4724_s25  ;;  %521 = vrot.lane.b32.xlu0 %v274_v62, %s4724_s25  ;;  %v4425_v61 = vpack.c.bf16 %v345_v59, %v339_v58  ;;  %v228_v62 = vld [vmem:[%s4960_s30 + $0x28] sm:$0xff]  ;;  %v234_v58 = vld [vmem:[%s4960_s30 + $0x58] sm:$0xff] }
  0x44   : > { %539 = vrot.lane.b32.xlu1 %v283_v63, %s4724_s25  ;;  %523 = vrot.lane.b32.xlu0 %v275_v0, %s4724_s25  ;;  %v352_v0 = vld [vmem:[%s7204_s2 + $0x208] sm:$0xf] }
  0x48   : > { %541 = vrot.lane.b32.xlu1 %v284_v1, %s4724_s25  ;;  %525 = vrot.lane.b32.xlu0 %v276_v2, %s4724_s25 }
  0x4c   : > { %543 = vrot.lane.b32.xlu1 %v285_v4, %s4724_s25  ;;  %527 = vrot.lane.b32.xlu0 %v277_v5, %s4724_s25  ;;  %v229_v5 = vld [vmem:[%s4960_s30 + $0x30] sm:$0xff] }
  0x50   : > { %545 = vrot.lane.b32.xlu1 %v286_v6, %s4724_s25  ;;  %529 = vrot.lane.b32.xlu0 %v278_v9, %s4724_s25  ;;  %v351_v6 = vld [vmem:[%s7204_s2 + $0x200] sm:$0xf] }
  0x86   : > { %v488_v19 = vpop.permute.xlu1 %487  ;;  %v484_v20 = vpop.permute.xlu0 %483 }
  0x87   : > { %v4982_v26 = vsel %vm579_vm1, %v223_v17, %v484_v20  ;;  %v5013_v43 = vsel %vm579_vm1, %v225_v31, %v488_v19  ;;  %v289_v19 = vld [vmem:[%s7204_s2 + $0x10] sm:$0xff]  ;;  %v295_v20 = vld [vmem:[%s7204_s2 + $0x40] sm:$0xff] }
  0x88   : > { %3835 = vmatmul.mubr.msk.f32.vlgmr.msra.gmra.mrb[0].mxu0 %vm612_vm2, %v4982_v26 }
  0x89   : > { %4410 = vmatpush1.bf16.msra.mxu0 %v4409_v18  ;;  %798 = vmatprep.mubr.f32.mxu0 %v7207_v11  ;;  %v231_v18 = vld [vmem:[%s4960_s30 + $0x40] sm:$0xff] }
  0x8a   : > { %v490_v34 = vpop.permute.xlu1 %489  ;;  %v486_v35 = vpop.permute.xlu0 %485  ;;  %4412 = vmatprep.subr.bf16.mxu0 %v4411_v21  ;;  %v247_v21 = vld [vmem:[%s4960_s30 + $0xc0] sm:$0xff] }
  0x8b   : > { %v5002_v40 = vsel %vm579_vm1, %v224_v29, %v486_v35  ;;  %v5032_v52 = vsel %vm579_vm1, %v226_v45, %v490_v34  ;;  %v4391_v34 = vpack.c.bf16 %v308_v23, %v302_v22  ;;  %v301_v35 = vld [vmem:[%s7204_s2 + $0x70] sm:$0xff] }
  0x8c   : > { %3836 = vmatmul.mubr.msk.f32.gmra.mrb[2].mxu0 %vm612_vm2, %v5002_v40 }
  0x8d   : > { %804 = vmatprep.mubr.f32.mxu0 %v7207_v11  ;;  %4414 = vmatpush1.bf16.msra.mxu0 %v4413_v30  ;;  %v5104_v30 = vpack.c.bf16 %v295_v20, %v289_v19  ;;  %v235_v20 = vld [vmem:[%s4960_s30 + $0x60] sm:$0xff] }
  0x8e   : > { %v494_v46 = vpop.permute.xlu1 %493  ;;  %4416 = vmatprep.subr.bf16.mxu0 %v4415_v36  ;;  %v492_v55 = vpop.permute.xlu0 %491  ;;  %v307_v36 = vld [vmem:[%s7204_s2 + $0xa0] sm:$0xff] }
  0x8f   : > { %v5045_v60 = vsel %vm579_vm1, %v227_v56, %v492_v55  ;;  %v5055_v1 = vsel %vm579_vm1, %v228_v62, %v494_v46  ;;  %v233_v46 = vld [vmem:[%s4960_s30 + $0x50] sm:$0xff]  ;;  %v326_v55 = vld [vmem:[%s7204_s2 + $0x138] sm:$0xff]  ;;  %v332_v56 = vld [vmem:[%s7204_s2 + $0x168] sm:$0xff] }
  0x90   : > { %3837 = vmatmul.mubr.msk.f32.gmra.mrb[4].mxu0 %vm612_vm2, %v5013_v43 }
  0x91   : > { %810 = vmatprep.mubr.f32.mxu0 %v7207_v11  ;;  %4418 = vmatpush1.bf16.msra.mxu0 %v4417_v44 }
  0x92   : > { %v498_v54 = vpop.permute.xlu1 %497  ;;  %4420 = vmatprep.subr.bf16.mxu0 %v4419_v47  ;;  %v496_v4 = vpop.permute.xlu0 %495  ;;  %v5133_v47 = vpack.c.bf16 %v307_v36, %v301_v35  ;;  %v236_v36 = vld [vmem:[%s4960_s30 + $0x68] sm:$0xff] }
  0x93   : > { %v5068_v9 = vsel %vm579_vm1, %v229_v5, %v496_v4  ;;  %v5078_v13 = vsel %vm579_vm1, %v230_v10, %v498_v54  ;;  %v331_v4 = vld [vmem:[%s7204_s2 + $0x160] sm:$0xff]  ;;  %v250_v5 = vld [vmem:[%s4960_s30 + $0xd8] sm:$0xff] }
  0x94   : > { %3838 = vmatmul.mubr.msk.f32.gmra.mrb[6].mxu0 %vm612_vm2, %v5032_v52  ;;  %v338_v10 = vld [vmem:[%s7204_s2 + $0x198] sm:$0xff] }
  0x95   : > { %816 = vmatprep.mubr.f32.mxu0 %v7207_v11  ;;  %4422 = vmatpush1.bf16.msra.mxu0 %v4421_v53  ;;  %v249_v53 = vld [vmem:[%s4960_s30 + $0xd0] sm:$0xff] }
  0x96   : > { %v502_v63 = vpop.permute.xlu1 %501  ;;  %4424 = vmatprep.subr.bf16.mxu0 %v4423_v57  ;;  %v500_v17 = vpop.permute.xlu0 %499 }
  0x97   : > { %v5100_v27 = vsel %vm579_vm1, %v231_v18, %v500_v17  ;;  %v5127_v44 = vsel %vm579_vm1, %v232_v28, %v502_v63  ;;  %v4399_v63 = vpack.c.bf16 %v332_v56, %v326_v55  ;;  %v344_v17 = vld [vmem:[%s7204_s2 + $0x1c8] sm:$0xff]  ;;  %v343_v28 = vld [vmem:[%s7204_s2 + $0x1c0] sm:$0xff]  ;;  %v238_v56 = vld [vmem:[%s4960_s30 + $0x78] sm:$0xff] }
  0x98   : > { %3839 = vmatmul.mubr.msk.f32.gmra.mrb[8].mxu0 %vm612_vm2, %v5045_v60  ;;  %v4403_v23 = vpack.c.bf16 %v344_v17, %v338_v10  ;;  %v239_v17 = vld [vmem:[%s4960_s30 + $0x80] sm:$0xff] }
  0x99   : > { %822 = vmatprep.mubr.f32.mxu0 %v7207_v11  ;;  %4426 = vmatpush1.bf16.msra.mxu0 %v4425_v61  ;;  %v5162_v61 = vpack.c.bf16 %v319_v51, %v313_v50  ;;  %v237_v50 = vld [vmem:[%s4960_s30 + $0x70] sm:$0xff] }
  0x9a   : > { %v5058_v2 = vpop.permute.xlu1 %505  ;;  %3901 = vmatprep.subr.msk.mxu0 %vm709_vm0, %v352_v0  ;;  %v504_v39 = vpop.permute.xlu0 %503  ;;  %v325_v0 = vld [vmem:[%s7204_s2 + $0x130] sm:$0xff] }
  0x9b   : > { %v5156_v57 = vsel %vm579_vm1, %v233_v46, %v504_v39  ;;  %v5186_v18 = vsel %vm579_vm1, %v234_v58, %v5058_v2  ;;  %v337_v2 = vld [vmem:[%s7204_s2 + $0x190] sm:$0xff] }
  0x9c   : > { %3840 = vmatmul.mubr.msk.f32.gmra.mrb[10].mxu0 %vm612_vm2, %v5055_v1  ;;  %v5215_v39 = vpack.c.bf16 %v343_v28, %v337_v2  ;;  %v355_v2 = vld [vmem:[%s7205_s3 + $0x10] sm:$0xff] }
  0x9d   : > { %828 = vmatprep.mubr.f32.mxu0 %v7207_v11  ;;  %3902 = vmatpush1.msk.msra.mxu0 %vm709_vm0, %v351_v6 }
  0x9e   : > { %v5073_v12 = vpop.permute.xlu1 %509  ;;  %v508_v54 = vpop.permute.xlu0 %507 }
  0x9f   : > { %v5209_v35 = vsel %vm579_vm1, %v235_v20, %v508_v54  ;;  %v5230_v46 = vsel %vm579_vm1, %v236_v36, %v5073_v12  ;;  %v349_v12 = vld [vmem:[%s7204_s2 + $0x1f0] sm:$0xf] }
  0xa0   : > { %3841 = vmatmul.mubr.msk.f32.gmra.mrb[12].mxu0 %vm612_vm2, %v5068_v9  ;;  %v253_v54 = vld [vmem:[%s4960_s30 + $0xf0] sm:$0xff] }
  0xa1   : > { %834 = vmatprep.mubr.f32.mxu0 %v7207_v11 }
  0xa2   : > { %v5081_v16 = vpop.permute.xlu1 %513  ;;  %v512_v6 = vpop.permute.xlu0 %511 }
  0xa3   : > { %v5249_v55 = vsel %vm579_vm1, %v237_v50, %v512_v6  ;;  %v419_v6 = vld [vmem:[%s7205_s3 + $0x210] sm:$0xff] }
  0xa4   : > { %3842 = vmatmul.mubr.msk.f32.gmra.mrb[14].mxu0 %vm612_vm2, %v5078_v13 }
  0xa5   : > { %840 = vmatprep.mubr.f32.mxu0 %v7207_v11 }
  0xa6   : > { %v532_v29 = vpop.permute.xlu1 %531 }
  0xa7   : > { %v5107_v31 = vsel %vm579_vm1, %v247_v21, %v532_v29  ;;  %v5192_v21 = vpack.c.bf16 %v331_v4, %v325_v0  ;;  %v251_v29 = vld [vmem:[%s4960_s30 + $0xe0] sm:$0xff] }
  0xa8   : > { %3843 = vmatmul.mubr.msk.f32.gmra.mrb[16].mxu0 %vm612_vm2, %v5100_v27  ;;  %3859 = vmatmul.mubr.msk.f32.vlgmr.msra.gmra.mrb[0].mxu1 %vm612_vm2, %v5107_v31  ;;  %v417_v4 = vld [vmem:[%s7205_s3 + $0x200] sm:$0xff] }
  0xa9   : > { %846 = vmatprep.mubr.f32.mxu0 %v7207_v11  ;;  %942 = vmatprep.mubr.f32.mxu1 %v7207_v11  ;;  %v5277_v20 = vpack.c.bf16 %v419_v6, %v417_v4  ;;  %v243_v4 = vld [vmem:[%s4960_s30 + $0xa0] sm:$0xff] }
  0xaa   : > { %v534_v45 = vpop.permute.xlu1 %533  ;;  %4390 = vmatpush1.bf16.msra.mxu1 %v5104_v30 }
  0xab   : > { %v5136_v48 = vsel %vm579_vm1, %v248_v37, %v534_v45  ;;  %4392 = vmatprep.subr.bf16.mxu1 %v4391_v34  ;;  %v516_v34 = vpop.permute.xlu0 %515  ;;  %v350_v45 = vld [vmem:[%s7204_s2 + $0x1f8] sm:$0xf]  ;;  %4476 = vmatprep.subr.bf16.mxu0 %v5277_v20 }
  0xac   : > { %3844 = vmatmul.mubr.msk.f32.gmra.mrb[18].mxu0 %vm612_vm2, %v5127_v44  ;;  %3860 = vmatmul.mubr.msk.f32.gmra.mrb[2].mxu1 %vm612_vm2, %v5136_v48  ;;  %v5293_v28 = vsel %vm579_vm1, %v239_v17, %v516_v34  ;;  %v357_v34 = vld [vmem:[%s7205_s3 + $0x20] sm:$0xff]  ;;  %v244_v17 = vld [vmem:[%s4960_s30 + $0xa8] sm:$0xff] }
  0xad   : > { %852 = vmatprep.mubr.f32.mxu0 %v7207_v11  ;;  %948 = vmatprep.mubr.f32.mxu1 %v7207_v11 }
  0xae   : > { %v536_v59 = vpop.permute.xlu1 %535  ;;  %4394 = vmatpush1.bf16.msra.mxu1 %v5133_v47 }
  0xaf   : > { %v5165_v62 = vsel %vm579_vm1, %v249_v53, %v536_v59  ;;  %4396 = vmatprep.subr.bf16.mxu1 %v4395_v49  ;;  %v518_v51 = vpop.permute.xlu0 %517 }
  0xb0   : > { %3845 = vmatmul.mubr.msk.f32.gmra.mrb[20].mxu0 %vm612_vm2, %v5156_v57  ;;  %3861 = vmatmul.mubr.msk.f32.gmra.mrb[4].mxu1 %vm612_vm2, %v5165_v62 }
  0xb1   : > { %858 = vmatprep.mubr.f32.mxu0 %v7207_v11  ;;  %954 = vmatprep.mubr.f32.mxu1 %v7207_v11 }
  0xb2   : > { %v538_v19 = vpop.permute.xlu1 %537  ;;  %4398 = vmatpush1.bf16.msra.mxu1 %v5162_v61 }
  0xb3   : > { %v5195_v22 = vsel %vm579_vm1, %v250_v5, %v538_v19  ;;  %4400 = vmatprep.subr.bf16.mxu1 %v4399_v63  ;;  %v254_v63 = vld [vmem:[%s4960_s30 + $0xf8] sm:$0xff]  ;;  %v520_v0 = vpop.permute.xlu0 %519  ;;  %v5268_v5 = vsel %vm579_vm1, %v238_v56, %v5081_v16  ;;  %v7209_v19 = vmov 0.0|0.0   ;;  %v353_v16 = vld [vmem:[%s7205_s3] sm:$0xff] }
  0xb4   : > { %3846 = vmatmul.mubr.msk.f32.gmra.mrb[22].mxu0 %vm612_vm2, %v5186_v18  ;;  %3862 = vmatmul.mubr.msk.f32.gmra.mrb[6].mxu1 %vm612_vm2, %v5195_v22  ;;  %v361_v56 = vld [vmem:[%s7205_s3 + $0x40] sm:$0xff] }
  0xb5   : > { %864 = vmatprep.mubr.f32.mxu0 %v7207_v11  ;;  %960 = vmatprep.mubr.f32.mxu1 %v7207_v11 }
  0xb6   : > { %v540_v37 = vpop.permute.xlu1 %539  ;;  %4402 = vmatpush1.bf16.msra.mxu1 %v5192_v21 }
  0xb7   : > { %v5218_v41 = vsel %vm579_vm1, %v251_v29, %v540_v37  ;;  %4404 = vmatprep.subr.bf16.mxu1 %v4403_v23  ;;  %v240_v29 = vld [vmem:[%s4960_s30 + $0x88] sm:$0xff]  ;;  %v522_v36 = vpop.permute.xlu0 %521  ;;  %v4428_v37 = vpack.c.bf16 %v355_v2, %v353_v16  ;;  %v365_v2 = vld [vmem:[%s7205_s3 + $0x60] sm:$0xff] }
  0xb8   : > { %3847 = vmatmul.mubr.msk.f32.gmra.mrb[24].mxu0 %vm612_vm2, %v5209_v35  ;;  %3863 = vmatmul.mubr.msk.f32.gmra.mrb[8].mxu1 %vm612_vm2, %v5218_v41 }
  0xb9   : > { %870 = vmatprep.mubr.f32.mxu0 %v7207_v11  ;;  %966 = vmatprep.mubr.f32.mxu1 %v7207_v11 }
  0xba   : > { %v542_v49 = vpop.permute.xlu1 %541  ;;  %4406 = vmatpush1.bf16.msra.mxu1 %v5215_v39 }
  0xbb   : > { %v5237_v53 = vsel %vm579_vm1, %v252_v42, %v542_v49  ;;  %3867 = vmatprep.subr.msk.mxu1 %vm709_vm0, %v350_v45  ;;  %v359_v42 = vld [vmem:[%s7205_s3 + $0x30] sm:$0xff]  ;;  %v5310_v45 = vsel %vm579_vm1, %v240_v29, %v518_v51 }
  0xbc   : > { %3848 = vmatmul.mubr.msk.f32.gmra.mrb[26].mxu0 %vm612_vm2, %v5230_v46  ;;  %3864 = vmatmul.mubr.msk.f32.gmra.mrb[10].mxu1 %vm612_vm2, %v5237_v53  ;;  %v241_v49 = vld [vmem:[%s4960_s30 + $0x90] sm:$0xff]  ;;  %v4431_v50 = vpack.c.bf16 %v359_v42, %v357_v34 }
  0xbd   : > { %876 = vmatprep.mubr.f32.mxu0 %v7207_v11  ;;  %972 = vmatprep.mubr.f32.mxu1 %v7207_v11  ;;  %v5321_v51 = vsel %vm579_vm1, %v241_v49, %v520_v0  ;;  %v367_v29 = vld [vmem:[%s7205_s3 + $0x70] sm:$0xff] }
  0xbe   : > { %v544_v58 = vpop.permute.xlu1 %543  ;;  %3868 = vmatpush1.msk.msra.mxu1 %vm709_vm0, %v349_v12  ;;  %v524_v12 = vpop.permute.xlu0 %523  ;;  %v245_v34 = vld [vmem:[%s4960_s30 + $0xb0] sm:$0xff] }
  0xbf   : > { %v5256_v59 = vsel %vm579_vm1, %v253_v54, %v544_v58  ;;  %4427 = vmatprep.subr.bf16.mxu1 %v7209_v19  ;;  %v242_v54 = vld [vmem:[%s4960_s30 + $0x98] sm:$0xff]  ;;  %v363_v58 = vld [vmem:[%s7205_s3 + $0x50] sm:$0xff] }
  0xc0   : > { %3849 = vmatmul.mubr.msk.f32.gmra.mrb[28].mxu0 %vm612_vm2, %v5249_v55  ;;  %3865 = vmatmul.mubr.msk.f32.gmra.mrb[12].mxu1 %vm612_vm2, %v5256_v59  ;;  %v4434_v0 = vpack.c.bf16 %v363_v58, %v361_v56 }
  0xc1   : > { %882 = vmatprep.mubr.f32.mxu0 %v7207_v11  ;;  %978 = vmatprep.mubr.f32.mxu1 %v7207_v11 }
  0xc2   : > { %v546_v10 = vpop.permute.xlu1 %545  ;;  %v526_v6 = vpop.permute.xlu0 %525 }
  0xc3   : > { %v5280_v23 = vsel %vm579_vm1, %v254_v63, %v546_v10  ;;  %v5338_v63 = vsel %vm579_vm1, %v242_v54, %v522_v36  ;;  %v5348_v10 = vsel %vm579_vm1, %v243_v4, %v524_v12  ;;  %v5365_v36 = vsel %vm579_vm1, %v244_v17, %v526_v6  ;;  %v369_v12 = vld [vmem:[%s7205_s3 + $0x80] sm:$0xff]  ;;  %v371_v54 = vld [vmem:[%s7205_s3 + $0x90] sm:$0xff] }
  0xc4   : > { %3850 = vmatmul.mubr.msk.f32.gmra.mrb[30].mxu0 %vm612_vm2, %v5268_v5  ;;  %3866 = vmatmul.mubr.msk.f32.gmra.mrb[14].mxu1 %vm612_vm2, %v5280_v23  ;;  %v4440_v58 = vpack.c.bf16 %v371_v54, %v369_v12  ;;  %v423_v4 = vld [vmem:[%s7205_s3 + $0x230] sm:$0xff]  ;;  %v425_v17 = vld [vmem:[%s7205_s3 + $0x240] sm:$0xff] }
  0xc5   : > { %888 = vmatprep.mubr.f32.mxu0 %v7207_v11  ;;  %1049 = vmatprep.mubr.f32.mxu1 %v7207_v11  ;;  %v381_v12 = vld [vmem:[%s7205_s3 + $0xe0] sm:$0xff] }
  0xc6   : > { %v528_v16 = vpop.permute.xlu0 %527 }
  0xc7   : > { %v5375_v42 = vsel %vm579_vm1, %v245_v34, %v528_v16  ;;  %v427_v16 = vld [vmem:[%s7205_s3 + $0x250] sm:$0xff]  ;;  %v429_v34 = vld [vmem:[%s7205_s3 + $0x260] sm:$0xff] }
  0xc8   : > { %3851 = vmatmul.mubr.msk.f32.gmra.mrb[32].mxu0 %vm612_vm2, %v5293_v28  ;;  %3869 = vmatmul.mubr.msk.f32.vlgmr.msra.gmra.mrb[16].mxu1 %vm612_vm2, %v4982_v26 }
  0xc9   : > { %894 = vmatprep.mubr.f32.mxu0 %v7207_v11  ;;  %1055 = vmatprep.mubr.f32.mxu1 %v7207_v11 }
  0xca   : > { %4429 = vmatpush1.bf16.msra.mxu1 %v4428_v37  ;;  %v4437_v37 = vpack.c.bf16 %v367_v29, %v365_v2  ;;  %v530_v49 = vpop.permute.xlu0 %529  ;;  %v373_v2 = vld [vmem:[%s7205_s3 + $0xa0] sm:$0xff]  ;;  %v375_v29 = vld [vmem:[%s7205_s3 + $0xb0] sm:$0xff] }
  0xcb   : > { %4430 = vmatprep.subr.bf16.mxu1 %v7209_v19 }
  0xcc   : > { %3852 = vmatmul.mubr.msk.f32.gmra.mrb[34].mxu0 %vm612_vm2, %v5310_v45  ;;  %3870 = vmatmul.mubr.msk.f32.gmra.mrb[18].mxu1 %vm612_vm2, %v5002_v40 }
  0xcd   : > { %900 = vmatprep.mubr.f32.mxu0 %v7207_v11  ;;  %1061 = vmatprep.mubr.f32.mxu1 %v7207_v11 }
  0xce   : > { %4432 = vmatpush1.bf16.msra.mxu1 %v4431_v50  ;;  %v246_v50 = vld [vmem:[%s4960_s30 + $0xb8] sm:$0xff] }
  0xcf   : > { %4433 = vmatprep.subr.bf16.mxu1 %v7209_v19  ;;  %v5392_v56 = vsel %vm579_vm1, %v246_v50, %v530_v49 }
  0xd0   : > { %3853 = vmatmul.mubr.msk.f32.gmra.mrb[36].mxu0 %vm612_vm2, %v5321_v51  ;;  %3871 = vmatmul.mubr.msk.f32.gmra.mrb[20].mxu1 %vm612_vm2, %v5013_v43 }
  0xd1   : > { %906 = vmatprep.mubr.f32.mxu0 %v7207_v11  ;;  %1067 = vmatprep.mubr.f32.mxu1 %v7207_v11 }
  0xd2   : > { %4435 = vmatpush1.bf16.msra.mxu1 %v4434_v0  ;;  %v421_v0 = vld [vmem:[%s7205_s3 + $0x220] sm:$0xff] }
  0xd3   : > { %4436 = vmatprep.subr.bf16.mxu1 %v7209_v19  ;;  %v4479_v6 = vpack.c.bf16 %v423_v4, %v421_v0 }
  0xd4   : > { %3854 = vmatmul.mubr.msk.f32.gmra.mrb[38].mxu0 %vm612_vm2, %v5338_v63  ;;  %3872 = vmatmul.mubr.msk.f32.gmra.mrb[22].mxu1 %vm612_vm2, %v5032_v52 }
  0xd5   : > { %912 = vmatprep.mubr.f32.mxu0 %v7207_v11  ;;  %1073 = vmatprep.mubr.f32.mxu1 %v7207_v11 }
  0xd6   : > { %4438 = vmatpush1.bf16.msra.mxu1 %v4437_v37  ;;  %v4443_v37 = vpack.c.bf16 %v375_v29, %v373_v2 }
  0xd7   : > { %4439 = vmatprep.subr.bf16.mxu1 %v7209_v19 }
  0xd8   : > { %3855 = vmatmul.mubr.msk.f32.gmra.mrb[40].mxu0 %vm612_vm2, %v5348_v10  ;;  %3873 = vmatmul.mubr.msk.f32.gmra.mrb[24].mxu1 %vm612_vm2, %v5045_v60 }
  0xd9   : > { %918 = vmatprep.mubr.f32.mxu0 %v7207_v11  ;;  %1079 = vmatprep.mubr.f32.mxu1 %v7207_v11 }
  0xda   : > { %4441 = vmatpush1.bf16.msra.mxu1 %v4440_v58  ;;  %v433_v58 = vld [vmem:[%s7205_s3 + $0x280] sm:$0xff] }
  0xdb   : > { %4442 = vmatprep.subr.bf16.mxu1 %v7209_v19 }
  0xdc   : > { %3856 = vmatmul.mubr.msk.f32.gmra.mrb[42].mxu0 %vm612_vm2, %v5365_v36  ;;  %3874 = vmatmul.mubr.msk.f32.gmra.mrb[26].mxu1 %vm612_vm2, %v5055_v1 }
  0xdd   : > { %924 = vmatprep.mubr.f32.mxu0 %v7207_v11  ;;  %1085 = vmatprep.mubr.f32.mxu1 %v7207_v11 }
  0xde   : > { %4444 = vmatpush1.bf16.msra.mxu1 %v4443_v37  ;;  %v397_v37 = vld [vmem:[%s7205_s3 + $0x160] sm:$0xff] }
  0xdf   : > { %4445 = vmatprep.subr.bf16.mxu1 %v7209_v19 }
  0xe0   : > { %3857 = vmatmul.mubr.msk.f32.gmra.mrb[44].mxu0 %vm612_vm2, %v5375_v42  ;;  %3875 = vmatmul.mubr.msk.f32.gmra.mrb[28].mxu1 %vm612_vm2, %v5068_v9 }
  0xe1   : > { %930 = vmatprep.mubr.f32.mxu0 %v7207_v11  ;;  %1091 = vmatprep.mubr.f32.mxu1 %v7207_v11 }
  0xe4   : > { %3858 = vmatmul.mubr.msk.f32.gmra.mrb[46].mxu0 %vm612_vm2, %v5392_v56  ;;  %3876 = vmatmul.mubr.msk.f32.gmra.mrb[30].mxu1 %vm612_vm2, %v5078_v13 }
  0xe5   : > { %1097 = vmatprep.mubr.f32.mxu1 %v7207_v11  ;;  %1306 = vmatprep.mubr.f32.mxu0 %v7207_v11 }
  0xe8   : > { %3877 = vmatmul.mubr.msk.f32.gmra.mrb[32].mxu1 %vm612_vm2, %v5100_v27  ;;  %3903 = vmatmul.mubr.msk.f32.vlgmr.msra.gmra.mrb[48].mxu0 %vm612_vm2, %v4982_v26  ;;  %v4483_v26 = vpack.c.bf16 %v427_v16, %v425_v17  ;;  %v437_v16 = vld [vmem:[%s7205_s3 + $0x2a0] sm:$0xff] }
  0xe9   : > { %1103 = vmatprep.mubr.f32.mxu1 %v7207_v11  ;;  %1312 = vmatprep.mubr.f32.mxu0 %v7207_v11 }
  0xea   : > { %4478 = vmatpush3.bf16.msra.mxu0 %v5277_v20  ;;  %v377_v20 = vld [vmem:[%s7205_s3 + $0xc0] sm:$0xff] }
  0xeb   : > { %4480 = vmatprep.subr.bf16.mxu0 %v4479_v6 }
  0xec   : > { %3878 = vmatmul.mubr.msk.f32.gmra.mrb[34].mxu1 %vm612_vm2, %v5127_v44  ;;  %3904 = vmatmul.mubr.msk.f32.gmra.mrb[50].mxu0 %vm612_vm2, %v5002_v40  ;;  %v379_v40 = vld [vmem:[%s7205_s3 + $0xd0] sm:$0xff] }
  0xed   : > { %1109 = vmatprep.mubr.f32.mxu1 %v7207_v11  ;;  %1318 = vmatprep.mubr.f32.mxu0 %v7207_v11  ;;  %v4446_v49 = vpack.c.bf16 %v379_v40, %v377_v20  ;;  %v441_v20 = vld [vmem:[%s7205_s3 + $0x2c0] sm:$0xff] }
  0xee   : > { %4482 = vmatpush3.bf16.msra.mxu0 %v4479_v6  ;;  %v389_v6 = vld [vmem:[%s7205_s3 + $0x120] sm:$0xff] }
  0xef   : > { %4484 = vmatprep.subr.bf16.mxu0 %v4483_v26  ;;  %4447 = vmatpush1.bf16.msra.mxu1 %v4446_v49  ;;  %v407_v49 = vld [vmem:[%s7205_s3 + $0x1b0] sm:$0xff] }
  0xf0   : > { %3879 = vmatmul.mubr.msk.f32.gmra.mrb[36].mxu1 %vm612_vm2, %v5156_v57  ;;  %3905 = vmatmul.mubr.msk.f32.gmra.mrb[52].mxu0 %vm612_vm2, %v5013_v43  ;;  %v431_v43 = vld [vmem:[%s7205_s3 + $0x270] sm:$0xff] }
  0xf1   : > { %1115 = vmatprep.mubr.f32.mxu1 %v7207_v11  ;;  %1324 = vmatprep.mubr.f32.mxu0 %v7207_v11  ;;  %v4487_v50 = vpack.c.bf16 %v431_v43, %v429_v34 }
  0xf2   : > { %4486 = vmatpush3.bf16.msra.mxu0 %v4483_v26  ;;  %4448 = vmatprep.subr.bf16.mxu1 %v7209_v19 }
  0xf3   : > { %4488 = vmatprep.subr.bf16.mxu0 %v4487_v50 }
  0xf4   : > { %3880 = vmatmul.mubr.msk.f32.gmra.mrb[38].mxu1 %vm612_vm2, %v5186_v18  ;;  %3906 = vmatmul.mubr.msk.f32.gmra.mrb[54].mxu0 %vm612_vm2, %v5032_v52  ;;  %v383_v52 = vld [vmem:[%s7205_s3 + $0xf0] sm:$0xff] }
  0xf5   : > { %1121 = vmatprep.mubr.f32.mxu1 %v7207_v11  ;;  %1330 = vmatprep.mubr.f32.mxu0 %v7207_v11  ;;  %v4449_v54 = vpack.c.bf16 %v383_v52, %v381_v12 }
  0xf6   : > { %4490 = vmatpush3.bf16.msra.mxu0 %v4487_v50  ;;  %v445_v50 = vld [vmem:[%s7205_s3 + $0x2e0] sm:$0xff] }
  0xf7   : > { %4450 = vmatpush1.bf16.msra.mxu1 %v4449_v54  ;;  %v415_v54 = vld [vmem:[%s7205_s3 + $0x1f0] sm:$0xff] }
  0xf8   : > { %3881 = vmatmul.mubr.msk.f32.gmra.mrb[40].mxu1 %vm612_vm2, %v5209_v35  ;;  %3907 = vmatmul.mubr.msk.f32.gmra.mrb[56].mxu0 %vm612_vm2, %v5045_v60  ;;  %v385_v60 = vld [vmem:[%s7205_s3 + $0x100] sm:$0xff] }
  0xf9   : > { %1127 = vmatprep.mubr.f32.mxu1 %v7207_v11  ;;  %1336 = vmatprep.mubr.f32.mxu0 %v7207_v11 }
  0xfa   : > { %4451 = vmatprep.subr.bf16.mxu1 %v7209_v19 }
  0xfc   : > { %3882 = vmatmul.mubr.msk.f32.gmra.mrb[42].mxu1 %vm612_vm2, %v5230_v46  ;;  %3908 = vmatmul.mubr.msk.f32.gmra.mrb[58].mxu0 %vm612_vm2, %v5055_v1  ;;  %v387_v1 = vld [vmem:[%s7205_s3 + $0x110] sm:$0xff] }
  0xfd   : > { %1133 = vmatprep.mubr.f32.mxu1 %v7207_v11  ;;  %1342 = vmatprep.mubr.f32.mxu0 %v7207_v11  ;;  %v4452_v0 = vpack.c.bf16 %v387_v1, %v385_v60 }
  0xff   : > { %4453 = vmatpush1.bf16.msra.mxu1 %v4452_v0 }
 0x100   : > { %3883 = vmatmul.mubr.msk.f32.gmra.mrb[44].mxu1 %vm612_vm2, %v5249_v55  ;;  %3909 = vmatmul.mubr.msk.f32.gmra.mrb[60].mxu0 %vm612_vm2, %v5068_v9  ;;  %v435_v9 = vld [vmem:[%s7205_s3 + $0x290] sm:$0xff] }
 0x101   : > { %1139 = vmatprep.mubr.f32.mxu1 %v7207_v11  ;;  %1348 = vmatprep.mubr.f32.mxu0 %v7207_v11  ;;  %v4491_v4 = vpack.c.bf16 %v435_v9, %v433_v58 }
 0x102   : > { %4454 = vmatprep.subr.bf16.mxu1 %v7209_v19 }
 0x103   : > { %4492 = vmatprep.subr.bf16.mxu0 %v4491_v4 }
 0x104   : > { %3884 = vmatmul.mubr.msk.f32.gmra.mrb[46].mxu1 %vm612_vm2, %v5268_v5  ;;  %3910 = vmatmul.mubr.msk.f32.gmra.mrb[62].mxu0 %vm612_vm2, %v5078_v13  ;;  %v391_v13 = vld [vmem:[%s7205_s3 + $0x130] sm:$0xff] }
 0x105   : > { %1145 = vmatprep.mubr.f32.mxu1 %v7207_v11  ;;  %1354 = vmatprep.mubr.f32.mxu0 %v7207_v11  ;;  %v4455_v17 = vpack.c.bf16 %v391_v13, %v389_v6 }
 0x106   : > { %4494 = vmatpush3.bf16.msra.mxu0 %v4491_v4 }
 0x107   : > { %4456 = vmatpush1.bf16.msra.mxu1 %v4455_v17 }
 0x108   : > { %3885 = vmatmul.mubr.msk.f32.gmra.mrb[48].mxu1 %vm612_vm2, %v5293_v28  ;;  %3911 = vmatmul.mubr.msk.f32.gmra.mrb[64].mxu0 %vm612_vm2, %v5100_v27  ;;  %v393_v27 = vld [vmem:[%s7205_s3 + $0x140] sm:$0xff] }
 0x109   : > { %1151 = vmatprep.mubr.f32.mxu1 %v7207_v11  ;;  %1360 = vmatprep.mubr.f32.mxu0 %v7207_v11 }
 0x10a   : > { %4457 = vmatprep.subr.bf16.mxu1 %v7209_v19 }
 0x10c   : > { %3886 = vmatmul.mubr.msk.f32.gmra.mrb[50].mxu1 %vm612_vm2, %v5310_v45  ;;  %3912 = vmatmul.mubr.msk.f32.gmra.mrb[66].mxu0 %vm612_vm2, %v5127_v44  ;;  %v395_v44 = vld [vmem:[%s7205_s3 + $0x150] sm:$0xff] }
 0x10d   : > { %1157 = vmatprep.mubr.f32.mxu1 %v7207_v11  ;;  %1366 = vmatprep.mubr.f32.mxu0 %v7207_v11  ;;  %v4458_v2 = vpack.c.bf16 %v395_v44, %v393_v27 }
 0x10f   : > { %4459 = vmatpush1.bf16.msra.mxu1 %v4458_v2 }
 0x110   : > { %3887 = vmatmul.mubr.msk.f32.gmra.mrb[52].mxu1 %vm612_vm2, %v5321_v51  ;;  %3913 = vmatmul.mubr.msk.f32.gmra.mrb[68].mxu0 %vm612_vm2, %v5156_v57  ;;  %v439_v57 = vld [vmem:[%s7205_s3 + $0x2b0] sm:$0xff] }
 0x111   : > { %1163 = vmatprep.mubr.f32.mxu1 %v7207_v11  ;;  %1372 = vmatprep.mubr.f32.mxu0 %v7207_v11  ;;  %v4495_v29 = vpack.c.bf16 %v439_v57, %v437_v16 }
 0x112   : > { %4460 = vmatprep.subr.bf16.mxu1 %v7209_v19 }
 0x113   : > { %4496 = vmatprep.subr.bf16.mxu0 %v4495_v29 }
 0x114   : > { %3888 = vmatmul.mubr.msk.f32.gmra.mrb[54].mxu1 %vm612_vm2, %v5338_v63  ;;  %3914 = vmatmul.mubr.msk.f32.gmra.mrb[70].mxu0 %vm612_vm2, %v5186_v18  ;;  %v399_v18 = vld [vmem:[%s7205_s3 + $0x170] sm:$0xff] }
 0x115   : > { %1169 = vmatprep.mubr.f32.mxu1 %v7207_v11  ;;  %1378 = vmatprep.mubr.f32.mxu0 %v7207_v11  ;;  %v4461_v26 = vpack.c.bf16 %v399_v18, %v397_v37 }
 0x116   : > { %4498 = vmatpush3.bf16.msra.mxu0 %v4495_v29 }
 0x117   : > { %4462 = vmatpush1.bf16.msra.mxu1 %v4461_v26 }
 0x118   : > { %3889 = vmatmul.mubr.msk.f32.gmra.mrb[56].mxu1 %vm612_vm2, %v5348_v10  ;;  %3915 = vmatmul.mubr.msk.f32.gmra.mrb[72].mxu0 %vm612_vm2, %v5209_v35  ;;  %v401_v35 = vld [vmem:[%s7205_s3 + $0x180] sm:$0xff] }
 0x119   : > { %1175 = vmatprep.mubr.f32.mxu1 %v7207_v11  ;;  %1384 = vmatprep.mubr.f32.mxu0 %v7207_v11 }
 0x11a   : > { %4463 = vmatprep.subr.bf16.mxu1 %v7209_v19 }
 0x11c   : > { %3890 = vmatmul.mubr.msk.f32.gmra.mrb[58].mxu1 %vm612_vm2, %v5365_v36  ;;  %3916 = vmatmul.mubr.msk.f32.gmra.mrb[74].mxu0 %vm612_vm2, %v5230_v46  ;;  %v403_v46 = vld [vmem:[%s7205_s3 + $0x190] sm:$0xff] }
 0x11d   : > { %1181 = vmatprep.mubr.f32.mxu1 %v7207_v11  ;;  %1390 = vmatprep.mubr.f32.mxu0 %v7207_v11  ;;  %v4464_v40 = vpack.c.bf16 %v403_v46, %v401_v35 }
 0x11f   : > { %4465 = vmatpush1.bf16.msra.mxu1 %v4464_v40 }
 0x120   : > { %3891 = vmatmul.mubr.msk.f32.gmra.mrb[60].mxu1 %vm612_vm2, %v5375_v42  ;;  %3917 = vmatmul.mubr.msk.f32.gmra.mrb[76].mxu0 %vm612_vm2, %v5249_v55  ;;  %v443_v55 = vld [vmem:[%s7205_s3 + $0x2d0] sm:$0xff] }
 0x121   : > { %1187 = vmatprep.mubr.f32.mxu1 %v7207_v11  ;;  %1396 = vmatprep.mubr.f32.mxu0 %v7207_v11  ;;  %v4499_v34 = vpack.c.bf16 %v443_v55, %v441_v20 }
 0x122   : > { %4466 = vmatprep.subr.bf16.mxu1 %v7209_v19 }
 0x123   : > { %4500 = vmatprep.subr.bf16.mxu0 %v4499_v34 }
 0x124   : > { %3892 = vmatmul.mubr.msk.f32.gmra.mrb[62].mxu1 %vm612_vm2, %v5392_v56  ;;  %3918 = vmatmul.mubr.msk.f32.gmra.mrb[78].mxu0 %vm612_vm2, %v5268_v5  ;;  %v405_v5 = vld [vmem:[%s7205_s3 + $0x1a0] sm:$0xff] }
 0x125   : > { %1193 = vmatprep.mubr.f32.mxu1 %v7207_v11  ;;  %1402 = vmatprep.mubr.f32.mxu0 %v7207_v11  ;;  %v4467_v43 = vpack.c.bf16 %v407_v49, %v405_v5 }
 0x126   : > { %4502 = vmatpush3.bf16.msra.mxu0 %v4499_v34 }
 0x127   : > { %4468 = vmatpush1.bf16.msra.mxu1 %v4467_v43 }
 0x128   : > { %3893 = vmatmul.mubr.msk.f32.gmra.mrb[64].mxu1 %vm612_vm2, %v5107_v31  ;;  %3919 = vmatmul.mubr.msk.f32.gmra.mrb[80].mxu0 %vm612_vm2, %v5293_v28  ;;  %v409_v28 = vld [vmem:[%s7205_s3 + $0x1c0] sm:$0xff] }
 0x129   : > { %1199 = vmatprep.mubr.f32.mxu1 %v7207_v11  ;;  %1408 = vmatprep.mubr.f32.mxu0 %v7207_v11 }
 0x12a   : > { %4469 = vmatprep.subr.bf16.mxu1 %v7209_v19 }
 0x12c   : > { %3894 = vmatmul.mubr.msk.f32.gmra.mrb[66].mxu1 %vm612_vm2, %v5136_v48  ;;  %3920 = vmatmul.mubr.msk.f32.gmra.mrb[82].mxu0 %vm612_vm2, %v5310_v45  ;;  %v411_v45 = vld [vmem:[%s7205_s3 + $0x1d0] sm:$0xff] }
 0x12d   : > { %1205 = vmatprep.mubr.f32.mxu1 %v7207_v11  ;;  %1414 = vmatprep.mubr.f32.mxu0 %v7207_v11  ;;  %v4470_v12 = vpack.c.bf16 %v411_v45, %v409_v28 }
 0x12f   : > { %4471 = vmatpush1.bf16.msra.mxu1 %v4470_v12 }
 0x130   : > { %3895 = vmatmul.mubr.msk.f32.gmra.mrb[68].mxu1 %vm612_vm2, %v5165_v62  ;;  %3921 = vmatmul.mubr.msk.f32.gmra.mrb[84].mxu0 %vm612_vm2, %v5321_v51  ;;  %v447_v51 = vld [vmem:[%s7205_s3 + $0x2f0] sm:$0xff] }
 0x131   : > { %1211 = vmatprep.mubr.f32.mxu1 %v7207_v11  ;;  %1420 = vmatprep.mubr.f32.mxu0 %v7207_v11  ;;  %v4503_v52 = vpack.c.bf16 %v447_v51, %v445_v50 }
 0x132   : > { %4472 = vmatprep.subr.bf16.mxu1 %v7209_v19 }
 0x133   : > { %4504 = vmatprep.subr.bf16.mxu0 %v4503_v52 }
 0x134   : > { %3896 = vmatmul.mubr.msk.f32.gmra.mrb[70].mxu1 %vm612_vm2, %v5195_v22  ;;  %3922 = vmatmul.mubr.msk.f32.gmra.mrb[86].mxu0 %vm612_vm2, %v5338_v63  ;;  %v413_v63 = vld [vmem:[%s7205_s3 + $0x1e0] sm:$0xff] }
 0x135   : > { %1217 = vmatprep.mubr.f32.mxu1 %v7207_v11  ;;  %1426 = vmatprep.mubr.f32.mxu0 %v7207_v11  ;;  %v4473_v60 = vpack.c.bf16 %v415_v54, %v413_v63 }
 0x136   : > { %4506 = vmatpush3.bf16.msra.mxu0 %v4503_v52 }
 0x137   : > { %4528 = vmatprep.subr.bf16.mxu0 %v5104_v30  ;;  %4474 = vmatpush1.bf16.msra.mxu1 %v4473_v60 }
 0x138   : > { %3897 = vmatmul.mubr.msk.f32.gmra.mrb[72].mxu1 %vm612_vm2, %v5218_v41  ;;  %3923 = vmatmul.mubr.msk.f32.gmra.mrb[88].mxu0 %vm612_vm2, %v5348_v10 }
 0x139   : > { %1223 = vmatprep.mubr.f32.mxu1 %v7207_v11  ;;  %1432 = vmatprep.mubr.f32.mxu0 %v7207_v11 }
 0x13a   : > { %4508 = vmatprep.subr.bf16.mxu1 %v4769_v3 }
 0x13c   : > { %3898 = vmatmul.mubr.msk.f32.gmra.mrb[74].mxu1 %vm612_vm2, %v5237_v53  ;;  %3924 = vmatmul.mubr.msk.f32.gmra.mrb[90].mxu0 %vm612_vm2, %v5365_v36 }
 0x13d   : > { %1229 = vmatprep.mubr.f32.mxu1 %v7207_v11  ;;  %1438 = vmatprep.mubr.f32.mxu0 %v7207_v11 }
 0x140   : > { %3899 = vmatmul.mubr.msk.f32.gmra.mrb[76].mxu1 %vm612_vm2, %v5256_v59  ;;  %3925 = vmatmul.mubr.msk.f32.gmra.mrb[92].mxu0 %vm612_vm2, %v5375_v42 }
 0x141   : > { %1235 = vmatprep.mubr.f32.mxu1 %v7207_v11  ;;  %1444 = vmatprep.mubr.f32.mxu0 %v7207_v11 }
 0x144   : > { %3900 = vmatmul.mubr.msk.f32.gmra.mrb[78].mxu1 %vm612_vm2, %v5280_v23  ;;  %3926 = vmatmul.mubr.msk.f32.gmra.mrb[94].mxu0 %vm612_vm2, %v5392_v56 }
 0x145   : > { %1450 = vmatprep.mubr.f32.mxu0 %v7207_v11 }
 0x148   : > { %3927 = vmatmul.mubr.msk.f32.gmra.mrb[96].mxu0 %vm612_vm2, %v5107_v31 }
 0x149   : > { %1456 = vmatprep.mubr.f32.mxu0 %v7207_v11 }
 0x14c   : > { %3928 = vmatmul.mubr.msk.f32.gmra.mrb[98].mxu0 %vm612_vm2, %v5136_v48 }
 0x14d   : > { %1462 = vmatprep.mubr.f32.mxu0 %v7207_v11 }
 0x150   : > { %3929 = vmatmul.mubr.msk.f32.gmra.mrb[100].mxu0 %vm612_vm2, %v5165_v62 }
 0x151   : > { %1468 = vmatprep.mubr.f32.mxu0 %v7207_v11 }
 0x154   : > { %3930 = vmatmul.mubr.msk.f32.gmra.mrb[102].mxu0 %vm612_vm2, %v5195_v22 }
 0x155   : > { %1474 = vmatprep.mubr.f32.mxu0 %v7207_v11 }
 0x158   : > { %3931 = vmatmul.mubr.msk.f32.gmra.mrb[104].mxu0 %vm612_vm2, %v5218_v41 }
 0x159   : > { %1480 = vmatprep.mubr.f32.mxu0 %v7207_v11 }
 0x15b   : > { %v794_v3 = vpop.f32.mrb[0].mxu0 }
 0x15c   : > { %v5682_v31 = vpop.f32.mrb[1].mxu0  ;;  %3932 = vmatmul.mubr.msk.f32.gmra.mrb[106].mxu0 %vm612_vm2, %v5237_v53 }
 0x15d   : > { %1486 = vmatprep.mubr.f32.mxu0 %v7207_v11 }
 0x15f   : > { %v800_v48 = vpop.f32.mrb[2].mxu0 }
 0x160   : > { %v5687_v62 = vpop.f32.mrb[3].mxu0  ;;  %3933 = vmatmul.mubr.msk.f32.gmra.mrb[108].mxu0 %vm612_vm2, %v5256_v59 }
 0x161   : > { %1492 = vmatprep.mubr.f32.mxu0 %v7207_v11 }
 0x163   : > { %v806_v22 = vpop.f32.mrb[4].mxu0 }
 0x164   : > { %v5692_v41 = vpop.f32.mrb[5].mxu0  ;;  %3934 = vmatmul.mubr.msk.f32.gmra.mrb[110].mxu0 %vm612_vm2, %v5280_v23 }
 0x167   : > { %v812_v10 = vpop.f32.mrb[6].mxu0 }
 0x168   : > { %v5696_v36 = vpop.f32.mrb[7].mxu0 }
 0x16b   : > { %v5698_v53 = vpop.f32.mrb[8].mxu0 }
 0x16c   : > { %v5700_v42 = vpop.f32.mrb[9].mxu0 }
 0x16f   : > { %v5702_v56 = vpop.f32.mrb[10].mxu0 }
 0x170   : > { %v5704_v1 = vpop.f32.mrb[11].mxu0 }
 0x173   : > { %v5706_v59 = vpop.f32.mrb[12].mxu0 }
 0x174   : > { %v5708_v58 = vpop.f32.mrb[13].mxu0 }
 0x177   : > { %v5710_v0 = vpop.f32.mrb[14].mxu0 }
 0x178   : > { %v5712_v9 = vpop.f32.mrb[15].mxu0 }
 0x17b   : > { %v5714_v23 = vpop.f32.mrb[16].mxu0  ;;  %v5716_v4 = vpop.f32.mrb[0].mxu1 }
 0x17c   : > { %7309 = vst [vmem:[#allocation2_spill] sm:$0xff] %v5716_v4  ;;  %v5718_v6 = vpop.f32.mrb[17].mxu0  ;;  %v5720_v13 = vpop.f32.mrb[1].mxu1 }
 0x17d   : > { %7310 = vst [vmem:[#allocation3_spill] sm:$0xff] %v5720_v13 }
 0x17f   : > { %v5722_v17 = vpop.f32.mrb[18].mxu0  ;;  %v5724_v27 = vpop.f32.mrb[2].mxu1 }
 0x180   : > { %7311 = vst [vmem:[#allocation4_spill] sm:$0xff] %v5724_v27  ;;  %v5726_v44 = vpop.f32.mrb[19].mxu0  ;;  %v5728_v16 = vpop.f32.mrb[3].mxu1 }
 0x181   : > { %7312 = vst [vmem:[#allocation5_spill] sm:$0xff] %v5728_v16 }
 0x183   : > { %v5730_v2 = vpop.f32.mrb[20].mxu0  ;;  %v5732_v57 = vpop.f32.mrb[4].mxu1 }
 0x184   : > { %7313 = vst [vmem:[#allocation6_spill] sm:$0xff] %v5732_v57  ;;  %v5734_v29 = vpop.f32.mrb[21].mxu0  ;;  %v5736_v37 = vpop.f32.mrb[5].mxu1 }
 0x185   : > { %7314 = vst [vmem:[#allocation7_spill] sm:$0xff] %v5736_v37 }
 0x187   : > { %v5738_v18 = vpop.f32.mrb[22].mxu0  ;;  %v5740_v26 = vpop.f32.mrb[6].mxu1 }
 0x188   : > { %7315 = vst [vmem:[#allocation8_spill] sm:$0xff] %v5740_v26  ;;  %v5742_v35 = vpop.f32.mrb[23].mxu0  ;;  %v5744_v46 = vpop.f32.mrb[7].mxu1 }
 0x189   : > { %7316 = vst [vmem:[#allocation9_spill] sm:$0xff] %v5744_v46 }
 0x18b   : > { %v5746_v20 = vpop.f32.mrb[24].mxu0  ;;  %v5748_v40 = vpop.f32.mrb[8].mxu1 }
 0x18c   : > { %7317 = vst [vmem:[#allocation10_spill] sm:$0xff] %v5748_v40  ;;  %v5750_v55 = vpop.f32.mrb[25].mxu0  ;;  %v5752_v34 = vpop.f32.mrb[9].mxu1 }
 0x18d   : > { %7318 = vst [vmem:[#allocation11_spill] sm:$0xff] %v5750_v55  ;;  %7319 = vst [vmem:[#allocation12_spill] sm:$0xff] %v5752_v34 }
 0x18f   : > { %v5754_v5 = vpop.f32.mrb[26].mxu0  ;;  %v5756_v49 = vpop.f32.mrb[10].mxu1 }
 0x190   : > { %7320 = vst [vmem:[#allocation13_spill] sm:$0xff] %v5756_v49  ;;  %v5758_v43 = vpop.f32.mrb[27].mxu0  ;;  %v5760_v28 = vpop.f32.mrb[11].mxu1 }
 0x191   : > { %7321 = vst [vmem:[#allocation14_spill] sm:$0xff] %v5758_v43  ;;  %7322 = vst [vmem:[#allocation15_spill] sm:$0xff] %v5760_v28 }
 0x193   : > { %v5762_v45 = vpop.f32.mrb[28].mxu0  ;;  %v5764_v50 = vpop.f32.mrb[12].mxu1 }
 0x194   : > { %7323 = vst [vmem:[#allocation16_spill] sm:$0xff] %v5764_v50  ;;  %v5766_v12 = vpop.f32.mrb[29].mxu0  ;;  %v5768_v51 = vpop.f32.mrb[13].mxu1 }
 0x195   : > { %7324 = vst [vmem:[#allocation17_spill] sm:$0xff] %v5766_v12  ;;  %7325 = vst [vmem:[#allocation18_spill] sm:$0xff] %v5768_v51 }
 0x197   : > { %v5770_v52 = vpop.f32.mrb[30].mxu0  ;;  %v5772_v63 = vpop.f32.mrb[14].mxu1 }
 0x198   : > { %7326 = vst [vmem:[#allocation19_spill] sm:$0xff] %v5772_v63  ;;  %v5774_v54 = vpop.f32.mrb[31].mxu0  ;;  %v5776_v60 = vpop.f32.mrb[15].mxu1 }
 0x199   : > { %7327 = vst [vmem:[#allocation20_spill] sm:$0xff] %v5774_v54  ;;  %7328 = vst [vmem:[#allocation21_spill] sm:$0xff] %v5776_v60 }
 0x19b   : > { %v5778_v11 = vpop.f32.mrb[32].mxu0  ;;  %v1051_v19 = vpop.f32.mrb[16].mxu1 }
 0x19c   : > { %v5780_v28 = vpop.f32.mrb[33].mxu0  ;;  %v5782_v34 = vpop.f32.mrb[17].mxu1 }
 0x19d   : > { %7329 = vst [vmem:[#allocation22_spill] sm:$0xff] %v5780_v28  ;;  %7330 = vst [vmem:[#allocation23_spill] sm:$0xff] %v5782_v34  ;;  %v1499_v46 = vmul.f32 %v5782_v34, %v794_v3 }
 0x19f   : > { %v5785_v37 = vpop.f32.mrb[34].mxu0  ;;  %v1057_v51 = vpop.f32.mrb[18].mxu1 }
 0x1a0   : > { %v5787_v16 = vpop.f32.mrb[35].mxu0  ;;  %v5789_v13 = vpop.f32.mrb[19].mxu1 }
 0x1a1   : > { %7331 = vst [vmem:[#allocation24_spill] sm:$0xff] %v5787_v16  ;;  %7332 = vst [vmem:[#allocation25_spill] sm:$0xff] %v5789_v13  ;;  %v1502_v63 = vmul.f32 %v5789_v13, %v800_v48 }
 0x1a3   : > { %v5792_v50 = vpop.f32.mrb[36].mxu0  ;;  %v1063_v60 = vpop.f32.mrb[20].mxu1 }
 0x1a4   : > { %v5794_v49 = vpop.f32.mrb[37].mxu0  ;;  %v5796_v40 = vpop.f32.mrb[21].mxu1 }
 0x1a5   : > { %7333 = vst [vmem:[#allocation26_spill] sm:$0xff] %v5794_v49  ;;  %7334 = vst [vmem:[#allocation27_spill] sm:$0xff] %v5796_v40  ;;  %v1505_v26 = vmul.f32 %v5796_v40, %v806_v22 }
 0x1a7   : > { %v5799_v57 = vpop.f32.mrb[38].mxu0  ;;  %v5801_v3 = vpop.f32.mrb[22].mxu1 }
 0x1a8   : > { %v5803_v34 = vpop.f32.mrb[39].mxu0  ;;  %v5805_v27 = vpop.f32.mrb[23].mxu1 }
 0x1a9   : > { %7335 = vst [vmem:[#allocation28_spill] sm:$0xff] %v5803_v34  ;;  %7336 = vst [vmem:[#allocation29_spill] sm:$0xff] %v5805_v27  ;;  %v5808_v16 = vmul.f32 %v5805_v27, %v812_v10 }
 0x1ab   : > { %v5810_v48 = vpop.f32.mrb[40].mxu0  ;;  %v5812_v13 = vpop.f32.mrb[24].mxu1 }
 0x1ac   : > { %7337 = vst [vmem:[#allocation30_spill] sm:$0xff] %v5810_v48  ;;  %v5814_v49 = vpop.f32.mrb[41].mxu0  ;;  %v5816_v4 = vpop.f32.mrb[25].mxu1 }
 0x1ad   : > { %7338 = vst [vmem:[#allocation31_spill] sm:$0xff] %v5814_v49  ;;  %7339 = vst [vmem:[#allocation32_spill] sm:$0xff] %v5816_v4  ;;  %v5820_v22 = vmul.f32 %v5816_v4, %v5698_v53 }
 0x1af   : > { %v5822_v40 = vpop.f32.mrb[42].mxu0  ;;  %v5824_v34 = vpop.f32.mrb[26].mxu1 }
 0x1b0   : > { %7340 = vst [vmem:[#allocation33_spill] sm:$0xff] %v5822_v40  ;;  %v5826_v28 = vpop.f32.mrb[43].mxu0  ;;  %v5828_v10 = vpop.f32.mrb[27].mxu1 }
 0x1b1   : > { %7341 = vst [vmem:[#allocation34_spill] sm:$0xff] %v5826_v28  ;;  %7342 = vst [vmem:[#allocation35_spill] sm:$0xff] %v5828_v10  ;;  %v5832_v27 = vmul.f32 %v5828_v10, %v5702_v56 }
 0x1b3   : > { %v5834_v54 = vpop.f32.mrb[44].mxu0  ;;  %v5836_v49 = vpop.f32.mrb[28].mxu1 }
 0x1b4   : > { %7343 = vst [vmem:[#allocation36_spill] sm:$0xff] %v5834_v54  ;;  %v5838_v12 = vpop.f32.mrb[45].mxu0  ;;  %v5840_v53 = vpop.f32.mrb[29].mxu1 }
 0x1b5   : > { %7344 = vst [vmem:[#allocation37_spill] sm:$0xff] %v5838_v12  ;;  %7345 = vst [vmem:[#allocation38_spill] sm:$0xff] %v5840_v53  ;;  %v5844_v4 = vmul.f32 %v5840_v53, %v5706_v59 }
 0x1b7   : > { %v5846_v40 = vpop.f32.mrb[46].mxu0  ;;  %v5848_v28 = vpop.f32.mrb[30].mxu1 }
 0x1b8   : > { %7346 = vst [vmem:[#allocation39_spill] sm:$0xff] %v5846_v40  ;;  %v5850_v43 = vpop.f32.mrb[47].mxu0  ;;  %v5852_v56 = vpop.f32.mrb[31].mxu1 }
 0x1b9   : > { %7347 = vst [vmem:[#allocation40_spill] sm:$0xff] %v5850_v43  ;;  %7348 = vst [vmem:[#allocation41_spill] sm:$0xff] %v5852_v56  ;;  %v5856_v10 = vmul.f32 %v5852_v56, %v5710_v0 }
 0x1bb   : > { %v5858_v54 = vpop.f32.mrb[32].mxu1  ;;  %v5860_v12 = vpop.f32.mrb[48].mxu0 }
 0x1bc   : > { %7349 = vst [vmem:[#allocation42_spill] sm:$0xff] %v5860_v12  ;;  %v1500_v59 = vmul.f32 %v5860_v12, %v5682_v31  ;;  %v5864_v53 = vpop.f32.mrb[33].mxu1  ;;  %v5866_v40 = vpop.f32.mrb[49].mxu0 }
 0x1bd   : > { %7350 = vst [vmem:[#allocation43_spill] sm:$0xff] %v5864_v53  ;;  %7351 = vst [vmem:[#allocation44_spill] sm:$0xff] %v5866_v40  ;;  %v5870_v43 = vmul.f32 %v5864_v53, %v5714_v23  ;;  %v1501_v48 = vmul.f32 %v5866_v40, %v1051_v19 }
 0x1be   : > { %1663 = vmatprep.mubr.f32.mxu1 %v1500_v59 }
 0x1bf   : > { %v5873_v0 = vpop.f32.mrb[34].mxu1  ;;  %v5875_v56 = vpop.f32.mrb[50].mxu0  ;;  %1664 = vmatmul.mubr.f32.vlgmr.msra.gmra.mrb[80].mxu1 %v1499_v46  ;;  %4171 = vmatprep.mubr.f32.mxu0 %v1501_v48 }
 0x1c0   : > { %7352 = vst [vmem:[#allocation45_spill] sm:$0xff] %v5875_v56  ;;  %v1503_v31 = vmul.f32 %v5875_v56, %v5687_v62  ;;  %v5879_v12 = vpop.f32.mrb[35].mxu1  ;;  %v5881_v55 = vpop.f32.mrb[51].mxu0  ;;  %4510 = vmatpush1.bf16.msra.mxu1 %v4780_v7 }
 0x1c1   : > { %7353 = vst [vmem:[#allocation46_spill] sm:$0xff] %v5879_v12  ;;  %7354 = vst [vmem:[#allocation47_spill] sm:$0xff] %v5881_v55  ;;  %v5886_v23 = vmul.f32 %v5879_v12, %v5722_v17  ;;  %v1504_v19 = vmul.f32 %v5881_v55, %v1057_v51  ;;  %4512 = vmatprep.subr.bf16.mxu1 %v4782_v8 }
 0x1c2   : > { %1668 = vmatprep.mubr.f32.mxu1 %v1503_v31  ;;  %v7370_v31 = vmov 0.0|0.0  }
 0x1c3   : > { %v5890_v46 = vpop.f32.mrb[36].mxu1  ;;  %v5892_v48 = vpop.f32.mrb[52].mxu0  ;;  %1669 = vmatmul.mubr.f32.gmra.mrb[82].mxu1 %v1502_v63  ;;  %4172 = vmatmul.mubr.f32.vlgmr.msra.gmra.mrb[112].mxu0 %v1504_v19 }
 0x1c4   : > { %7355 = vst [vmem:[#allocation48_spill] sm:$0xff] %v5892_v48  ;;  %v1506_v62 = vmul.f32 %v5892_v48, %v5692_v41  ;;  %v5896_v59 = vpop.f32.mrb[37].mxu1  ;;  %v5898_v7 = vpop.f32.mrb[53].mxu0  ;;  %4514 = vmatpush1.bf16.msra.mxu1 %v4805_v14  ;;  %4530 = vmatpush3.bf16.msra.mxu0 %v5104_v30 }
 0x1c5   : > { %7356 = vst [vmem:[#allocation49_spill] sm:$0xff] %v5896_v59  ;;  %7357 = vst [vmem:[#allocation50_spill] sm:$0xff] %v5898_v7  ;;  %v5904_v8 = vmul.f32 %v5896_v59, %v5730_v2  ;;  %v1507_v17 = vmul.f32 %v5898_v7, %v1063_v60  ;;  %4516 = vmatprep.subr.bf16.mxu1 %v4814_v15  ;;  %4532 = vmatprep.subr.bf16.mxu0 %v5133_v47 }
 0x1c6   : > { %1673 = vmatprep.mubr.f32.mxu1 %v1506_v62 }
 0x1c7   : > { %v5909_v41 = vpop.f32.mrb[38].mxu1  ;;  %v5911_v51 = vpop.f32.mrb[54].mxu0  ;;  %1674 = vmatmul.mubr.f32.gmra.mrb[84].mxu1 %v1505_v26  ;;  %4174 = vmatprep.mubr.f32.mxu0 %v1507_v17 }
 0x1c8   : > { %7358 = vst [vmem:[#allocation51_spill] sm:$0xff] %v5911_v51  ;;  %v1509_v14 = vmul.f32 %v5911_v51, %v5696_v36  ;;  %v5915_v30 = vpop.f32.mrb[39].mxu1  ;;  %v5917_v2 = vpop.f32.mrb[55].mxu0  ;;  %4518 = vmatpush1.bf16.msra.mxu1 %v4835_v24  ;;  %4534 = vmatpush3.bf16.msra.mxu0 %v5133_v47 }
 0x1c9   : > { %7359 = vst [vmem:[#allocation52_spill] sm:$0xff] %v5915_v30  ;;  %7360 = vst [vmem:[#allocation53_spill] sm:$0xff] %v5917_v2  ;;  %v5923_v15 = vmul.f32 %v5915_v30, %v5738_v18  ;;  %v1510_v63 = vmul.f32 %v5917_v2, %v5801_v3  ;;  %4520 = vmatprep.subr.bf16.mxu1 %v4839_v25  ;;  %4536 = vmatprep.subr.bf16.mxu0 %v5162_v61 }
 0x1ca   : > { %1678 = vmatprep.mubr.f32.mxu1 %v1509_v14 }
 0x1cb   : > { %v5929_v36 = vpop.f32.mrb[40].mxu1  ;;  %v5931_v26 = vpop.f32.mrb[56].mxu0  ;;  %1679 = vmatmul.mubr.f32.gmra.mrb[86].mxu1 %v5808_v16  ;;  %4175 = vmatmul.mubr.f32.gmra.mrb[114].mxu0 %v1510_v63 }
 0x1cc   : > { %7361 = vst [vmem:[#allocation54_spill] sm:$0xff] %v5931_v26  ;;  %v1512_v24 = vmul.f32 %v5931_v26, %v5700_v42  ;;  %v5936_v47 = vpop.f32.mrb[41].mxu1  ;;  %v5938_v18 = vpop.f32.mrb[57].mxu0  ;;  %4522 = vmatpush1.bf16.msra.mxu1 %v4859_v32  ;;  %4538 = vmatpush3.bf16.msra.mxu0 %v5162_v61 }
 0x1cd   : > { %7362 = vst [vmem:[#allocation55_spill] sm:$0xff] %v5936_v47  ;;  %7363 = vst [vmem:[#allocation56_spill] sm:$0xff] %v5938_v18  ;;  %v5944_v25 = vmul.f32 %v5936_v47, %v5746_v20  ;;  %v1513_v60 = vmul.f32 %v5938_v18, %v5812_v13  ;;  %4524 = vmatprep.subr.bf16.mxu1 %v4863_v33  ;;  %4540 = vmatprep.subr.bf16.mxu0 %v5192_v21 }
 0x1ce   : > { %1683 = vmatprep.mubr.f32.mxu1 %v1512_v24 }
 0x1cf   : > { %v5950_v42 = vpop.f32.mrb[42].mxu1  ;;  %v5952_v16 = vpop.f32.mrb[58].mxu0  ;;  %1684 = vmatmul.mubr.f32.gmra.mrb[88].mxu1 %v5820_v22  ;;  %4177 = vmatprep.mubr.f32.mxu0 %v1513_v60 }
 0x1d0   : > { %7364 = vst [vmem:[#allocation57_spill] sm:$0xff] %v5952_v16  ;;  %v1515_v32 = vmul.f32 %v5952_v16, %v5704_v1  ;;  %v5957_v61 = vpop.f32.mrb[43].mxu1  ;;  %v5959_v20 = vpop.f32.mrb[59].mxu0  ;;  %4526 = vmatpush1.bf16.msra.mxu1 %v4877_v38  ;;  %4542 = vmatpush3.bf16.msra.mxu0 %v5192_v21 }
 0x1d1   : > { %7365 = vst [vmem:[#allocation58_spill] sm:$0xff] %v5957_v61  ;;  %7366 = vst [vmem:[#allocation59_spill] sm:$0xff] %v5959_v20  ;;  %v5965_v33 = vmul.f32 %v5957_v61, %v5754_v5  ;;  %v1516_v13 = vmul.f32 %v5959_v20, %v5824_v34  ;;  %4544 = vmatprep.subr.bf16.mxu0 %v5215_v39 }
 0x1d2   : > { %1688 = vmatprep.mubr.f32.mxu1 %v1515_v32 }
 0x1d3   : > { %v5970_v3 = vpop.f32.mrb[44].mxu1  ;;  %v5972_v1 = vpop.f32.mrb[60].mxu0  ;;  %1689 = vmatmul.mubr.f32.gmra.mrb[90].mxu1 %v5832_v27  ;;  %4178 = vmatmul.mubr.f32.gmra.mrb[116].mxu0 %v1516_v13 }
 0x1d4   : > { %7367 = vst [vmem:[#allocation60_spill] sm:$0xff] %v5972_v1  ;;  %v1518_v38 = vmul.f32 %v5972_v1, %v5708_v58  ;;  %v5977_v21 = vpop.f32.mrb[45].mxu1  ;;  %v5979_v5 = vpop.f32.mrb[61].mxu0  ;;  %4546 = vmatpush3.bf16.msra.mxu0 %v5215_v39 }
 0x1d5   : > { %7368 = vst [vmem:[#allocation61_spill] sm:$0xff] %v5977_v21  ;;  %7369 = vst [vmem:[#allocation62_spill] sm:$0xff] %v5979_v5  ;;  %v5984_v34 = vmul.f32 %v5977_v21, %v5762_v45  ;;  %v1519_v22 = vmul.f32 %v5979_v5, %v5836_v49  ;;  %4547 = vmatprep.subr.bf16.mxu0 %v7370_v31  ;;  %v7445_v21 = vld [vmem:[#allocation19_spill] sm:$0xff] }
 0x1d6   : > { %1693 = vmatprep.mubr.f32.mxu1 %v1518_v38 }
 0x1d7   : > { %v5989_v27 = vpop.f32.mrb[46].mxu1  ;;  %v5991_v19 = vpop.f32.mrb[62].mxu0  ;;  %1694 = vmatmul.mubr.f32.gmra.mrb[92].mxu1 %v5844_v4  ;;  %4180 = vmatprep.mubr.f32.mxu0 %v1519_v22 }
 0x1d8   : > { %7371 = vst [vmem:[#allocation63_spill] sm:$0xff] %v5991_v19  ;;  %v1521_v39 = vmul.f32 %v5991_v19, %v5712_v9  ;;  %v5996_v58 = vpop.f32.mrb[47].mxu1  ;;  %v5998_v45 = vpop.f32.mrb[63].mxu0 }
 0x1d9   : > { %7372 = vst [vmem:[#allocation64_spill] sm:$0xff] %v5996_v58  ;;  %7373 = vst [vmem:[#allocation65_spill] sm:$0xff] %v5998_v45  ;;  %v6002_v49 = vmul.f32 %v5996_v58, %v5770_v52  ;;  %v1522_v62 = vmul.f32 %v5998_v45, %v5848_v28 }
 0x1da   : > { %1698 = vmatprep.mubr.f32.mxu1 %v1521_v39 }
 0x1db   : > { %v6006_v17 = vpop.f32.mrb[48].mxu1  ;;  %v6008_v14 = vpop.f32.mrb[64].mxu0  ;;  %1699 = vmatmul.mubr.f32.gmra.mrb[94].mxu1 %v5856_v10  ;;  %4181 = vmatmul.mubr.f32.gmra.mrb[118].mxu0 %v1522_v62 }
 0x1dc   : > { %7374 = vst [vmem:[#allocation66_spill] sm:$0xff] %v6008_v14  ;;  %v1524_v9 = vmul.f32 %v6008_v14, %v5718_v6  ;;  %v6013_v4 = vpop.f32.mrb[49].mxu1  ;;  %v6015_v63 = vpop.f32.mrb[65].mxu0 }
 0x1dd   : > { %7375 = vst [vmem:[#allocation67_spill] sm:$0xff] %v6013_v4  ;;  %7376 = vst [vmem:[#allocation68_spill] sm:$0xff] %v6015_v63  ;;  %v6019_v52 = vmul.f32 %v6013_v4, %v5778_v11  ;;  %v1525_v28 = vmul.f32 %v6015_v63, %v5858_v54 }
 0x1de   : > { %1703 = vmatprep.mubr.f32.mxu1 %v1524_v9 }
 0x1df   : > { %v6023_v24 = vpop.f32.mrb[50].mxu1  ;;  %v6025_v60 = vpop.f32.mrb[66].mxu0  ;;  %1704 = vmatmul.mubr.f32.gmra.mrb[96].mxu1 %v5870_v43  ;;  %4183 = vmatprep.mubr.f32.mxu0 %v1525_v28 }
 0x1e0   : > { %7377 = vst [vmem:[#allocation69_spill] sm:$0xff] %v6025_v60  ;;  %v1527_v6 = vmul.f32 %v6025_v60, %v5726_v44  ;;  %v6030_v10 = vpop.f32.mrb[51].mxu1  ;;  %v6032_v32 = vpop.f32.mrb[67].mxu0 }
 0x1e1   : > { %7378 = vst [vmem:[#allocation70_spill] sm:$0xff] %v6030_v10  ;;  %7379 = vst [vmem:[#allocation71_spill] sm:$0xff] %v6032_v32  ;;  %v6036_v11 = vmul.f32 %v6030_v10, %v5785_v37  ;;  %v1528_v54 = vmul.f32 %v6032_v32, %v5873_v0 }
 0x1e2   : > { %1708 = vmatprep.mubr.f32.mxu1 %v1527_v6 }
 0x1e3   : > { %v6040_v13 = vpop.f32.mrb[52].mxu1  ;;  %v6042_v38 = vpop.f32.mrb[68].mxu0  ;;  %1709 = vmatmul.mubr.f32.gmra.mrb[98].mxu1 %v5886_v23  ;;  %4184 = vmatmul.mubr.f32.gmra.mrb[120].mxu0 %v1528_v54 }
 0x1e4   : > { %7380 = vst [vmem:[#allocation72_spill] sm:$0xff] %v6042_v38  ;;  %v1530_v44 = vmul.f32 %v6042_v38, %v5734_v29  ;;  %v6047_v43 = vpop.f32.mrb[53].mxu1  ;;  %v6049_v22 = vpop.f32.mrb[69].mxu0 }
 0x1e5   : > { %7381 = vst [vmem:[#allocation73_spill] sm:$0xff] %v6047_v43  ;;  %7382 = vst [vmem:[#allocation74_spill] sm:$0xff] %v6049_v22  ;;  %v6053_v37 = vmul.f32 %v6047_v43, %v5792_v50  ;;  %v1531_v0 = vmul.f32 %v6049_v22, %v5890_v46 }
 0x1e6   : > { %1713 = vmatprep.mubr.f32.mxu1 %v1530_v44 }
 0x1e7   : > { %v6057_v39 = vpop.f32.mrb[54].mxu1  ;;  %v6059_v62 = vpop.f32.mrb[70].mxu0  ;;  %1714 = vmatmul.mubr.f32.gmra.mrb[100].mxu1 %v5904_v8  ;;  %4186 = vmatprep.mubr.f32.mxu0 %v1531_v0 }
 0x1e8   : > { %7383 = vst [vmem:[#allocation75_spill] sm:$0xff] %v6059_v62  ;;  %v1533_v29 = vmul.f32 %v6059_v62, %v5742_v35  ;;  %v6064_v23 = vpop.f32.mrb[55].mxu1  ;;  %v6066_v9 = vpop.f32.mrb[71].mxu0  ;;  %v7387_v35 = vld [vmem:[#allocation11_spill] sm:$0xff] }
 0x1e9   : > { %7384 = vst [vmem:[#allocation76_spill] sm:$0xff] %v6064_v23  ;;  %7385 = vst [vmem:[#allocation77_spill] sm:$0xff] %v6066_v9  ;;  %v6070_v50 = vmul.f32 %v6064_v23, %v5799_v57  ;;  %v1534_v46 = vmul.f32 %v6066_v9, %v5909_v41  ;;  %v7390_v57 = vld [vmem:[#allocation30_spill] sm:$0xff] }
 0x1ea   : > { %1718 = vmatprep.mubr.f32.mxu1 %v1533_v29 }
 0x1eb   : > { %v6074_v28 = vpop.f32.mrb[56].mxu1  ;;  %v6076_v6 = vpop.f32.mrb[72].mxu0  ;;  %1719 = vmatmul.mubr.f32.gmra.mrb[102].mxu1 %v5923_v15  ;;  %4187 = vmatmul.mubr.f32.gmra.mrb[122].mxu0 %v1534_v46  ;;  %v7392_v15 = vld [vmem:[#allocation14_spill] sm:$0xff] }
 0x1ec   : > { %7386 = vst [vmem:[#allocation78_spill] sm:$0xff] %v6076_v6  ;;  %v1536_v8 = vmul.f32 %v6076_v6, %v7387_v35  ;;  %v6081_v54 = vpop.f32.mrb[57].mxu1  ;;  %v6083_v44 = vpop.f32.mrb[73].mxu0 }
 0x1ed   : > { %7388 = vst [vmem:[#allocation11_spill] sm:$0xff] %v6081_v54  ;;  %7389 = vst [vmem:[#allocation79_spill] sm:$0xff] %v6083_v44  ;;  %v6087_v0 = vmul.f32 %v6081_v54, %v7390_v57  ;;  %v1537_v41 = vmul.f32 %v6083_v44, %v5929_v36  ;;  %v7395_v57 = vld [vmem:[#allocation33_spill] sm:$0xff] }
 0x1ee   : > { %1723 = vmatprep.mubr.f32.mxu1 %v1536_v8 }
 0x1ef   : > { %v6091_v29 = vpop.f32.mrb[58].mxu1  ;;  %v6093_v23 = vpop.f32.mrb[74].mxu0  ;;  %1724 = vmatmul.mubr.f32.gmra.mrb[104].mxu1 %v5944_v25  ;;  %4189 = vmatprep.mubr.f32.mxu0 %v1537_v41  ;;  %v7397_v25 = vld [vmem:[#allocation17_spill] sm:$0xff] }
 0x1f0   : > { %7391 = vst [vmem:[#allocation30_spill] sm:$0xff] %v6093_v23  ;;  %v1539_v46 = vmul.f32 %v6093_v23, %v7392_v15  ;;  %v6098_v35 = vpop.f32.mrb[59].mxu1  ;;  %v6100_v43 = vpop.f32.mrb[75].mxu0 }
 0x1f1   : > { %7393 = vst [vmem:[#allocation14_spill] sm:$0xff] %v6098_v35  ;;  %7394 = vst [vmem:[#allocation80_spill] sm:$0xff] %v6100_v43  ;;  %v6104_v54 = vmul.f32 %v6098_v35, %v7395_v57  ;;  %v1540_v36 = vmul.f32 %v6100_v43, %v5950_v42  ;;  %v7400_v57 = vld [vmem:[#allocation36_spill] sm:$0xff] }
 0x1f2   : > { %1728 = vmatprep.mubr.f32.mxu1 %v1539_v46 }
 0x1f3   : > { %v6108_v8 = vpop.f32.mrb[60].mxu1  ;;  %v6110_v10 = vpop.f32.mrb[76].mxu0  ;;  %1729 = vmatmul.mubr.f32.gmra.mrb[106].mxu1 %v5965_v33  ;;  %4190 = vmatmul.mubr.f32.gmra.mrb[124].mxu0 %v1540_v36  ;;  %v7402_v33 = vld [vmem:[#allocation20_spill] sm:$0xff] }
 0x1f4   : > { %7396 = vst [vmem:[#allocation33_spill] sm:$0xff] %v6110_v10  ;;  %v1542_v41 = vmul.f32 %v6110_v10, %v7397_v25  ;;  %v6115_v15 = vpop.f32.mrb[61].mxu1  ;;  %v6117_v4 = vpop.f32.mrb[77].mxu0 }
 0x1f5   : > { %7398 = vst [vmem:[#allocation17_spill] sm:$0xff] %v6115_v15  ;;  %7399 = vst [vmem:[#allocation81_spill] sm:$0xff] %v6117_v4  ;;  %v6121_v35 = vmul.f32 %v6115_v15, %v7400_v57  ;;  %v1543_v42 = vmul.f32 %v6117_v4, %v5970_v3  ;;  %v7405_v57 = vld [vmem:[#allocation39_spill] sm:$0xff] }
 0x1f6   : > { %1733 = vmatprep.mubr.f32.mxu1 %v1542_v41 }
 0x1f7   : > { %v6125_v46 = vpop.f32.mrb[62].mxu1  ;;  %v6127_v58 = vpop.f32.mrb[78].mxu0  ;;  %1734 = vmatmul.mubr.f32.gmra.mrb[108].mxu1 %v5984_v34  ;;  %4192 = vmatprep.mubr.f32.mxu0 %v1543_v42  ;;  %v7407_v34 = vld [vmem:[#allocation22_spill] sm:$0xff] }
 0x1f8   : > { %7401 = vst [vmem:[#allocation36_spill] sm:$0xff] %v6127_v58  ;;  %v1545_v36 = vmul.f32 %v6127_v58, %v7402_v33  ;;  %v6132_v25 = vpop.f32.mrb[63].mxu1  ;;  %v6134_v10 = vpop.f32.mrb[79].mxu0 }
 0x1f9   : > { %7403 = vst [vmem:[#allocation20_spill] sm:$0xff] %v6132_v25  ;;  %7404 = vst [vmem:[#allocation82_spill] sm:$0xff] %v6134_v10  ;;  %v6138_v15 = vmul.f32 %v6132_v25, %v7405_v57  ;;  %v1546_v3 = vmul.f32 %v6134_v10, %v5989_v27  ;;  %v7410_v57 = vld [vmem:[#allocation2_spill] sm:$0xff] }
 0x1fa   : > { %1738 = vmatprep.mubr.f32.mxu1 %v1545_v36 }
 0x1fb   : > { %v6142_v41 = vpop.f32.mrb[64].mxu1  ;;  %v6144_v4 = vpop.f32.mrb[80].mxu0  ;;  %1739 = vmatmul.mubr.f32.gmra.mrb[110].mxu1 %v6002_v49  ;;  %4193 = vmatmul.mubr.f32.gmra.mrb[126].mxu0 %v1546_v3  ;;  %v7412_v49 = vld [vmem:[#allocation24_spill] sm:$0xff] }
 0x1fc   : > { %7406 = vst [vmem:[#allocation39_spill] sm:$0xff] %v6144_v4  ;;  %v1548_v42 = vmul.f32 %v6144_v4, %v7407_v34  ;;  %v6149_v33 = vpop.f32.mrb[65].mxu1  ;;  %v6151_v58 = vpop.f32.mrb[81].mxu0 }
 0x1fd   : > { %7408 = vst [vmem:[#allocation22_spill] sm:$0xff] %v6149_v33  ;;  %7409 = vst [vmem:[#allocation83_spill] sm:$0xff] %v6151_v58  ;;  %v6155_v25 = vmul.f32 %v6149_v33, %v7410_v57  ;;  %v1549_v27 = vmul.f32 %v6151_v58, %v6006_v17  ;;  %v7415_v57 = vld [vmem:[#allocation4_spill] sm:$0xff] }
 0x1fe   : > { %1743 = vmatprep.mubr.f32.mxu1 %v1548_v42 }
 0x1ff   : > { %v6159_v36 = vpop.f32.mrb[66].mxu1  ;;  %v6161_v10 = vpop.f32.mrb[82].mxu0  ;;  %1744 = vmatmul.mubr.f32.gmra.mrb[112].mxu1 %v6019_v52  ;;  %4195 = vmatprep.mubr.f32.mxu0 %v1549_v27  ;;  %v7417_v52 = vld [vmem:[#allocation26_spill] sm:$0xff] }
 0x200   : > { %7411 = vst [vmem:[#allocation2_spill] sm:$0xff] %v6161_v10  ;;  %v1551_v3 = vmul.f32 %v6161_v10, %v7412_v49  ;;  %v6166_v34 = vpop.f32.mrb[67].mxu1  ;;  %v6168_v4 = vpop.f32.mrb[83].mxu0 }
 0x201   : > { %7413 = vst [vmem:[#allocation24_spill] sm:$0xff] %v6166_v34  ;;  %7414 = vst [vmem:[#allocation84_spill] sm:$0xff] %v6168_v4  ;;  %v6172_v33 = vmul.f32 %v6166_v34, %v7415_v57  ;;  %v1552_v17 = vmul.f32 %v6168_v4, %v6023_v24  ;;  %v7420_v57 = vld [vmem:[#allocation6_spill] sm:$0xff] }
 0x202   : > { %1748 = vmatprep.mubr.f32.mxu1 %v1551_v3 }
 0x203   : > { %v6176_v42 = vpop.f32.mrb[68].mxu1  ;;  %v6178_v58 = vpop.f32.mrb[84].mxu0  ;;  %1749 = vmatmul.mubr.f32.gmra.mrb[114].mxu1 %v6036_v11  ;;  %4196 = vmatmul.mubr.f32.gmra.mrb[128].mxu0 %v1552_v17  ;;  %v7422_v11 = vld [vmem:[#allocation28_spill] sm:$0xff] }
 0x204   : > { %7416 = vst [vmem:[#allocation4_spill] sm:$0xff] %v6178_v58  ;;  %v1554_v27 = vmul.f32 %v6178_v58, %v7417_v52  ;;  %v6183_v49 = vpop.f32.mrb[69].mxu1  ;;  %v6185_v10 = vpop.f32.mrb[85].mxu0 }
 0x205   : > { %7418 = vst [vmem:[#allocation26_spill] sm:$0xff] %v6183_v49  ;;  %7419 = vst [vmem:[#allocation85_spill] sm:$0xff] %v6185_v10  ;;  %v6189_v34 = vmul.f32 %v6183_v49, %v7420_v57  ;;  %v1555_v24 = vmul.f32 %v6185_v10, %v6040_v13  ;;  %v7425_v57 = vld [vmem:[#allocation8_spill] sm:$0xff] }
 0x206   : > { %1753 = vmatprep.mubr.f32.mxu1 %v1554_v27 }
 0x207   : > { %v6193_v3 = vpop.f32.mrb[70].mxu1  ;;  %v6195_v4 = vpop.f32.mrb[86].mxu0  ;;  %1754 = vmatmul.mubr.f32.gmra.mrb[116].mxu1 %v6053_v37  ;;  %4198 = vmatprep.mubr.f32.mxu0 %v1555_v24  ;;  %v7427_v37 = vld [vmem:[#allocation31_spill] sm:$0xff] }
 0x208   : > { %7421 = vst [vmem:[#allocation6_spill] sm:$0xff] %v6195_v4  ;;  %v1557_v17 = vmul.f32 %v6195_v4, %v7422_v11  ;;  %v6200_v52 = vpop.f32.mrb[71].mxu1  ;;  %v6202_v58 = vpop.f32.mrb[87].mxu0 }
 0x209   : > { %7423 = vst [vmem:[#allocation28_spill] sm:$0xff] %v6200_v52  ;;  %7424 = vst [vmem:[#allocation86_spill] sm:$0xff] %v6202_v58  ;;  %v6206_v49 = vmul.f32 %v6200_v52, %v7425_v57  ;;  %v1558_v13 = vmul.f32 %v6202_v58, %v6057_v39  ;;  %v7430_v57 = vld [vmem:[#allocation10_spill] sm:$0xff] }
 0x20a   : > { %1758 = vmatprep.mubr.f32.mxu1 %v1557_v17 }
 0x20b   : > { %v6210_v27 = vpop.f32.mrb[72].mxu1  ;;  %v6212_v10 = vpop.f32.mrb[88].mxu0  ;;  %1759 = vmatmul.mubr.f32.gmra.mrb[118].mxu1 %v6070_v50  ;;  %4199 = vmatmul.mubr.f32.gmra.mrb[130].mxu0 %v1558_v13  ;;  %v7432_v50 = vld [vmem:[#allocation34_spill] sm:$0xff] }
 0x20c   : > { %7426 = vst [vmem:[#allocation8_spill] sm:$0xff] %v6212_v10  ;;  %v1560_v24 = vmul.f32 %v6212_v10, %v7427_v37  ;;  %v6217_v11 = vpop.f32.mrb[73].mxu1  ;;  %v6219_v4 = vpop.f32.mrb[89].mxu0 }
 0x20d   : > { %7428 = vst [vmem:[#allocation31_spill] sm:$0xff] %v6217_v11  ;;  %7429 = vst [vmem:[#allocation87_spill] sm:$0xff] %v6219_v4  ;;  %v6223_v52 = vmul.f32 %v6217_v11, %v7430_v57  ;;  %v1561_v39 = vmul.f32 %v6219_v4, %v6074_v28  ;;  %v7435_v57 = vld [vmem:[#allocation13_spill] sm:$0xff] }
 0x20e   : > { %1763 = vmatprep.mubr.f32.mxu1 %v1560_v24 }
 0x20f   : > { %v6227_v17 = vpop.f32.mrb[74].mxu1  ;;  %v6229_v58 = vpop.f32.mrb[90].mxu0  ;;  %1764 = vmatmul.mubr.f32.gmra.mrb[120].mxu1 %v6087_v0  ;;  %4201 = vmatprep.mubr.f32.mxu0 %v1561_v39  ;;  %v7437_v0 = vld [vmem:[#allocation37_spill] sm:$0xff] }
 0x210   : > { %7431 = vst [vmem:[#allocation10_spill] sm:$0xff] %v6229_v58  ;;  %v1563_v13 = vmul.f32 %v6229_v58, %v7432_v50  ;;  %v6234_v37 = vpop.f32.mrb[75].mxu1  ;;  %v6236_v10 = vpop.f32.mrb[91].mxu0 }
 0x211   : > { %7433 = vst [vmem:[#allocation34_spill] sm:$0xff] %v6234_v37  ;;  %7434 = vst [vmem:[#allocation88_spill] sm:$0xff] %v6236_v10  ;;  %v6240_v11 = vmul.f32 %v6234_v37, %v7435_v57  ;;  %v1564_v28 = vmul.f32 %v6236_v10, %v6091_v29  ;;  %v7440_v57 = vld [vmem:[#allocation16_spill] sm:$0xff] }
 0x212   : > { %1768 = vmatprep.mubr.f32.mxu1 %v1563_v13 }
 0x213   : > { %v6244_v24 = vpop.f32.mrb[76].mxu1  ;;  %v6246_v4 = vpop.f32.mrb[92].mxu0  ;;  %1769 = vmatmul.mubr.f32.gmra.mrb[122].mxu1 %v6104_v54  ;;  %4202 = vmatmul.mubr.f32.gmra.mrb[132].mxu0 %v1564_v28  ;;  %v7442_v54 = vld [vmem:[#allocation40_spill] sm:$0xff] }
 0x214   : > { %7436 = vst [vmem:[#allocation13_spill] sm:$0xff] %v6246_v4  ;;  %v1566_v39 = vmul.f32 %v6246_v4, %v7437_v0  ;;  %v6251_v50 = vpop.f32.mrb[77].mxu1  ;;  %v6253_v58 = vpop.f32.mrb[93].mxu0 }
 0x215   : > { %7438 = vst [vmem:[#allocation37_spill] sm:$0xff] %v6251_v50  ;;  %7439 = vst [vmem:[#allocation89_spill] sm:$0xff] %v6253_v58  ;;  %v1589_v37 = vmul.f32 %v6251_v50, %v7440_v57  ;;  %v1567_v29 = vmul.f32 %v6253_v58, %v6108_v8 }
 0x216   : > { %1773 = vmatprep.mubr.f32.mxu1 %v1566_v39 }
 0x217   : > { %v6259_v13 = vpop.f32.mrb[78].mxu1  ;;  %v6261_v10 = vpop.f32.mrb[94].mxu0  ;;  %1774 = vmatmul.mubr.f32.gmra.mrb[124].mxu1 %v6121_v35  ;;  %4204 = vmatprep.mubr.f32.mxu0 %v1567_v29  ;;  %v7447_v35 = vld [vmem:[#allocation3_spill] sm:$0xff] }
 0x218   : > { %7441 = vst [vmem:[#allocation16_spill] sm:$0xff] %v6261_v10  ;;  %v1569_v28 = vmul.f32 %v6261_v10, %v7442_v54  ;;  %v6266_v0 = vpop.f32.mrb[79].mxu1  ;;  %v6268_v4 = vpop.f32.mrb[95].mxu0 }
 0x219   : > { %7443 = vst [vmem:[#allocation40_spill] sm:$0xff] %v6266_v0  ;;  %7444 = vst [vmem:[#allocation90_spill] sm:$0xff] %v6268_v4  ;;  %v1592_v57 = vmul.f32 %v6266_v0, %v7445_v21  ;;  %v1570_v8 = vmul.f32 %v6268_v4, %v6125_v46  ;;  %v7450_v21 = vld [vmem:[#allocation5_spill] sm:$0xff] }
 0x21a   : > { %1778 = vmatprep.mubr.f32.mxu1 %v1569_v28 }
 0x21b   : > { %v6274_v39 = vpop.f32.mrb[96].mxu0  ;;  %1779 = vmatmul.mubr.f32.gmra.mrb[126].mxu1 %v6138_v15  ;;  %4205 = vmatmul.mubr.f32.gmra.mrb[134].mxu0 %v1570_v8 }
 0x21c   : > { %7446 = vst [vmem:[#allocation19_spill] sm:$0xff] %v6274_v39  ;;  %v1572_v29 = vmul.f32 %v6274_v39, %v7447_v35  ;;  %v6279_v54 = vpop.f32.mrb[97].mxu0 }
 0x21d   : > { %7448 = vst [vmem:[#allocation3_spill] sm:$0xff] %v6279_v54  ;;  %v1573_v50 = vmul.f32 %v6279_v54, %v6142_v41  ;;  %v7453_v41 = vld [vmem:[#allocation7_spill] sm:$0xff] }
 0x21e   : > { %1783 = vmatprep.mubr.f32.mxu1 %v1572_v29 }
 0x21f   : > { %v6283_v58 = vpop.f32.mrb[98].mxu0  ;;  %1784 = vmatmul.mubr.f32.gmra.mrb[128].mxu1 %v6155_v25  ;;  %4207 = vmatprep.mubr.f32.mxu0 %v1573_v50 }
 0x220   : > { %7449 = vst [vmem:[#allocation91_spill] sm:$0xff] %v6283_v58  ;;  %v1575_v46 = vmul.f32 %v6283_v58, %v7450_v21  ;;  %v6288_v28 = vpop.f32.mrb[99].mxu0 }
 0x221   : > { %7451 = vst [vmem:[#allocation5_spill] sm:$0xff] %v6288_v28  ;;  %v1576_v15 = vmul.f32 %v6288_v28, %v6159_v36  ;;  %v7456_v36 = vld [vmem:[#allocation9_spill] sm:$0xff] }
 0x222   : > { %1788 = vmatprep.mubr.f32.mxu1 %v1575_v46 }
 0x223   : > { %v6292_v8 = vpop.f32.mrb[100].mxu0  ;;  %1789 = vmatmul.mubr.f32.gmra.mrb[130].mxu1 %v6172_v33  ;;  %4208 = vmatmul.mubr.f32.gmra.mrb[136].mxu0 %v1576_v15 }
 0x224   : > { %7452 = vst [vmem:[#allocation92_spill] sm:$0xff] %v6292_v8  ;;  %v1578_v35 = vmul.f32 %v6292_v8, %v7453_v41  ;;  %v6297_v29 = vpop.f32.mrb[101].mxu0 }
 0x225   : > { %7454 = vst [vmem:[#allocation7_spill] sm:$0xff] %v6297_v29  ;;  %v1579_v25 = vmul.f32 %v6297_v29, %v6176_v42  ;;  %v7459_v42 = vld [vmem:[#allocation12_spill] sm:$0xff] }
 0x226   : > { %1793 = vmatprep.mubr.f32.mxu1 %v1578_v35 }
 0x227   : > { %v6301_v50 = vpop.f32.mrb[102].mxu0  ;;  %1794 = vmatmul.mubr.f32.gmra.mrb[132].mxu1 %v6189_v34  ;;  %4210 = vmatprep.mubr.f32.mxu0 %v1579_v25 }
 0x228   : > { %7455 = vst [vmem:[#allocation93_spill] sm:$0xff] %v6301_v50  ;;  %v1581_v21 = vmul.f32 %v6301_v50, %v7456_v36  ;;  %v6306_v46 = vpop.f32.mrb[103].mxu0 }
 0x229   : > { %7457 = vst [vmem:[#allocation9_spill] sm:$0xff] %v6306_v46  ;;  %v1582_v33 = vmul.f32 %v6306_v46, %v6193_v3  ;;  %v7462_v3 = vld [vmem:[#allocation15_spill] sm:$0xff] }
 0x22a   : > { %1798 = vmatprep.mubr.f32.mxu1 %v1581_v21 }
 0x22b   : > { %v6310_v15 = vpop.f32.mrb[104].mxu0  ;;  %1799 = vmatmul.mubr.f32.gmra.mrb[134].mxu1 %v6206_v49  ;;  %4211 = vmatmul.mubr.f32.gmra.mrb[138].mxu0 %v1582_v33 }
 0x22c   : > { %7458 = vst [vmem:[#allocation94_spill] sm:$0xff] %v6310_v15  ;;  %v1584_v41 = vmul.f32 %v6310_v15, %v7459_v42  ;;  %v6315_v35 = vpop.f32.mrb[105].mxu0 }
 0x22d   : > { %7460 = vst [vmem:[#allocation12_spill] sm:$0xff] %v6315_v35  ;;  %v1585_v34 = vmul.f32 %v6315_v35, %v6210_v27  ;;  %v7465_v27 = vld [vmem:[#allocation18_spill] sm:$0xff] }
 0x22e   : > { %1803 = vmatprep.mubr.f32.mxu1 %v1584_v41 }
 0x22f   : > { %v6319_v25 = vpop.f32.mrb[106].mxu0  ;;  %1804 = vmatmul.mubr.f32.gmra.mrb[136].mxu1 %v6223_v52  ;;  %4213 = vmatprep.mubr.f32.mxu0 %v1585_v34 }
 0x230   : > { %7461 = vst [vmem:[#allocation95_spill] sm:$0xff] %v6319_v25  ;;  %v1587_v36 = vmul.f32 %v6319_v25, %v7462_v3  ;;  %v6324_v21 = vpop.f32.mrb[107].mxu0 }
 0x231   : > { %7463 = vst [vmem:[#allocation15_spill] sm:$0xff] %v6324_v21  ;;  %v1588_v49 = vmul.f32 %v6324_v21, %v6227_v17  ;;  %v7468_v17 = vld [vmem:[#allocation21_spill] sm:$0xff] }
 0x232   : > { %1808 = vmatprep.mubr.f32.mxu1 %v1587_v36 }
 0x233   : > { %v6328_v33 = vpop.f32.mrb[108].mxu0  ;;  %1809 = vmatmul.mubr.f32.gmra.mrb[138].mxu1 %v6240_v11  ;;  %4214 = vmatmul.mubr.f32.gmra.mrb[140].mxu0 %v1588_v49  ;;  %v7470_v49 = vmov 0.0  }
 0x234   : > { %7464 = vst [vmem:[#allocation96_spill] sm:$0xff] %v6328_v33  ;;  %v1590_v42 = vmul.f32 %v6328_v33, %v7465_v27  ;;  %v6333_v41 = vpop.f32.mrb[109].mxu0  ;;  %v1595_v27 = vlaneseq }
 0x235   : > { %7466 = vst [vmem:[#allocation18_spill] sm:$0xff] %v6333_v41  ;;  %v1591_v52 = vmul.f32 %v6333_v41, %v6244_v24 }
 0x236   : > { %1813 = vmatprep.mubr.f32.mxu1 %v1590_v42  ;;  %v6346_v24 = vshrl.u32 %v1595_v27, 7 }
 0x237   : > { %v6337_v34 = vpop.f32.mrb[110].mxu0  ;;  %1814 = vmatmul.mubr.f32.gmra.mrb[140].mxu1 %v1589_v37  ;;  %4216 = vmatprep.mubr.f32.mxu0 %v1591_v52  ;;  %v449_v37 = vld [vmem:[%s7205_s3 + $0x300] sm:$0xff] }
 0x238   : > { %7467 = vst [vmem:[#allocation97_spill] sm:$0xff] %v6337_v34  ;;  %v1593_v3 = vmul.f32 %v6337_v34, %v7468_v17  ;;  %v6341_v36 = vpop.f32.mrb[111].mxu0  ;;  %7471 = vst [vmem:[#allocation98_spill] sm:$0xff] %v6346_v24  ;;  %v7261_v42 = vsub.s32 0, %v6346_v24 }
 0x239   : > { %7469 = vst [vmem:[#allocation21_spill] sm:$0xff] %v6341_v36  ;;  %v1594_v11 = vmul.f32 %v6341_v36, %v6259_v13 }
 0x23a   : > { %1818 = vmatprep.mubr.f32.mxu1 %v1593_v3  ;;  %v6354_v52 = vrot.slane %v449_v37, %v7261_v42 }
 0x23b   : > { %1819 = vmatmul.mubr.f32.gmra.mrb[142].mxu1 %v1592_v57  ;;  %4217 = vmatmul.mubr.f32.gmra.mrb[142].mxu0 %v1594_v11 }
 0x23c   : > { %2754 = vmatprep.mubr.f32.mxu1 %v7470_v49 }
 0x292   : > { %v1665_v17 = vpop.f32.mrb[80].mxu1 }
 0x293   : > { %v1667_v13 = vpop.f32.mrb[81].mxu1  ;;  %v1666_v57 = vadd.f32 %v1665_v17, %v6354_v52 }
 0x296   : > { %v1670_v3 = vpop.f32.mrb[82].mxu1  ;;  %v4173_v11 = vpop.f32.mrb[112].mxu0 }
 0x297   : > { %v1671_v41 = vadd.f32 %v1670_v3, %v6354_v52  ;;  %v1672_v27 = vpop.f32.mrb[83].mxu1  ;;  %v1890_v34 = vpop.f32.mrb[113].mxu0 }
 0x298   : > { %v6358_v36 = vadd.f32 %v1890_v34, %v1666_v57 }
 0x299   : > { %v6360_v0 = vadd.f32 %v4173_v11, %v1671_v41 }
 0x29a   : > { %v2049_v33 = vmul.f32 0.5, %v6358_v36  ;;  %v1675_v35 = vpop.f32.mrb[84].mxu1  ;;  %v2177_v50 = vmul.f32 1.6765325, %v6358_v36 }
 0x29b   : > { %v2050_v37 = vmul.f32 0.5, %v6360_v0  ;;  %v1677_v42 = vpop.f32.mrb[85].mxu1  ;;  %v1676_v17 = vadd.f32 %v1675_v35, %v6354_v52 }
 0x29c   : > { %4651 = vtanh.f32 %v2049_v33 }
 0x29d   : > { %4653 = vtanh.f32 %v2050_v37 }
 0x29e   : > { %v1680_v13 = vpop.f32.mrb[86].mxu1  ;;  %v4176_v24 = vpop.f32.mrb[114].mxu0 }
 0x29f   : > { %v1681_v3 = vadd.f32 %v1680_v13, %v6354_v52  ;;  %v1682_v27 = vpop.f32.mrb[87].mxu1  ;;  %v1900_v25 = vpop.f32.mrb[115].mxu0 }
 0x2a0   : > { %v6366_v34 = vadd.f32 %v1900_v25, %v1676_v17 }
 0x2a1   : > { %v6368_v41 = vadd.f32 %v4176_v24, %v1681_v3 }
 0x2a2   : > { %v2051_v57 = vmul.f32 0.5, %v6366_v34  ;;  %v1685_v11 = vpop.f32.mrb[88].mxu1 }
 0x2a3   : > { %v2052_v21 = vmul.f32 0.5, %v6368_v41  ;;  %v1687_v42 = vpop.f32.mrb[89].mxu1  ;;  %v1686_v35 = vadd.f32 %v1685_v11, %v6354_v52 }
 0x2a4   : > { %4655 = vtanh.f32 %v2051_v57 }
 0x2a5   : > { %4657 = vtanh.f32 %v2052_v21  ;;  %v2178_v21 = vmul.f32 1.6765325, %v6360_v0 }
 0x2a6   : > { %v4652_v33 = vpop.eup %4651  ;;  %v1690_v37 = vpop.f32.mrb[90].mxu1 }
 0x2a7   : > { %v4179_v15 = vpop.f32.mrb[116].mxu0  ;;  %v4654_v13 = vpop.eup %4653  ;;  %v1691_v27 = vadd.f32 %v1690_v37, %v6354_v52  ;;  %v2113_v24 = vadd.f32 1.0, %v4652_v33 }
 0x2a8   : > { %v1692_v25 = vpop.f32.mrb[91].mxu1  ;;  %v1910_v17 = vpop.f32.mrb[117].mxu0  ;;  %v2114_v29 = vadd.f32 1.0, %v4654_v13 }
 0x2a9   : > { %v6374_v3 = vadd.f32 %v1910_v17, %v1686_v35  ;;  %v6377_v46 = vadd.f32 %v4179_v15, %v1691_v27  ;;  %v2145_v57 = vmul.f32 0.5, %v2113_v24 }
 0x2aa   : > { %v1695_v42 = vpop.f32.mrb[92].mxu1  ;;  %v2146_v8 = vmul.f32 0.5, %v2114_v29 }
 0x2ab   : > { %v2053_v11 = vmul.f32 0.5, %v6374_v3  ;;  %v2054_v54 = vmul.f32 0.5, %v6377_v46  ;;  %v1697_v37 = vpop.f32.mrb[93].mxu1  ;;  %2305 = vrot.lane.b32.xlu0 %v2145_v57, %s4726_s28  ;;  %v6383_v33 = vmul.f32 %v2177_v50, %v2145_v57  ;;  %v1696_v13 = vadd.f32 %v1695_v42, %v6354_v52 }
 0x2ac   : > { %2307 = vrot.lane.b32.xlu1 %v2146_v8, %s4726_s28  ;;  %v6386_v15 = vmul.f32 %v2178_v21, %v2146_v8  ;;  %v2179_v57 = vmul.f32 1.6765325, %v6366_v34 }
 0x2ad   : > { %4659 = vtanh.f32 %v2053_v11 }
 0x2ae   : > { %4661 = vtanh.f32 %v2054_v54  ;;  %v4656_v35 = vpop.eup %4655  ;;  %v1700_v27 = vpop.f32.mrb[94].mxu1  ;;  %v2180_v54 = vmul.f32 1.6765325, %v6368_v41 }
 0x2af   : > { %v4182_v25 = vpop.f32.mrb[118].mxu0  ;;  %v4658_v29 = vpop.eup %4657  ;;  %v1701_v17 = vadd.f32 %v1700_v27, %v6354_v52  ;;  %v2115_v58 = vadd.f32 1.0, %v4656_v35 }
 0x2b0   : > { %v1702_v24 = vpop.f32.mrb[95].mxu1  ;;  %v1920_v37 = vpop.f32.mrb[119].mxu0  ;;  %v2116_v50 = vadd.f32 1.0, %v4658_v29 }
 0x2b1   : > { %v6390_v28 = vadd.f32 %v1920_v37, %v1696_v13  ;;  %v6393_v11 = vadd.f32 %v4182_v25, %v1701_v17  ;;  %v2147_v8 = vmul.f32 0.5, %v2115_v58 }
 0x2b2   : > { %v1705_v42 = vpop.f32.mrb[96].mxu1  ;;  %v2148_v39 = vmul.f32 0.5, %v2116_v50 }
 0x2b3   : > { %v2055_v21 = vmul.f32 0.5, %v6390_v28  ;;  %v2056_v10 = vmul.f32 0.5, %v6393_v11  ;;  %v1707_v27 = vpop.f32.mrb[97].mxu1  ;;  %v6398_v24 = vmul.f32 %v2179_v57, %v2147_v8  ;;  %2309 = vrot.lane.b32.xlu0 %v2147_v8, %s4726_s28  ;;  %v1706_v13 = vadd.f32 %v1705_v42, %v6354_v52 }
 0x2b4   : > { %2311 = vrot.lane.b32.xlu1 %v2148_v39, %s4726_s28  ;;  %v6402_v35 = vmul.f32 %v2180_v54, %v2148_v39 }
 0x2b5   : > { %4663 = vtanh.f32 %v2055_v21  ;;  %v2181_v21 = vmul.f32 1.6765325, %v6374_v3 }
 0x2b6   : > { %4665 = vtanh.f32 %v2056_v10  ;;  %v1710_v25 = vpop.f32.mrb[98].mxu1  ;;  %v4185_v29 = vpop.f32.mrb[120].mxu0  ;;  %v2182_v10 = vmul.f32 1.6765325, %v6377_v46 }
 0x2b7   : > { %v4660_v58 = vpop.eup %4659  ;;  %v1711_v37 = vadd.f32 %v1710_v25, %v6354_v52  ;;  %v1712_v50 = vpop.f32.mrb[99].mxu1 }
 0x2b8   : > { %v4662_v17 = vpop.eup %4661  ;;  %v1930_v27 = vpop.f32.mrb[121].mxu0  ;;  %v2117_v57 = vadd.f32 1.0, %v4660_v58 }
 0x2b9   : > { %v6406_v4 = vadd.f32 %v1930_v27, %v1706_v13  ;;  %v2118_v8 = vadd.f32 1.0, %v4662_v17  ;;  %v6409_v44 = vadd.f32 %v4185_v29, %v1711_v37 }
 0x2ba   : > { %v2149_v39 = vmul.f32 0.5, %v2117_v57  ;;  %v1715_v42 = vpop.f32.mrb[100].mxu1 }
 0x2bb   : > { %v2057_v54 = vmul.f32 0.5, %v6406_v4  ;;  %v2150_v23 = vmul.f32 0.5, %v2118_v8  ;;  %v2058_v43 = vmul.f32 0.5, %v6409_v44  ;;  %v1717_v25 = vpop.f32.mrb[101].mxu1  ;;  %v1716_v29 = vadd.f32 %v1715_v42, %v6354_v52 }
 0x2bc   : > { %v6414_v50 = vmul.f32 %v2181_v21, %v2149_v39  ;;  %2313 = vrot.lane.b32.xlu0 %v2149_v39, %s4726_s28 }
 0x2bd   : > { %4667 = vtanh.f32 %v2057_v54  ;;  %2315 = vrot.lane.b32.xlu1 %v2150_v23, %s4726_s28  ;;  %v6418_v58 = vmul.f32 %v2182_v10, %v2150_v23  ;;  %v2183_v54 = vmul.f32 1.6765325, %v6390_v28 }
 0x2be   : > { %4669 = vtanh.f32 %v2058_v43  ;;  %v1720_v17 = vpop.f32.mrb[102].mxu1  ;;  %v4188_v37 = vpop.f32.mrb[122].mxu0  ;;  %v2184_v43 = vmul.f32 1.6765325, %v6393_v11 }
 0x2bf   : > { %v4664_v13 = vpop.eup %4663  ;;  %v1721_v57 = vadd.f32 %v1720_v17, %v6354_v52  ;;  %v1722_v8 = vpop.f32.mrb[103].mxu1 }
 0x2c0   : > { %v4666_v27 = vpop.eup %4665  ;;  %v1940_v25 = vpop.f32.mrb[123].mxu0  ;;  %v2119_v21 = vadd.f32 1.0, %v4664_v13 }
 0x2c1   : > { %v6422_v61 = vadd.f32 %v1940_v25, %v1716_v29  ;;  %v2120_v39 = vadd.f32 1.0, %v4666_v27  ;;  %v6425_v6 = vadd.f32 %v4188_v37, %v1721_v57 }
 0x2c2   : > { %v2151_v23 = vmul.f32 0.5, %v2119_v21  ;;  %v1725_v42 = vpop.f32.mrb[104].mxu1 }
 0x2c3   : > { %v2059_v10 = vmul.f32 0.5, %v6422_v61  ;;  %v2152_v47 = vmul.f32 0.5, %v2120_v39  ;;  %v2060_v22 = vmul.f32 0.5, %v6425_v6  ;;  %v1727_v17 = vpop.f32.mrb[105].mxu1  ;;  %v1726_v37 = vadd.f32 %v1725_v42, %v6354_v52 }
 0x2c4   : > { %v6430_v8 = vmul.f32 %v2183_v54, %v2151_v23  ;;  %2317 = vrot.lane.b32.xlu0 %v2151_v23, %s4726_s28 }
 0x2c5   : > { %4671 = vtanh.f32 %v2059_v10  ;;  %2319 = vrot.lane.b32.xlu1 %v2152_v47, %s4726_s28  ;;  %v6434_v13 = vmul.f32 %v2184_v43, %v2152_v47  ;;  %v2185_v10 = vmul.f32 1.6765325, %v6406_v4 }
 0x2c6   : > { %4673 = vtanh.f32 %v2060_v22  ;;  %v1730_v27 = vpop.f32.mrb[106].mxu1  ;;  %v4191_v57 = vpop.f32.mrb[124].mxu0  ;;  %v2186_v22 = vmul.f32 1.6765325, %v6409_v44 }
 0x2c7   : > { %v4668_v29 = vpop.eup %4667  ;;  %v1731_v21 = vadd.f32 %v1730_v27, %v6354_v52  ;;  %v1732_v39 = vpop.f32.mrb[107].mxu1 }
 0x2c8   : > { %v4670_v25 = vpop.eup %4669  ;;  %v1950_v17 = vpop.f32.mrb[125].mxu0  ;;  %v2121_v54 = vadd.f32 1.0, %v4668_v29 }
 0x2c9   : > { %v6438_v62 = vadd.f32 %v1950_v17, %v1726_v37  ;;  %v2122_v23 = vadd.f32 1.0, %v4670_v25  ;;  %v6441_v9 = vadd.f32 %v4191_v57, %v1731_v21 }
 0x2ca   : > { %v2153_v47 = vmul.f32 0.5, %v2121_v54  ;;  %v1735_v42 = vpop.f32.mrb[108].mxu1 }
 0x2cb   : > { %v2061_v43 = vmul.f32 0.5, %v6438_v62  ;;  %v2154_v30 = vmul.f32 0.5, %v2122_v23  ;;  %v2062_v38 = vmul.f32 0.5, %v6441_v9  ;;  %v1737_v27 = vpop.f32.mrb[109].mxu1  ;;  %v1736_v57 = vadd.f32 %v1735_v42, %v6354_v52 }
 0x2cc   : > { %v6446_v39 = vmul.f32 %v2185_v10, %v2153_v47  ;;  %2321 = vrot.lane.b32.xlu0 %v2153_v47, %s4726_s28 }
 0x2cd   : > { %4675 = vtanh.f32 %v2061_v43  ;;  %2323 = vrot.lane.b32.xlu1 %v2154_v30, %s4726_s28  ;;  %v6450_v29 = vmul.f32 %v2186_v22, %v2154_v30  ;;  %v2187_v43 = vmul.f32 1.6765325, %v6422_v61 }
 0x2ce   : > { %4677 = vtanh.f32 %v2062_v38  ;;  %v1740_v25 = vpop.f32.mrb[110].mxu1  ;;  %v4194_v21 = vpop.f32.mrb[126].mxu0  ;;  %v2188_v38 = vmul.f32 1.6765325, %v6425_v6 }
 0x2cf   : > { %v4672_v37 = vpop.eup %4671  ;;  %v1741_v54 = vadd.f32 %v1740_v25, %v6354_v52  ;;  %v1742_v23 = vpop.f32.mrb[111].mxu1 }
 0x2d0   : > { %v4674_v17 = vpop.eup %4673  ;;  %v1960_v27 = vpop.f32.mrb[127].mxu0  ;;  %v2123_v10 = vadd.f32 1.0, %v4672_v37 }
 0x2d1   : > { %v6454_v59 = vadd.f32 %v1960_v27, %v1736_v57  ;;  %v2124_v47 = vadd.f32 1.0, %v4674_v17  ;;  %v6457_v63 = vadd.f32 %v4194_v21, %v1741_v54 }
 0x2d2   : > { %v2155_v30 = vmul.f32 0.5, %v2123_v10  ;;  %v1745_v42 = vpop.f32.mrb[112].mxu1 }
 0x2d3   : > { %v2063_v22 = vmul.f32 0.5, %v6454_v59  ;;  %v2156_v60 = vmul.f32 0.5, %v2124_v47  ;;  %v2064_v32 = vmul.f32 0.5, %v6457_v63  ;;  %v1747_v25 = vpop.f32.mrb[113].mxu1  ;;  %v1746_v21 = vadd.f32 %v1745_v42, %v6354_v52 }
 0x2d4   : > { %v6462_v23 = vmul.f32 %v2187_v43, %v2155_v30  ;;  %2325 = vrot.lane.b32.xlu0 %v2155_v30, %s4726_s28 }
 0x2d5   : > { %4679 = vtanh.f32 %v2063_v22  ;;  %2327 = vrot.lane.b32.xlu1 %v2156_v60, %s4726_s28  ;;  %v6466_v37 = vmul.f32 %v2188_v38, %v2156_v60  ;;  %v2189_v22 = vmul.f32 1.6765325, %v6438_v62 }
 0x2d6   : > { %4681 = vtanh.f32 %v2064_v32  ;;  %v1750_v17 = vpop.f32.mrb[114].mxu1  ;;  %v4197_v54 = vpop.f32.mrb[128].mxu0  ;;  %v2190_v32 = vmul.f32 1.6765325, %v6441_v9 }
 0x2d7   : > { %v4676_v57 = vpop.eup %4675  ;;  %v1751_v10 = vadd.f32 %v1750_v17, %v6354_v52  ;;  %v1752_v47 = vpop.f32.mrb[115].mxu1 }
 0x2d8   : > { %v4678_v27 = vpop.eup %4677  ;;  %v1970_v25 = vpop.f32.mrb[129].mxu0  ;;  %v2125_v43 = vadd.f32 1.0, %v4676_v57 }
 0x2d9   : > { %v6470_v12 = vadd.f32 %v1970_v25, %v1746_v21  ;;  %v2126_v30 = vadd.f32 1.0, %v4678_v27  ;;  %v6473_v14 = vadd.f32 %v4197_v54, %v1751_v10 }
 0x2da   : > { %v2157_v60 = vmul.f32 0.5, %v2125_v43  ;;  %v1755_v42 = vpop.f32.mrb[116].mxu1 }
 0x2db   : > { %v2065_v38 = vmul.f32 0.5, %v6470_v12  ;;  %v2158_v53 = vmul.f32 0.5, %v2126_v30  ;;  %v2066_v5 = vmul.f32 0.5, %v6473_v14  ;;  %v1757_v17 = vpop.f32.mrb[117].mxu1  ;;  %v1756_v54 = vadd.f32 %v1755_v42, %v6354_v52 }
 0x2dc   : > { %v6478_v47 = vmul.f32 %v2189_v22, %v2157_v60  ;;  %2329 = vrot.lane.b32.xlu0 %v2157_v60, %s4726_s28 }
 0x2dd   : > { %4683 = vtanh.f32 %v2065_v38  ;;  %2331 = vrot.lane.b32.xlu1 %v2158_v53, %s4726_s28  ;;  %v6482_v57 = vmul.f32 %v2190_v32, %v2158_v53  ;;  %v2191_v38 = vmul.f32 1.6765325, %v6454_v59 }
 0x2de   : > { %4685 = vtanh.f32 %v2066_v5  ;;  %v1760_v27 = vpop.f32.mrb[118].mxu1  ;;  %v4200_v10 = vpop.f32.mrb[130].mxu0  ;;  %v2192_v5 = vmul.f32 1.6765325, %v6457_v63 }
 0x2df   : > { %7472 = vst [vmem:[#allocation99_spill] sm:$0xff] %v6482_v57  ;;  %v4680_v21 = vpop.eup %4679  ;;  %v1761_v43 = vadd.f32 %v1760_v27, %v6354_v52  ;;  %v1762_v30 = vpop.f32.mrb[119].mxu1 }
 0x2e0   : > { %v4682_v25 = vpop.eup %4681  ;;  %v1980_v17 = vpop.f32.mrb[131].mxu0  ;;  %v2127_v22 = vadd.f32 1.0, %v4680_v21 }
 0x2e1   : > { %v6486_v19 = vadd.f32 %v1980_v17, %v1756_v54  ;;  %v2128_v60 = vadd.f32 1.0, %v4682_v25  ;;  %v6489_v45 = vadd.f32 %v4200_v10, %v1761_v43 }
 0x2e2   : > { %v2159_v53 = vmul.f32 0.5, %v2127_v22  ;;  %v1765_v42 = vpop.f32.mrb[120].mxu1 }
 0x2e3   : > { %v2067_v32 = vmul.f32 0.5, %v6486_v19  ;;  %v2160_v1 = vmul.f32 0.5, %v2128_v60  ;;  %v2068_v18 = vmul.f32 0.5, %v6489_v45  ;;  %v1767_v27 = vpop.f32.mrb[121].mxu1  ;;  %v1766_v10 = vadd.f32 %v1765_v42, %v6354_v52 }
 0x2e4   : > { %v6494_v30 = vmul.f32 %v2191_v38, %v2159_v53  ;;  %2333 = vrot.lane.b32.xlu0 %v2159_v53, %s4726_s28 }
 0x2e5   : > { %4687 = vtanh.f32 %v2067_v32  ;;  %2335 = vrot.lane.b32.xlu1 %v2160_v1, %s4726_s28  ;;  %v6498_v21 = vmul.f32 %v2192_v5, %v2160_v1  ;;  %v2193_v32 = vmul.f32 1.6765325, %v6470_v12 }
 0x2e6   : > { %7473 = vst [vmem:[#allocation100_spill] sm:$0xff] %v6494_v30  ;;  %4689 = vtanh.f32 %v2068_v18  ;;  %v1770_v25 = vpop.f32.mrb[122].mxu1  ;;  %v4203_v43 = vpop.f32.mrb[132].mxu0  ;;  %v2194_v18 = vmul.f32 1.6765325, %v6473_v14 }
 0x2e7   : > { %7474 = vst [vmem:[#allocation101_spill] sm:$0xff] %v6498_v21  ;;  %v4684_v54 = vpop.eup %4683  ;;  %v1771_v22 = vadd.f32 %v1770_v25, %v6354_v52  ;;  %v1772_v60 = vpop.f32.mrb[123].mxu1 }
 0x2e8   : > { %v4686_v17 = vpop.eup %4685  ;;  %v1990_v27 = vpop.f32.mrb[133].mxu0  ;;  %v2129_v38 = vadd.f32 1.0, %v4684_v54 }
 0x2e9   : > { %v6502_v16 = vadd.f32 %v1990_v27, %v1766_v10  ;;  %v2130_v53 = vadd.f32 1.0, %v4686_v17  ;;  %v6505_v20 = vadd.f32 %v4203_v43, %v1771_v22 }
 0x2ea   : > { %v2161_v1 = vmul.f32 0.5, %v2129_v38  ;;  %v1775_v42 = vpop.f32.mrb[124].mxu1 }
 0x2eb   : > { %v2069_v5 = vmul.f32 0.5, %v6502_v16  ;;  %v2162_v26 = vmul.f32 0.5, %v2130_v53  ;;  %v2070_v7 = vmul.f32 0.5, %v6505_v20  ;;  %v1777_v25 = vpop.f32.mrb[125].mxu1  ;;  %v1776_v17 = vadd.f32 %v1775_v42, %v6354_v52 }
 0x2ec   : > { %2337 = vrot.lane.b32.xlu1 %v2161_v1, %s4726_s28  ;;  %v6511_v54 = vmul.f32 %v2193_v32, %v2161_v1  ;;  %v2195_v1 = vmul.f32 1.6765325, %v6486_v19 }
 0x2ed   : > { %4691 = vtanh.f32 %v2069_v5  ;;  %v6513_v10 = vmul.f32 %v2194_v18, %v2162_v26  ;;  %v2196_v5 = vmul.f32 1.6765325, %v6489_v45 }
 0x2ee   : > { %7475 = vst [vmem:[#allocation102_spill] sm:$0xff] %v6511_v54  ;;  %4693 = vtanh.f32 %v2070_v7  ;;  %v1780_v22 = vpop.f32.mrb[126].mxu1  ;;  %v4206_v60 = vpop.f32.mrb[134].mxu0 }
 0x2ef   : > { %7476 = vst [vmem:[#allocation103_spill] sm:$0xff] %v6513_v10  ;;  %v4688_v43 = vpop.eup %4687  ;;  %v1781_v38 = vadd.f32 %v1780_v22, %v6354_v52  ;;  %v1782_v53 = vpop.f32.mrb[127].mxu1 }
 0x2f0   : > { %v4690_v27 = vpop.eup %4689  ;;  %v2000_v51 = vpop.f32.mrb[135].mxu0  ;;  %2339 = vrot.lane.b32.xlu1 %v2162_v26, %s4726_s28  ;;  %v2131_v25 = vadd.f32 1.0, %v4688_v43 }
 0x2f1   : > { %v6518_v2 = vadd.f32 %v2000_v51, %v1776_v17  ;;  %v2132_v32 = vadd.f32 1.0, %v4690_v27  ;;  %v6521_v18 = vadd.f32 %v4206_v60, %v1781_v38 }
 0x2f2   : > { %v2163_v7 = vmul.f32 0.5, %v2131_v25  ;;  %v1785_v48 = vpop.f32.mrb[128].mxu1 }
 0x2f3   : > { %v2071_v42 = vmul.f32 0.5, %v6518_v2  ;;  %v2164_v40 = vmul.f32 0.5, %v2132_v32  ;;  %v2072_v22 = vmul.f32 0.5, %v6521_v18  ;;  %v1787_v53 = vpop.f32.mrb[129].mxu1  ;;  %v1786_v43 = vadd.f32 %v1785_v48, %v6354_v52 }
 0x2f4   : > { %v6526_v56 = vmul.f32 %v2195_v1, %v2163_v7  ;;  %2341 = vrot.lane.b32.xlu1 %v2163_v7, %s4726_s28  ;;  %v2198_v48 = vmul.f32 1.6765325, %v6505_v20 }
 0x2f5   : > { %4695 = vtanh.f32 %v2071_v42  ;;  %v6529_v51 = vmul.f32 %v2196_v5, %v2164_v40  ;;  %v2197_v5 = vmul.f32 1.6765325, %v6502_v16 }
 0x2f6   : > { %7477 = vst [vmem:[#allocation104_spill] sm:$0xff] %v6526_v56  ;;  %4697 = vtanh.f32 %v2072_v22  ;;  %v1790_v17 = vpop.f32.mrb[130].mxu1  ;;  %v4209_v60 = vpop.f32.mrb[136].mxu0 }
 0x2f7   : > { %7478 = vst [vmem:[#allocation105_spill] sm:$0xff] %v6529_v51  ;;  %v4692_v26 = vpop.eup %4691  ;;  %v1791_v38 = vadd.f32 %v1790_v17, %v6354_v52  ;;  %v1792_v25 = vpop.f32.mrb[131].mxu1 }
 0x2f8   : > { %v4694_v27 = vpop.eup %4693  ;;  %v2010_v32 = vpop.f32.mrb[137].mxu0  ;;  %2343 = vrot.lane.b32.xlu1 %v2164_v40, %s4726_s28  ;;  %v2133_v1 = vadd.f32 1.0, %v4692_v26 }
 0x2f9   : > { %v6534_v53 = vadd.f32 %v2010_v32, %v1786_v43  ;;  %v2134_v7 = vadd.f32 1.0, %v4694_v27  ;;  %v6537_v42 = vadd.f32 %v4209_v60, %v1791_v38 }
 0x2fa   : > { %v2165_v22 = vmul.f32 0.5, %v2133_v1  ;;  %v1795_v51 = vpop.f32.mrb[132].mxu1 }
 0x2fb   : > { %v2073_v55 = vmul.f32 0.5, %v6534_v53  ;;  %v2166_v56 = vmul.f32 0.5, %v2134_v7  ;;  %v2074_v17 = vmul.f32 0.5, %v6537_v42  ;;  %v1797_v25 = vpop.f32.mrb[133].mxu1  ;;  %v1796_v43 = vadd.f32 %v1795_v51, %v6354_v52 }
 0x2fc   : > { %v6542_v10 = vmul.f32 %v2197_v5, %v2165_v22  ;;  %2345 = vrot.lane.b32.xlu1 %v2165_v22, %s4726_s28  ;;  %v2200_v51 = vmul.f32 1.6765325, %v6521_v18 }
 0x2fd   : > { %4699 = vtanh.f32 %v2073_v55  ;;  %v6545_v40 = vmul.f32 %v2198_v48, %v2166_v56  ;;  %v2199_v55 = vmul.f32 1.6765325, %v6518_v2 }
 0x2fe   : > { %7479 = vst [vmem:[#allocation106_spill] sm:$0xff] %v6542_v10  ;;  %4701 = vtanh.f32 %v2074_v17  ;;  %v1800_v60 = vpop.f32.mrb[134].mxu1  ;;  %v4212_v27 = vpop.f32.mrb[138].mxu0 }
 0x2ff   : > { %7480 = vst [vmem:[#allocation107_spill] sm:$0xff] %v6545_v40  ;;  %v4696_v26 = vpop.eup %4695  ;;  %v1801_v32 = vadd.f32 %v1800_v60, %v6354_v52  ;;  %v1802_v1 = vpop.f32.mrb[135].mxu1 }
 0x300   : > { %v4698_v38 = vpop.eup %4697  ;;  %v2020_v7 = vpop.f32.mrb[139].mxu0  ;;  %2347 = vrot.lane.b32.xlu1 %v2166_v56, %s4726_s28  ;;  %v2135_v5 = vadd.f32 1.0, %v4696_v26 }
 0x301   : > { %v6550_v25 = vadd.f32 %v2020_v7, %v1796_v43  ;;  %v2136_v22 = vadd.f32 1.0, %v4698_v38  ;;  %v6553_v48 = vadd.f32 %v4212_v27, %v1801_v32 }
 0x302   : > { %v2167_v17 = vmul.f32 0.5, %v2135_v5  ;;  %v1805_v10 = vpop.f32.mrb[136].mxu1 }
 0x303   : > { %v2075_v40 = vmul.f32 0.5, %v6550_v25  ;;  %v2168_v54 = vmul.f32 0.5, %v2136_v22  ;;  %v2076_v60 = vmul.f32 0.5, %v6553_v48  ;;  %v1807_v1 = vpop.f32.mrb[137].mxu1  ;;  %v1806_v43 = vadd.f32 %v1805_v10, %v6354_v52 }
 0x304   : > { %v6558_v21 = vmul.f32 %v2199_v55, %v2167_v17  ;;  %2349 = vrot.lane.b32.xlu1 %v2167_v17, %s4726_s28  ;;  %v2202_v10 = vmul.f32 1.6765325, %v6537_v42 }
 0x305   : > { %4703 = vtanh.f32 %v2075_v40  ;;  %v6561_v56 = vmul.f32 %v2200_v51, %v2168_v54  ;;  %v2201_v40 = vmul.f32 1.6765325, %v6534_v53 }
 0x306   : > { %7481 = vst [vmem:[#allocation108_spill] sm:$0xff] %v6558_v21  ;;  %4705 = vtanh.f32 %v2076_v60  ;;  %v1810_v27 = vpop.f32.mrb[138].mxu1  ;;  %v4215_v38 = vpop.f32.mrb[140].mxu0 }
 0x307   : > { %7482 = vst [vmem:[#allocation109_spill] sm:$0xff] %v6561_v56  ;;  %v4700_v26 = vpop.eup %4699  ;;  %v1811_v7 = vadd.f32 %v1810_v27, %v6354_v52  ;;  %v1812_v5 = vpop.f32.mrb[139].mxu1 }
 0x308   : > { %v4702_v32 = vpop.eup %4701  ;;  %v2030_v22 = vpop.f32.mrb[141].mxu0  ;;  %2351 = vrot.lane.b32.xlu1 %v2168_v54, %s4726_s28  ;;  %v2137_v55 = vadd.f32 1.0, %v4700_v26 }
 0x309   : > { %v6566_v1 = vadd.f32 %v2030_v22, %v1806_v43  ;;  %v2138_v17 = vadd.f32 1.0, %v4702_v32  ;;  %v6569_v51 = vadd.f32 %v4215_v38, %v1811_v7 }
 0x30a   : > { %v2169_v60 = vmul.f32 0.5, %v2137_v55  ;;  %v1815_v21 = vpop.f32.mrb[140].mxu1 }
 0x30b   : > { %v2077_v56 = vmul.f32 0.5, %v6566_v1  ;;  %v2170_v30 = vmul.f32 0.5, %v2138_v17  ;;  %v2078_v27 = vmul.f32 0.5, %v6569_v51  ;;  %v1817_v5 = vpop.f32.mrb[141].mxu1  ;;  %v1816_v43 = vadd.f32 %v1815_v21, %v6354_v52 }
 0x30c   : > { %v6574_v57 = vmul.f32 %v2201_v40, %v2169_v60  ;;  %2353 = vrot.lane.b32.xlu1 %v2169_v60, %s4726_s28  ;;  %v2204_v21 = vmul.f32 1.6765325, %v6553_v48 }
 0x30d   : > { %4707 = vtanh.f32 %v2077_v56  ;;  %v6577_v54 = vmul.f32 %v2202_v10, %v2170_v30  ;;  %v2203_v56 = vmul.f32 1.6765325, %v6550_v25 }
 0x30e   : > { %7483 = vst [vmem:[#allocation110_spill] sm:$0xff] %v6574_v57  ;;  %4709 = vtanh.f32 %v2078_v27  ;;  %v1820_v38 = vpop.f32.mrb[142].mxu1  ;;  %v4218_v32 = vpop.f32.mrb[142].mxu0 }
 0x30f   : > { %7484 = vst [vmem:[#allocation111_spill] sm:$0xff] %v6577_v54  ;;  %v4704_v26 = vpop.eup %4703  ;;  %v1821_v22 = vadd.f32 %v1820_v38, %v6354_v52  ;;  %v1822_v55 = vpop.f32.mrb[143].mxu1 }
 0x310   : > { %v4706_v7 = vpop.eup %4705  ;;  %2355 = vrot.lane.b32.xlu1 %v2170_v30, %s4726_s28  ;;  %v2040_v17 = vpop.f32.mrb[143].mxu0  ;;  %v2139_v40 = vadd.f32 1.0, %v4704_v26 }
 0x311   : > { %v6582_v5 = vadd.f32 %v2040_v17, %v1816_v43  ;;  %v2140_v60 = vadd.f32 1.0, %v4706_v7  ;;  %v6585_v10 = vadd.f32 %v4218_v32, %v1821_v22  ;;  %v2205_v22 = vmul.f32 1.6765325, %v6566_v1 }
 0x312   : > { %v2171_v27 = vmul.f32 0.5, %v2139_v40  ;;  %v2206_v17 = vmul.f32 1.6765325, %v6569_v51 }
 0x313   : > { %v2079_v54 = vmul.f32 0.5, %v6582_v5  ;;  %v2172_v57 = vmul.f32 0.5, %v2140_v60  ;;  %v2080_v52 = vmul.f32 0.5, %v6585_v10 }
 0x314   : > { %v6590_v38 = vmul.f32 %v2203_v56, %v2171_v27  ;;  %2357 = vrot.lane.b32.xlu1 %v2171_v27, %s4726_s28 }
 0x315   : > { %4711 = vtanh.f32 %v2079_v54  ;;  %v6593_v30 = vmul.f32 %v2204_v21, %v2172_v57  ;;  %v2241_v54 = vmul.f32 1.8462286, %v6358_v36  ;;  %v2208_v36 = vmul.f32 1.6765325, %v6585_v10 }
 0x316   : > { %4713 = vtanh.f32 %v2080_v52 }
 0x317   : > { %v4708_v26 = vpop.eup %4707 }
 0x318   : > { %v4710_v43 = vpop.eup %4709  ;;  %2359 = vrot.lane.b32.xlu1 %v2172_v57, %s4726_s28  ;;  %v2141_v32 = vadd.f32 1.0, %v4708_v26 }
 0x319   : > { %v2142_v7 = vadd.f32 1.0, %v4710_v43 }
 0x31a   : > { %v2173_v55 = vmul.f32 0.5, %v2141_v32  ;;  %v2242_v32 = vmul.f32 1.8462286, %v6360_v0 }
 0x31b   : > { %v2174_v40 = vmul.f32 0.5, %v2142_v7 }
 0x31c   : > { %v6598_v60 = vmul.f32 %v2205_v22, %v2173_v55  ;;  %2361 = vrot.lane.b32.xlu1 %v2173_v55, %s4726_s28  ;;  %v2207_v22 = vmul.f32 1.6765325, %v6582_v5 }
 0x31d   : > { %v6602_v56 = vmul.f32 %v2206_v17, %v2174_v40  ;;  %v2306_v27 = vpop.permute.xlu0 %2305 }
 0x31e   : > { %v2401_v52 = vmul.f32 %v2306_v27, %v2241_v54  ;;  %v2308_v26 = vpop.permute.xlu1 %2307 }
 0x31f   : > { %7485 = vst [vmem:[#allocation112_spill] sm:$0xff] %v6602_v56  ;;  %v4712_v21 = vpop.eup %4711  ;;  %v2402_v17 = vmul.f32 %v2308_v26, %v2242_v32 }
 0x320   : > { %v4714_v57 = vpop.eup %4713  ;;  %2363 = vrot.lane.b32.xlu1 %v2174_v40, %s4726_s28  ;;  %v2143_v43 = vadd.f32 1.0, %v4712_v21  ;;  %2465 = vrot.lane.b32.xlu0 %v2401_v52, %s4724_s25  ;;  %v2243_v40 = vmul.f32 1.8462286, %v6366_v34  ;;  %v2246_v34 = vmul.f32 1.8462286, %v6377_v46 }
 0x321   : > { %v2144_v7 = vadd.f32 1.0, %v4714_v57  ;;  %v2244_v57 = vmul.f32 1.8462286, %v6368_v41 }
 0x322   : > { %v2175_v55 = vmul.f32 0.5, %v2143_v43  ;;  %v2245_v43 = vmul.f32 1.8462286, %v6374_v3 }
 0x323   : > { %v2176_v56 = vmul.f32 0.5, %v2144_v7 }
 0x324   : > { %2365 = vrot.lane.b32.xlu1 %v2175_v55, %s4726_s28  ;;  %v6610_v54 = vmul.f32 %v2207_v22, %v2175_v55  ;;  %2467 = vrot.lane.b32.xlu0 %v2402_v17, %s4724_s25 }
 0x325   : > { %v6614_v27 = vmul.f32 %v2208_v36, %v2176_v56  ;;  %v2310_v0 = vpop.permute.xlu0 %2309 }
 0x326   : > { %v2403_v21 = vmul.f32 %v2310_v0, %v2243_v40  ;;  %v2312_v52 = vpop.permute.xlu1 %2311  ;;  %v2248_v40 = vmul.f32 1.8462286, %v6393_v11  ;;  %v2249_v0 = vmul.f32 1.8462286, %v6406_v4 }
 0x327   : > { %v2404_v26 = vmul.f32 %v2312_v52, %v2244_v57  ;;  %v2250_v57 = vmul.f32 1.8462286, %v6409_v44 }
 0x328   : > { %2367 = vrot.lane.b32.xlu1 %v2176_v56, %s4726_s28  ;;  %2469 = vrot.lane.b32.xlu0 %v2403_v21, %s4724_s25  ;;  %v2247_v56 = vmul.f32 1.8462286, %v6390_v28 }
 0x32c   : > { %2471 = vrot.lane.b32.xlu0 %v2404_v26, %s4724_s25  ;;  %v2251_v26 = vmul.f32 1.8462286, %v6422_v61 }
 0x32e   : > { %v2314_v32 = vpop.permute.xlu0 %2313 }
 0x32f   : > { %v2405_v7 = vmul.f32 %v2314_v32, %v2245_v43  ;;  %v2316_v22 = vpop.permute.xlu1 %2315 }
 0x330   : > { %v2406_v55 = vmul.f32 %v2316_v22, %v2246_v34  ;;  %v2253_v22 = vmul.f32 1.8462286, %v6438_v62 }
 0x331   : > { %2473 = vrot.lane.b32.xlu0 %v2405_v7, %s4724_s25  ;;  %v2252_v7 = vmul.f32 1.8462286, %v6425_v6 }
 0x335   : > { %2475 = vrot.lane.b32.xlu0 %v2406_v55, %s4724_s25 }
 0x336   : > { %v2318_v41 = vpop.permute.xlu0 %2317 }
 0x337   : > { %v2407_v36 = vmul.f32 %v2318_v41, %v2247_v56  ;;  %v2320_v17 = vpop.permute.xlu1 %2319  ;;  %v2254_v56 = vmul.f32 1.8462286, %v6441_v9  ;;  %v2255_v41 = vmul.f32 1.8462286, %v6454_v59 }
 0x338   : > { %v2408_v3 = vmul.f32 %v2320_v17, %v2248_v40  ;;  %v2256_v40 = vmul.f32 1.8462286, %v6457_v63 }
 0x339   : > { %2477 = vrot.lane.b32.xlu0 %v2407_v36, %s4724_s25 }
 0x33d   : > { %2479 = vrot.lane.b32.xlu0 %v2408_v3, %s4724_s25  ;;  %v2257_v3 = vmul.f32 1.8462286, %v6470_v12 }
 0x33e   : > { %v2322_v46 = vpop.permute.xlu0 %2321 }
 0x33f   : > { %v2409_v21 = vmul.f32 %v2322_v46, %v2249_v0  ;;  %v2324_v52 = vpop.permute.xlu1 %2323  ;;  %v2258_v46 = vmul.f32 1.8462286, %v6473_v14 }
 0x340   : > { %v2410_v28 = vmul.f32 %v2324_v52, %v2250_v57  ;;  %v2259_v52 = vmul.f32 1.8462286, %v6486_v19 }
 0x341   : > { %2481 = vrot.lane.b32.xlu0 %v2409_v21, %s4724_s25 }
 0x345   : > { %2483 = vrot.lane.b32.xlu0 %v2410_v28, %s4724_s25  ;;  %v2260_v28 = vmul.f32 1.8462286, %v6489_v45 }
 0x346   : > { %v2326_v11 = vpop.permute.xlu0 %2325 }
 0x347   : > { %v2411_v43 = vmul.f32 %v2326_v11, %v2251_v26  ;;  %v2328_v32 = vpop.permute.xlu1 %2327  ;;  %v2261_v11 = vmul.f32 1.8462286, %v6502_v16 }
 0x348   : > { %v2412_v4 = vmul.f32 %v2328_v32, %v2252_v7  ;;  %v2262_v32 = vmul.f32 1.8462286, %v6505_v20 }
 0x349   : > { %2485 = vrot.lane.b32.xlu0 %v2411_v43, %s4724_s25 }
 0x34d   : > { %2487 = vrot.lane.b32.xlu0 %v2412_v4, %s4724_s25  ;;  %v2263_v4 = vmul.f32 1.8462286, %v6518_v2 }
 0x34e   : > { %v2330_v44 = vpop.permute.xlu0 %2329 }
 0x34f   : > { %v2413_v34 = vmul.f32 %v2330_v44, %v2253_v22  ;;  %v2332_v55 = vpop.permute.xlu1 %2331  ;;  %v2264_v44 = vmul.f32 1.8462286, %v6521_v18 }
 0x350   : > { %v2414_v61 = vmul.f32 %v2332_v55, %v2254_v56  ;;  %v2265_v55 = vmul.f32 1.8462286, %v6534_v53 }
 0x351   : > { %2489 = vrot.lane.b32.xlu0 %v2413_v34, %s4724_s25 }
 0x355   : > { %2491 = vrot.lane.b32.xlu0 %v2414_v61, %s4724_s25  ;;  %v2266_v61 = vmul.f32 1.8462286, %v6537_v42 }
 0x356   : > { %v2334_v6 = vpop.permute.xlu0 %2333 }
 0x357   : > { %v2415_v36 = vmul.f32 %v2334_v6, %v2255_v41  ;;  %v2336_v17 = vpop.permute.xlu1 %2335  ;;  %v2267_v6 = vmul.f32 1.8462286, %v6550_v25 }
 0x358   : > { %v2416_v62 = vmul.f32 %v2336_v17, %v2256_v40  ;;  %v2268_v17 = vmul.f32 1.8462286, %v6553_v48 }
 0x359   : > { %2493 = vrot.lane.b32.xlu0 %v2415_v36, %s4724_s25 }
 0x35d   : > { %2495 = vrot.lane.b32.xlu0 %v2416_v62, %s4724_s25  ;;  %v2269_v62 = vmul.f32 1.8462286, %v6566_v1 }
 0x35e   : > { %v2338_v9 = vpop.permute.xlu1 %2337 }
 0x35f   : > { %v2417_v0 = vmul.f32 %v2338_v9, %v2257_v3  ;;  %v2270_v9 = vmul.f32 1.8462286, %v6569_v51  ;;  %v356_v51 = vld [vmem:[%s7205_s3 + $0x18] sm:$0xff] }
 0x361   : > { %2497 = vrot.lane.b32.xlu0 %v2417_v0, %s4724_s25  ;;  %v418_v0 = vld [vmem:[%s7205_s3 + $0x208] sm:$0xff] }
 0x362   : > { %v2340_v21 = vpop.permute.xlu1 %2339 }
 0x363   : > { %v2418_v59 = vmul.f32 %v2340_v21, %v2258_v46  ;;  %v420_v21 = vld [vmem:[%s7205_s3 + $0x218] sm:$0xff] }
 0x365   : > { %2499 = vrot.lane.b32.xlu1 %v2418_v59, %s4724_s25  ;;  %v354_v59 = vld [vmem:[%s7205_s3 + $0x8] sm:$0xff] }
 0x366   : > { %v2342_v63 = vpop.permute.xlu1 %2341 }
 0x367   : > { %v2419_v57 = vmul.f32 %v2342_v63, %v2259_v52  ;;  %v4595_v52 = vpack.c.bf16 %v420_v21, %v418_v0  ;;  %v2271_v63 = vmul.f32 1.8462286, %v6582_v5  ;;  %v374_v21 = vld [vmem:[%s7205_s3 + $0xa8] sm:$0xff] }
 0x369   : > { %2501 = vrot.lane.b32.xlu0 %v2419_v57, %s4724_s25  ;;  %4596 = vmatprep.subr.bf16.mxu1 %v4595_v52 }
 0x36a   : > { %v2344_v26 = vpop.permute.xlu1 %2343 }
 0x36b   : > { %v2420_v12 = vmul.f32 %v2344_v26, %v2260_v28  ;;  %v424_v28 = vld [vmem:[%s7205_s3 + $0x238] sm:$0xff] }
 0x36d   : > { %2503 = vrot.lane.b32.xlu1 %v2420_v12, %s4724_s25 }
 0x36e   : > { %v2346_v43 = vpop.permute.xlu1 %2345 }
 0x36f   : > { %v2421_v14 = vmul.f32 %v2346_v43, %v2261_v11  ;;  %v4548_v11 = vpack.c.bf16 %v356_v51, %v354_v59 }
 0x371   : > { %2505 = vrot.lane.b32.xlu0 %v2421_v14, %s4724_s25  ;;  %v358_v14 = vld [vmem:[%s7205_s3 + $0x28] sm:$0xff] }
 0x372   : > { %v2348_v7 = vpop.permute.xlu1 %2347 }
 0x373   : > { %v2422_v19 = vmul.f32 %v2348_v7, %v2262_v32  ;;  %v360_v32 = vld [vmem:[%s7205_s3 + $0x38] sm:$0xff]  ;;  %v2272_v7 = vmul.f32 1.8462286, %v6585_v10 }
 0x375   : > { %2507 = vrot.lane.b32.xlu1 %v2422_v19, %s4724_s25  ;;  %v426_v19 = vld [vmem:[%s7205_s3 + $0x248] sm:$0xff] }
 0x376   : > { %v2350_v22 = vpop.permute.xlu1 %2349 }
 0x377   : > { %v2423_v45 = vmul.f32 %v2350_v22, %v2263_v4 }
 0x379   : > { %2509 = vrot.lane.b32.xlu0 %v2423_v45, %s4724_s25 }
 0x37a   : > { %v2352_v34 = vpop.permute.xlu1 %2351 }
 0x37b   : > { %v2424_v16 = vmul.f32 %v2352_v34, %v2264_v44  ;;  %v4551_v44 = vpack.c.bf16 %v360_v32, %v358_v14 }
 0x37d   : > { %2511 = vrot.lane.b32.xlu1 %v2424_v16, %s4724_s25  ;;  %v362_v16 = vld [vmem:[%s7205_s3 + $0x48] sm:$0xff] }
 0x37e   : > { %v2354_v56 = vpop.permute.xlu1 %2353 }
 0x37f   : > { %v2425_v20 = vmul.f32 %v2354_v56, %v2265_v55  ;;  %v364_v55 = vld [vmem:[%s7205_s3 + $0x58] sm:$0xff]  ;;  %v430_v56 = vld [vmem:[%s7205_s3 + $0x268] sm:$0xff] }
 0x381   : > { %2513 = vrot.lane.b32.xlu0 %v2425_v20, %s4724_s25 }
 0x382   : > { %v2356_v41 = vpop.permute.xlu1 %2355 }
 0x383   : > { %v2426_v2 = vmul.f32 %v2356_v41, %v2266_v61  ;;  %v4554_v41 = vpack.c.bf16 %v364_v55, %v362_v16  ;;  %v400_v16 = vld [vmem:[%s7205_s3 + $0x178] sm:$0xff] }
 0x385   : > { %2515 = vrot.lane.b32.xlu1 %v2426_v2, %s4724_s25  ;;  %v434_v2 = vld [vmem:[%s7205_s3 + $0x288] sm:$0xff] }
 0x386   : > { %v2358_v36 = vpop.permute.xlu1 %2357 }
 0x387   : > { %v2427_v18 = vmul.f32 %v2358_v36, %v2267_v6  ;;  %v436_v6 = vld [vmem:[%s7205_s3 + $0x298] sm:$0xff] }
 0x389   : > { %2517 = vrot.lane.b32.xlu0 %v2427_v18, %s4724_s25  ;;  %v366_v18 = vld [vmem:[%s7205_s3 + $0x68] sm:$0xff] }
 0x38a   : > { %v2360_v40 = vpop.permute.xlu1 %2359 }
 0x38b   : > { %v2428_v53 = vmul.f32 %v2360_v40, %v2268_v17  ;;  %v368_v17 = vld [vmem:[%s7205_s3 + $0x78] sm:$0xff]  ;;  %v4611_v40 = vpack.c.bf16 %v436_v6, %v434_v2  ;;  %v406_v6 = vld [vmem:[%s7205_s3 + $0x1a8] sm:$0xff] }
 0x38d   : > { %2519 = vrot.lane.b32.xlu1 %v2428_v53, %s4724_s25  ;;  %v4557_v53 = vpack.c.bf16 %v368_v17, %v366_v18 }
 0x38e   : > { %v2362_v3 = vpop.permute.xlu1 %2361 }
 0x38f   : > { %v2429_v42 = vmul.f32 %v2362_v3, %v2269_v62  ;;  %v438_v62 = vld [vmem:[%s7205_s3 + $0x2a8] sm:$0xff]  ;;  %v440_v3 = vld [vmem:[%s7205_s3 + $0x2b8] sm:$0xff] }
 0x390   : > { %v4615_v0 = vpack.c.bf16 %v440_v3, %v438_v62  ;;  %v412_v62 = vld [vmem:[%s7205_s3 + $0x1d8] sm:$0xff] }
 0x391   : > { %2521 = vrot.lane.b32.xlu0 %v2429_v42, %s4724_s25 }
 0x392   : > { %v2364_v25 = vpop.permute.xlu1 %2363  ;;  %v2466_v48 = vpop.permute.xlu0 %2465 }
 0x393   : > { %v2430_v46 = vmul.f32 %v2364_v25, %v2270_v9  ;;  %v2562_v1 = vsel %vm2561_vm3, %v6383_v33, %v2466_v48  ;;  %v422_v33 = vld [vmem:[%s7205_s3 + $0x228] sm:$0xff]  ;;  %v372_v25 = vld [vmem:[%s7205_s3 + $0x98] sm:$0xff] }
 0x394   : > { %3935 = vmatmul.mubr.msk.f32.vlgmr.msra.gmra.mrb[144].mxu1 %vm579_vm1, %v2562_v1  ;;  %4239 = vmatprep.mubr.msk.f32.mxu0 %vm579_vm1, %v2562_v1  ;;  %v4599_v43 = vpack.c.bf16 %v424_v28, %v422_v33  ;;  %v370_v9 = vld [vmem:[%s7205_s3 + $0x88] sm:$0xff]  ;;  %v376_v1 = vld [vmem:[%s7205_s3 + $0xb8] sm:$0xff] }
 0x395   : > { %2523 = vrot.lane.b32.xlu1 %v2430_v46, %s4724_s25  ;;  %2760 = vmatprep.mubr.f32.mxu1 %v7470_v49  ;;  %v4560_v46 = vpack.c.bf16 %v372_v25, %v370_v9  ;;  %v382_v28 = vld [vmem:[%s7205_s3 + $0xe8] sm:$0xff]  ;;  %v7488_v9 = vld [vmem:[#allocation101_spill] sm:$0xff] }
 0x396   : > { %v2366_v57 = vpop.permute.xlu1 %2365  ;;  %v2468_v12 = vpop.permute.xlu0 %2467  ;;  %4598 = vmatpush3.bf16.msra.mxu1 %v4595_v52  ;;  %v378_v52 = vld [vmem:[%s7205_s3 + $0xc8] sm:$0xff] }
 0x397   : > { %v2431_v26 = vmul.f32 %v2366_v57, %v2271_v63  ;;  %v2563_v5 = vsel %vm2561_vm3, %v6386_v15, %v2468_v12  ;;  %v428_v15 = vld [vmem:[%s7205_s3 + $0x258] sm:$0xff]  ;;  %4600 = vmatprep.subr.bf16.mxu1 %v4599_v43 }
 0x398   : > { %3936 = vmatmul.mubr.msk.f32.gmra.mrb[146].mxu1 %vm579_vm1, %v2563_v5  ;;  %4240 = vmatmul.mubr.msk.f32.vlgmr.msra.gmra.mrb[144].mxu0 %vm579_vm1, %v2563_v5  ;;  %v4603_v34 = vpack.c.bf16 %v428_v15, %v426_v19  ;;  %v380_v63 = vld [vmem:[%s7205_s3 + $0xd8] sm:$0xff] }
 0x399   : > { %2525 = vrot.lane.b32.xlu0 %v2431_v26, %s4724_s25  ;;  %2766 = vmatprep.mubr.f32.mxu1 %v7470_v49  ;;  %v384_v26 = vld [vmem:[%s7205_s3 + $0xf8] sm:$0xff] }
 0x39a   : > { %v2368_v4 = vpop.permute.xlu1 %2367  ;;  %v2470_v45 = vpop.permute.xlu0 %2469  ;;  %4549 = vmatpush1.bf16.msra.mxu0 %v4548_v11  ;;  %4602 = vmatpush3.bf16.msra.mxu1 %v4599_v43  ;;  %v4569_v11 = vpack.c.bf16 %v384_v26, %v382_v28  ;;  %v386_v43 = vld [vmem:[%s7205_s3 + $0x108] sm:$0xff]  ;;  %v388_v5 = vld [vmem:[%s7205_s3 + $0x118] sm:$0xff] }
 0x39b   : > { %v2432_v22 = vmul.f32 %v2368_v4, %v2272_v7  ;;  %v2564_v10 = vsel %vm2561_vm3, %v6398_v24, %v2470_v45  ;;  %4550 = vmatprep.subr.bf16.mxu0 %v7370_v31  ;;  %v432_v24 = vld [vmem:[%s7205_s3 + $0x278] sm:$0xff]  ;;  %4604 = vmatprep.subr.bf16.mxu1 %v4603_v34  ;;  %v4572_v32 = vpack.c.bf16 %v388_v5, %v386_v43  ;;  %v390_v7 = vld [vmem:[%s7205_s3 + $0x128] sm:$0xff] }
 0x39c   : > { %3937 = vmatmul.mubr.msk.f32.gmra.mrb[148].mxu1 %vm579_vm1, %v2564_v10  ;;  %4242 = vmatprep.mubr.msk.f32.mxu0 %vm579_vm1, %v2564_v10  ;;  %v4607_v20 = vpack.c.bf16 %v432_v24, %v430_v56  ;;  %v392_v19 = vld [vmem:[%s7205_s3 + $0x138] sm:$0xff]  ;;  %v398_v10 = vld [vmem:[%s7205_s3 + $0x168] sm:$0xff] }
 0x39d   : > { %2527 = vrot.lane.b32.xlu1 %v2432_v22, %s4724_s25  ;;  %2772 = vmatprep.mubr.f32.mxu1 %v7470_v49  ;;  %v4575_v4 = vpack.c.bf16 %v392_v19, %v390_v7  ;;  %v394_v22 = vld [vmem:[%s7205_s3 + $0x148] sm:$0xff]  ;;  %v396_v45 = vld [vmem:[%s7205_s3 + $0x158] sm:$0xff]  ;;  %v4581_v56 = vpack.c.bf16 %v400_v16, %v398_v10  ;;  %v7495_v7 = vld [vmem:[#allocation108_spill] sm:$0xff] }
 0x39e   : > { %v2472_v61 = vpop.permute.xlu0 %2471  ;;  %4552 = vmatpush1.bf16.msra.mxu0 %v4551_v44  ;;  %4606 = vmatpush3.bf16.msra.mxu1 %v4603_v34  ;;  %v4578_v34 = vpack.c.bf16 %v396_v45, %v394_v22  ;;  %v402_v24 = vld [vmem:[%s7205_s3 + $0x188] sm:$0xff]  ;;  %v416_v5 = vld [vmem:[%s7205_s3 + $0x1f8] sm:$0xff] }
 0x39f   : > { %v2565_v36 = vsel %vm2561_vm3, %v6402_v35, %v2472_v61  ;;  %4553 = vmatprep.subr.bf16.mxu0 %v7370_v31  ;;  %4608 = vmatprep.subr.bf16.mxu1 %v4607_v20  ;;  %v7494_v26 = vld [vmem:[#allocation107_spill] sm:$0xff]  ;;  %v7496_v45 = vld [vmem:[#allocation109_spill] sm:$0xff] }
 0x3a0   : > { %3938 = vmatmul.mubr.msk.f32.gmra.mrb[150].mxu1 %vm579_vm1, %v2565_v36  ;;  %4243 = vmatmul.mubr.msk.f32.gmra.mrb[146].mxu0 %vm579_vm1, %v2565_v36  ;;  %v408_v36 = vld [vmem:[%s7205_s3 + $0x1b8] sm:$0xff]  ;;  %v414_v43 = vld [vmem:[%s7205_s3 + $0x1e8] sm:$0xff] }
 0x3a1   : > { %2778 = vmatprep.mubr.f32.mxu1 %v7470_v49  ;;  %v4587_v17 = vpack.c.bf16 %v408_v36, %v406_v6 }
 0x3a2   : > { %4555 = vmatpush1.bf16.msra.mxu0 %v4554_v41  ;;  %4610 = vmatpush3.bf16.msra.mxu1 %v4607_v20  ;;  %v404_v20 = vld [vmem:[%s7205_s3 + $0x198] sm:$0xff] }
 0x3a3   : > { %v2474_v35 = vpop.permute.xlu0 %2473  ;;  %4556 = vmatprep.subr.bf16.mxu0 %v7370_v31  ;;  %4612 = vmatprep.subr.bf16.mxu1 %v4611_v40  ;;  %v4584_v41 = vpack.c.bf16 %v404_v20, %v402_v24 }
 0x3a4   : > { %v2566_v42 = vsel %vm2561_vm3, %v6414_v50, %v2474_v35 }
 0x3a5   : > { %3939 = vmatmul.mubr.msk.f32.gmra.mrb[152].mxu1 %vm579_vm1, %v2566_v42  ;;  %4245 = vmatprep.mubr.msk.f32.mxu0 %vm579_vm1, %v2566_v42 }
 0x3a6   : > { %2784 = vmatprep.mubr.f32.mxu1 %v7470_v49  ;;  %4558 = vmatpush1.bf16.msra.mxu0 %v4557_v53  ;;  %v410_v53 = vld [vmem:[%s7205_s3 + $0x1c8] sm:$0xff] }
 0x3a7   : > { %v2476_v50 = vpop.permute.xlu0 %2475  ;;  %4559 = vmatprep.subr.bf16.mxu0 %v7370_v31  ;;  %4614 = vmatpush3.bf16.msra.mxu1 %v4611_v40  ;;  %v7487_v40 = vld [vmem:[#allocation100_spill] sm:$0xff]  ;;  %v4590_v42 = vpack.c.bf16 %v412_v62, %v410_v53  ;;  %v7501_v62 = vld [vmem:[#allocation42_spill] sm:$0xff] }
 0x3a8   : > { %v2567_v48 = vsel %vm2561_vm3, %v6418_v58, %v2476_v50  ;;  %4616 = vmatprep.subr.bf16.mxu1 %v4615_v0  ;;  %v4563_v58 = vpack.c.bf16 %v376_v1, %v374_v21  ;;  %v7489_v50 = vld [vmem:[#allocation102_spill] sm:$0xff]  ;;  %v7490_v21 = vld [vmem:[#allocation103_spill] sm:$0xff] }
 0x3a9   : > { %3940 = vmatmul.mubr.msk.f32.gmra.mrb[154].mxu1 %vm579_vm1, %v2567_v48  ;;  %4246 = vmatmul.mubr.msk.f32.gmra.mrb[148].mxu0 %vm579_vm1, %v2567_v48 }
 0x3aa   : > { %2790 = vmatprep.mubr.f32.mxu1 %v7470_v49  ;;  %4561 = vmatpush1.bf16.msra.mxu0 %v4560_v46 }
 0x3ab   : > { %v2478_v59 = vpop.permute.xlu0 %2477  ;;  %4562 = vmatprep.subr.bf16.mxu0 %v7370_v31  ;;  %4618 = vmatpush3.bf16.msra.mxu1 %v4615_v0 }
 0x3ac   : > { %v2568_v51 = vsel %vm2561_vm3, %v6430_v8, %v2478_v59  ;;  %v4566_v8 = vpack.c.bf16 %v380_v63, %v378_v52  ;;  %v7492_v52 = vld [vmem:[#allocation105_spill] sm:$0xff] }
 0x3ad   : > { %3941 = vmatmul.mubr.msk.f32.gmra.mrb[156].mxu1 %vm579_vm1, %v2568_v51  ;;  %4248 = vmatprep.mubr.msk.f32.mxu0 %vm579_vm1, %v2568_v51 }
 0x3ae   : > { %2796 = vmatprep.mubr.f32.mxu1 %v7470_v49  ;;  %4564 = vmatpush1.bf16.msra.mxu0 %v4563_v58  ;;  %v7491_v58 = vld [vmem:[#allocation104_spill] sm:$0xff] }
 0x3af   : > { %v2480_v57 = vpop.permute.xlu0 %2479  ;;  %4565 = vmatprep.subr.bf16.mxu0 %v7370_v31 }
 0x3b0   : > { %v2569_v33 = vsel %vm2561_vm3, %v6434_v13, %v2480_v57 }
 0x3b1   : > { %3942 = vmatmul.mubr.msk.f32.gmra.mrb[158].mxu1 %vm579_vm1, %v2569_v33  ;;  %4249 = vmatmul.mubr.msk.f32.gmra.mrb[150].mxu0 %vm579_vm1, %v2569_v33 }
 0x3b2   : > { %2802 = vmatprep.mubr.f32.mxu1 %v7470_v49  ;;  %4567 = vmatpush1.bf16.msra.mxu0 %v4566_v8  ;;  %v7493_v8 = vld [vmem:[#allocation106_spill] sm:$0xff] }
 0x3b3   : > { %v2482_v12 = vpop.permute.xlu0 %2481  ;;  %4568 = vmatprep.subr.bf16.mxu0 %v7370_v31 }
 0x3b4   : > { %v2570_v13 = vsel %vm2561_vm3, %v6446_v39, %v2482_v12 }
 0x3b5   : > { %3943 = vmatmul.mubr.msk.f32.gmra.mrb[160].mxu1 %vm579_vm1, %v2570_v13  ;;  %4251 = vmatprep.mubr.msk.f32.mxu0 %vm579_vm1, %v2570_v13  ;;  %v444_v13 = vld [vmem:[%s7205_s3 + $0x2d8] sm:$0xff] }
 0x3b6   : > { %2808 = vmatprep.mubr.f32.mxu1 %v7470_v49  ;;  %4570 = vmatpush1.bf16.msra.mxu0 %v4569_v11  ;;  %v442_v11 = vld [vmem:[%s7205_s3 + $0x2c8] sm:$0xff] }
 0x3b7   : > { %v2484_v14 = vpop.permute.xlu0 %2483  ;;  %4571 = vmatprep.subr.bf16.mxu0 %v7370_v31 }
 0x3b8   : > { %v2571_v39 = vsel %vm2561_vm3, %v6450_v29, %v2484_v14  ;;  %v4619_v14 = vpack.c.bf16 %v444_v13, %v442_v11 }
 0x3b9   : > { %3944 = vmatmul.mubr.msk.f32.gmra.mrb[162].mxu1 %vm579_vm1, %v2571_v39  ;;  %4252 = vmatmul.mubr.msk.f32.gmra.mrb[152].mxu0 %vm579_vm1, %v2571_v39 }
 0x3ba   : > { %2814 = vmatprep.mubr.f32.mxu1 %v7470_v49  ;;  %4573 = vmatpush1.bf16.msra.mxu0 %v4572_v32  ;;  %v4593_v32 = vpack.c.bf16 %v416_v5, %v414_v43  ;;  %v7510_v43 = vld [vmem:[#allocation51_spill] sm:$0xff] }
 0x3bb   : > { %v2486_v15 = vpop.permute.xlu0 %2485  ;;  %4574 = vmatprep.subr.bf16.mxu0 %v7370_v31  ;;  %4620 = vmatprep.subr.bf16.mxu1 %v4619_v14 }
 0x3bc   : > { %v2572_v29 = vsel %vm2561_vm3, %v6462_v23, %v2486_v15  ;;  %4622 = vmatpush3.bf16.msra.mxu1 %v4619_v14  ;;  %v446_v15 = vld [vmem:[%s7205_s3 + $0x2e8] sm:$0xff]  ;;  %v7511_v14 = vld [vmem:[#allocation50_spill] sm:$0xff] }
 0x3bd   : > { %3945 = vmatmul.mubr.msk.f32.gmra.mrb[164].mxu1 %vm579_vm1, %v2572_v29  ;;  %4254 = vmatprep.mubr.msk.f32.mxu0 %vm579_vm1, %v2572_v29 }
 0x3be   : > { %2820 = vmatprep.mubr.f32.mxu1 %v7470_v49  ;;  %4576 = vmatpush1.bf16.msra.mxu0 %v4575_v4  ;;  %v448_v4 = vld [vmem:[%s7205_s3 + $0x2f8] sm:$0xff] }
 0x3bf   : > { %v2488_v44 = vpop.permute.xlu0 %2487  ;;  %4577 = vmatprep.subr.bf16.mxu0 %v7370_v31  ;;  %v4623_v29 = vpack.c.bf16 %v448_v4, %v446_v15  ;;  %v7513_v4 = vld [vmem:[#allocation54_spill] sm:$0xff] }
 0x3c0   : > { %v2573_v23 = vsel %vm2561_vm3, %v6466_v37, %v2488_v44 }
 0x3c1   : > { %3946 = vmatmul.mubr.msk.f32.gmra.mrb[166].mxu1 %vm579_vm1, %v2573_v23  ;;  %4255 = vmatmul.mubr.msk.f32.gmra.mrb[154].mxu0 %vm579_vm1, %v2573_v23  ;;  %v7497_v23 = vld [vmem:[#allocation110_spill] sm:$0xff] }
 0x3c2   : > { %2826 = vmatprep.mubr.f32.mxu1 %v7470_v49  ;;  %4579 = vmatpush1.bf16.msra.mxu0 %v4578_v34 }
 0x3c3   : > { %v2490_v55 = vpop.permute.xlu0 %2489  ;;  %4580 = vmatprep.subr.bf16.mxu0 %v7370_v31  ;;  %4624 = vmatprep.subr.bf16.mxu1 %v4623_v29 }
 0x3c4   : > { %v2574_v37 = vsel %vm2561_vm3, %v6478_v47, %v2490_v55  ;;  %v7486_v47 = vld [vmem:[#allocation99_spill] sm:$0xff]  ;;  %4626 = vmatpush3.bf16.msra.mxu1 %v4623_v29 }
 0x3c5   : > { %3947 = vmatmul.mubr.msk.f32.gmra.mrb[168].mxu1 %vm579_vm1, %v2574_v37  ;;  %4257 = vmatprep.mubr.msk.f32.mxu0 %vm579_vm1, %v2574_v37  ;;  %v7498_v55 = vld [vmem:[#allocation111_spill] sm:$0xff] }
 0x3c6   : > { %2832 = vmatprep.mubr.f32.mxu1 %v7470_v49  ;;  %4582 = vmatpush1.bf16.msra.mxu0 %v4581_v56 }
 0x3c7   : > { %v2492_v61 = vpop.permute.xlu0 %2491  ;;  %4583 = vmatprep.subr.bf16.mxu0 %v7370_v31 }
 0x3c8   : > { %v2575_v2 = vsel %vm2561_vm3, %v7486_v47, %v2492_v61 }
 0x3c9   : > { %3948 = vmatmul.mubr.msk.f32.gmra.mrb[170].mxu1 %vm579_vm1, %v2575_v2  ;;  %4258 = vmatmul.mubr.msk.f32.gmra.mrb[156].mxu0 %vm579_vm1, %v2575_v2  ;;  %v7499_v2 = vld [vmem:[#allocation112_spill] sm:$0xff] }
 0x3ca   : > { %2838 = vmatprep.mubr.f32.mxu1 %v7470_v49  ;;  %4585 = vmatpush1.bf16.msra.mxu0 %v4584_v41 }
 0x3cb   : > { %v2494_v18 = vpop.permute.xlu0 %2493  ;;  %4586 = vmatprep.subr.bf16.mxu0 %v7370_v31 }
 0x3cc   : > { %v2576_v35 = vsel %vm2561_vm3, %v7487_v40, %v2494_v18  ;;  %v7500_v40 = vld [vmem:[#allocation23_spill] sm:$0xff] }
 0x3cd   : > { %3949 = vmatmul.mubr.msk.f32.gmra.mrb[172].mxu1 %vm579_vm1, %v2576_v35  ;;  %4260 = vmatprep.mubr.msk.f32.mxu0 %vm579_vm1, %v2576_v35 }
 0x3ce   : > { %2844 = vmatprep.mubr.f32.mxu1 %v7470_v49  ;;  %4588 = vmatpush1.bf16.msra.mxu0 %v4587_v17 }
 0x3cf   : > { %v2496_v3 = vpop.permute.xlu0 %2495  ;;  %4589 = vmatprep.subr.bf16.mxu0 %v7370_v31 }
 0x3d0   : > { %v2577_v25 = vsel %vm2561_vm3, %v7488_v9, %v2496_v3  ;;  %v7502_v9 = vld [vmem:[#allocation25_spill] sm:$0xff] }
 0x3d1   : > { %3950 = vmatmul.mubr.msk.f32.gmra.mrb[174].mxu1 %vm579_vm1, %v2577_v25  ;;  %4261 = vmatmul.mubr.msk.f32.gmra.mrb[158].mxu0 %vm579_vm1, %v2577_v25 }
 0x3d2   : > { %2850 = vmatprep.mubr.f32.mxu1 %v7470_v49  ;;  %4591 = vmatpush1.bf16.msra.mxu0 %v4590_v42 }
 0x3d3   : > { %v2498_v0 = vpop.permute.xlu0 %2497  ;;  %4592 = vmatprep.subr.bf16.mxu0 %v7370_v31 }
 0x3d4   : > { %v2578_v46 = vsel %vm2561_vm3, %v7489_v50, %v2498_v0 }
 0x3d5   : > { %3951 = vmatmul.mubr.msk.f32.gmra.mrb[176].mxu1 %vm579_vm1, %v2578_v46  ;;  %4263 = vmatprep.mubr.msk.f32.mxu0 %vm579_vm1, %v2578_v46 }
 0x3d6   : > { %2856 = vmatprep.mubr.f32.mxu1 %v7470_v49  ;;  %4594 = vmatpush1.bf16.msra.mxu0 %v4593_v32 }
 0x3d7   : > { %v2500_v48 = vpop.permute.xlu1 %2499 }
 0x3d8   : > { %v2579_v1 = vsel %vm2561_vm3, %v7490_v21, %v2500_v48  ;;  %v7505_v21 = vld [vmem:[#allocation44_spill] sm:$0xff] }
 0x3d9   : > { %3952 = vmatmul.mubr.msk.f32.gmra.mrb[178].mxu1 %vm579_vm1, %v2579_v1  ;;  %4264 = vmatmul.mubr.msk.f32.gmra.mrb[160].mxu0 %vm579_vm1, %v2579_v1 }
 0x3da   : > { %2862 = vmatprep.mubr.f32.mxu1 %v7470_v49 }
 0x3db   : > { %v2502_v59 = vpop.permute.xlu0 %2501 }
 0x3dc   : > { %v2580_v31 = vsel %vm2561_vm3, %v7491_v58, %v2502_v59  ;;  %v7506_v58 = vld [vmem:[#allocation27_spill] sm:$0xff] }
 0x3dd   : > { %3953 = vmatmul.mubr.msk.f32.gmra.mrb[180].mxu1 %vm579_vm1, %v2580_v31  ;;  %4266 = vmatprep.mubr.msk.f32.mxu0 %vm579_vm1, %v2580_v31 }
 0x3de   : > { %2868 = vmatprep.mubr.f32.mxu1 %v7470_v49 }
 0x3df   : > { %v2504_v51 = vpop.permute.xlu1 %2503 }
 0x3e0   : > { %v2581_v63 = vsel %vm2561_vm3, %v7492_v52, %v2504_v51  ;;  %v7507_v52 = vld [vmem:[#allocation48_spill] sm:$0xff] }
 0x3e1   : > { %3954 = vmatmul.mubr.msk.f32.gmra.mrb[182].mxu1 %vm579_vm1, %v2581_v63  ;;  %4267 = vmatmul.mubr.msk.f32.gmra.mrb[162].mxu0 %vm579_vm1, %v2581_v63 }
 0x3e2   : > { %2874 = vmatprep.mubr.f32.mxu1 %v7470_v49 }
 0x3e3   : > { %v2506_v57 = vpop.permute.xlu0 %2505 }
 0x3e4   : > { %v2582_v33 = vsel %vm2561_vm3, %v7493_v8, %v2506_v57 }
 0x3e5   : > { %3955 = vmatmul.mubr.msk.f32.gmra.mrb[184].mxu1 %vm579_vm1, %v2582_v33  ;;  %4269 = vmatprep.mubr.msk.f32.mxu0 %vm579_vm1, %v2582_v33  ;;  %v7508_v33 = vld [vmem:[#allocation29_spill] sm:$0xff] }
 0x3e6   : > { %2880 = vmatprep.mubr.f32.mxu1 %v7470_v49 }
 0x3e7   : > { %v2508_v28 = vpop.permute.xlu1 %2507 }
 0x3e8   : > { %v2583_v12 = vsel %vm2561_vm3, %v7494_v26, %v2508_v28  ;;  %v7509_v26 = vld [vmem:[#allocation53_spill] sm:$0xff] }
 0x3e9   : > { %3956 = vmatmul.mubr.msk.f32.gmra.mrb[186].mxu1 %vm579_vm1, %v2583_v12  ;;  %4270 = vmatmul.mubr.msk.f32.gmra.mrb[164].mxu0 %vm579_vm1, %v2583_v12 }
 0x3ea   : > { %2886 = vmatprep.mubr.f32.mxu1 %v7470_v49 }
 0x3eb   : > { %v2510_v39 = vpop.permute.xlu0 %2509 }
 0x3ec   : > { %v2584_v19 = vsel %vm2561_vm3, %v7495_v7, %v2510_v39  ;;  %v7512_v7 = vld [vmem:[#allocation32_spill] sm:$0xff] }
 0x3ed   : > { %3957 = vmatmul.mubr.msk.f32.gmra.mrb[188].mxu1 %vm579_vm1, %v2584_v19  ;;  %4272 = vmatprep.mubr.msk.f32.mxu0 %vm579_vm1, %v2584_v19 }
 0x3ee   : > { %2892 = vmatprep.mubr.f32.mxu1 %v7470_v49 }
 0x3ef   : > { %v2512_v22 = vpop.permute.xlu1 %2511 }
 0x3f0   : > { %v2585_v44 = vsel %vm2561_vm3, %v7496_v45, %v2512_v22 }
 0x3f1   : > { %3958 = vmatmul.mubr.msk.f32.gmra.mrb[190].mxu1 %vm579_vm1, %v2585_v44  ;;  %4273 = vmatmul.mubr.msk.f32.gmra.mrb[166].mxu0 %vm579_vm1, %v2585_v44  ;;  %v7514_v44 = vld [vmem:[#allocation35_spill] sm:$0xff] }
 0x3f2   : > { %2898 = vmatprep.mubr.f32.mxu1 %v7470_v49 }
 0x3f3   : > { %v2514_v34 = vpop.permute.xlu0 %2513 }
 0x3f4   : > { %v2586_v10 = vsel %vm2561_vm3, %v7497_v23, %v2514_v34  ;;  %v7515_v23 = vld [vmem:[#allocation59_spill] sm:$0xff] }
 0x3f5   : > { %3959 = vmatmul.mubr.msk.f32.gmra.mrb[192].mxu1 %vm579_vm1, %v2586_v10  ;;  %4275 = vmatprep.mubr.msk.f32.mxu0 %vm579_vm1, %v2586_v10 }
 0x3f6   : > { %2904 = vmatprep.mubr.f32.mxu1 %v7470_v49 }
 0x3f7   : > { %v2516_v16 = vpop.permute.xlu1 %2515 }
 0x3f8   : > { %v2587_v56 = vsel %vm2561_vm3, %v7498_v55, %v2516_v16 }
 0x3f9   : > { %3960 = vmatmul.mubr.msk.f32.gmra.mrb[194].mxu1 %vm579_vm1, %v2587_v56  ;;  %4276 = vmatmul.mubr.msk.f32.gmra.mrb[168].mxu0 %vm579_vm1, %v2587_v56  ;;  %v7516_v56 = vld [vmem:[#allocation57_spill] sm:$0xff] }
 0x3fa   : > { %2910 = vmatprep.mubr.f32.mxu1 %v7470_v49 }
 0x3fb   : > { %v2518_v37 = vpop.permute.xlu0 %2517 }
 0x3fc   : > { %v2588_v24 = vsel %vm2561_vm3, %v6590_v38, %v2518_v37 }
 0x3fd   : > { %3961 = vmatmul.mubr.msk.f32.gmra.mrb[196].mxu1 %vm579_vm1, %v2588_v24  ;;  %4278 = vmatprep.mubr.msk.f32.mxu0 %vm579_vm1, %v2588_v24  ;;  %v7517_v24 = vld [vmem:[#allocation56_spill] sm:$0xff] }
 0x3fe   : > { %2916 = vmatprep.mubr.f32.mxu1 %v7470_v49 }
 0x3ff   : > { %v2520_v20 = vpop.permute.xlu1 %2519 }
 0x400   : > { %v2589_v61 = vsel %vm2561_vm3, %v6593_v30, %v2520_v20 }
 0x401   : > { %3962 = vmatmul.mubr.msk.f32.gmra.mrb[198].mxu1 %vm579_vm1, %v2589_v61  ;;  %4279 = vmatmul.mubr.msk.f32.gmra.mrb[170].mxu0 %vm579_vm1, %v2589_v61 }
 0x402   : > { %2922 = vmatprep.mubr.f32.mxu1 %v7470_v49 }
 0x403   : > { %v2522_v41 = vpop.permute.xlu0 %2521 }
 0x404   : > { %v2590_v38 = vsel %vm2561_vm3, %v6598_v60, %v2522_v41  ;;  %v7518_v41 = vld [vmem:[#allocation38_spill] sm:$0xff] }
 0x405   : > { %3963 = vmatmul.mubr.msk.f32.gmra.mrb[200].mxu1 %vm579_vm1, %v2590_v38  ;;  %4281 = vmatprep.mubr.msk.f32.mxu0 %vm579_vm1, %v2590_v38 }
 0x406   : > { %2928 = vmatprep.mubr.f32.mxu1 %v7470_v49 }
 0x407   : > { %v2524_v47 = vpop.permute.xlu1 %2523 }
 0x408   : > { %v2591_v30 = vsel %vm2561_vm3, %v7499_v2, %v2524_v47  ;;  %v7519_v2 = vld [vmem:[#allocation60_spill] sm:$0xff] }
 0x409   : > { %3964 = vmatmul.mubr.msk.f32.gmra.mrb[202].mxu1 %vm579_vm1, %v2591_v30  ;;  %4282 = vmatmul.mubr.msk.f32.gmra.mrb[172].mxu0 %vm579_vm1, %v2591_v30 }
 0x40a   : > { %2934 = vmatprep.mubr.f32.mxu1 %v7470_v49 }
 0x40b   : > { %v2526_v6 = vpop.permute.xlu0 %2525 }
 0x40c   : > { %v2592_v60 = vsel %vm2561_vm3, %v6610_v54, %v2526_v6 }
 0x40d   : > { %3965 = vmatmul.mubr.msk.f32.gmra.mrb[204].mxu1 %vm579_vm1, %v2592_v60  ;;  %4284 = vmatprep.mubr.msk.f32.mxu0 %vm579_vm1, %v2592_v60 }
 0x40e   : > { %2940 = vmatprep.mubr.f32.mxu1 %v7470_v49  ;;  %v7503_v49 = vld [vmem:[#allocation47_spill] sm:$0xff] }
 0x40f   : > { %v2528_v36 = vpop.permute.xlu1 %2527 }
 0x410   : > { %v2593_v18 = vsel %vm2561_vm3, %v6614_v27, %v2528_v36  ;;  %v7504_v27 = vld [vmem:[#allocation45_spill] sm:$0xff] }
 0x411   : > { %3966 = vmatmul.mubr.msk.f32.gmra.mrb[206].mxu1 %vm579_vm1, %v2593_v18  ;;  %4285 = vmatmul.mubr.msk.f32.gmra.mrb[174].mxu0 %vm579_vm1, %v2593_v18  ;;  %v7520_v36 = vld [vmem:[#allocation41_spill] sm:$0xff] }
 0x467   : > { %v2756_v17 = vpop.f32.mrb[144].mxu1 }
 0x468   : > { %v3172_v35 = vmul.f32 %v2756_v17, %v7500_v40  ;;  %v2758_v53 = vpop.f32.mrb[145].mxu1  ;;  %v7521_v17 = vld [vmem:[#allocation65_spill] sm:$0xff] }
 0x469   : > { %v3173_v54 = vmul.f32 %v2758_v53, %v7501_v62  ;;  %v7522_v62 = vld [vmem:[#allocation63_spill] sm:$0xff] }
 0x46b   : > { %v2762_v3 = vpop.f32.mrb[146].mxu1  ;;  %v4241_v42 = vpop.f32.mrb[144].mxu0  ;;  %3336 = vmatprep.mubr.f32.mxu0 %v3173_v54 }
 0x46c   : > { %v3175_v25 = vmul.f32 %v2762_v3, %v7502_v9  ;;  %v3177_v0 = vmul.f32 %v4241_v42, %v7503_v49  ;;  %v2764_v50 = vpop.f32.mrb[147].mxu1  ;;  %v3013_v46 = vpop.f32.mrb[145].mxu0  ;;  %3337 = vmatmul.mubr.f32.vlgmr.msra.gmra.mrb[176].mxu0 %v3172_v35  ;;  %v7523_v3 = vld [vmem:[#allocation62_spill] sm:$0xff] }
 0x46d   : > { %v3176_v48 = vmul.f32 %v2764_v50, %v7504_v27  ;;  %v3174_v1 = vmul.f32 %v3013_v46, %v7505_v21  ;;  %v7525_v50 = vld [vmem:[#allocation66_spill] sm:$0xff] }
 0x46e   : > { %v7526_v21 = vld [vmem:[#allocation46_spill] sm:$0xff] }
 0x46f   : > { %v2768_v59 = vpop.f32.mrb[148].mxu1  ;;  %3341 = vmatprep.mubr.f32.mxu0 %v3176_v48  ;;  %4319 = vmatprep.mubr.f32.mxu1 %v3174_v1 }
 0x470   : > { %v3178_v31 = vmul.f32 %v2768_v59, %v7506_v58  ;;  %v2770_v51 = vpop.f32.mrb[149].mxu1  ;;  %3342 = vmatmul.mubr.f32.gmra.mrb[178].mxu0 %v3175_v25  ;;  %4320 = vmatmul.mubr.f32.vlgmr.msra.gmra.mrb[208].mxu1 %v3177_v0  ;;  %v7524_v25 = vld [vmem:[#allocation43_spill] sm:$0xff] }
 0x471   : > { %v3179_v63 = vmul.f32 %v2770_v51, %v7507_v52  ;;  %v7527_v59 = vld [vmem:[#allocation71_spill] sm:$0xff]  ;;  %v7528_v52 = vld [vmem:[#allocation69_spill] sm:$0xff] }
 0x473   : > { %v2774_v57 = vpop.f32.mrb[150].mxu1  ;;  %v4244_v8 = vpop.f32.mrb[146].mxu0  ;;  %3346 = vmatprep.mubr.f32.mxu0 %v3179_v63 }
 0x474   : > { %v3181_v28 = vmul.f32 %v2774_v57, %v7508_v33  ;;  %v3183_v12 = vmul.f32 %v4244_v8, %v7509_v26  ;;  %v2776_v11 = vpop.f32.mrb[151].mxu1  ;;  %v3023_v13 = vpop.f32.mrb[147].mxu0  ;;  %3347 = vmatmul.mubr.f32.gmra.mrb[180].mxu0 %v3178_v31  ;;  %v7529_v57 = vld [vmem:[#allocation68_spill] sm:$0xff] }
 0x475   : > { %v3182_v5 = vmul.f32 %v2776_v11, %v7510_v43  ;;  %v3180_v32 = vmul.f32 %v3023_v13, %v7511_v14  ;;  %v7531_v11 = vld [vmem:[#allocation72_spill] sm:$0xff] }
 0x476   : > { %v7532_v14 = vld [vmem:[#allocation52_spill] sm:$0xff] }
 0x477   : > { %3351 = vmatprep.mubr.f32.mxu0 %v3182_v5  ;;  %4322 = vmatprep.mubr.f32.mxu1 %v3180_v32 }
 0x478   : > { %v2780_v39 = vpop.f32.mrb[152].mxu1  ;;  %3352 = vmatmul.mubr.f32.gmra.mrb[182].mxu0 %v3181_v28  ;;  %4323 = vmatmul.mubr.f32.gmra.mrb[210].mxu1 %v3183_v12  ;;  %v7530_v28 = vld [vmem:[#allocation49_spill] sm:$0xff] }
 0x479   : > { %v3184_v19 = vmul.f32 %v2780_v39, %v7512_v7  ;;  %v2782_v15 = vpop.f32.mrb[153].mxu1  ;;  %v7533_v39 = vld [vmem:[#allocation77_spill] sm:$0xff] }
 0x47a   : > { %v3185_v29 = vmul.f32 %v2782_v15, %v7513_v4  ;;  %v7534_v4 = vld [vmem:[#allocation75_spill] sm:$0xff] }
 0x47c   : > { %v2786_v22 = vpop.f32.mrb[154].mxu1  ;;  %v4247_v45 = vpop.f32.mrb[148].mxu0  ;;  %3356 = vmatprep.mubr.f32.mxu0 %v3185_v29 }
 0x47d   : > { %v3187_v34 = vmul.f32 %v2786_v22, %v7514_v44  ;;  %v3189_v10 = vmul.f32 %v4247_v45, %v7515_v23  ;;  %v2788_v16 = vpop.f32.mrb[155].mxu1  ;;  %v3033_v55 = vpop.f32.mrb[149].mxu0  ;;  %3357 = vmatmul.mubr.f32.gmra.mrb[184].mxu0 %v3184_v19  ;;  %v7535_v22 = vld [vmem:[#allocation74_spill] sm:$0xff] }
 0x47e   : > { %v3188_v37 = vmul.f32 %v2788_v16, %v7516_v56  ;;  %v3186_v20 = vmul.f32 %v3033_v55, %v7517_v24  ;;  %v7537_v16 = vld [vmem:[#allocation78_spill] sm:$0xff] }
 0x47f   : > { %v7538_v24 = vld [vmem:[#allocation58_spill] sm:$0xff] }
 0x480   : > { %v2792_v61 = vpop.f32.mrb[156].mxu1  ;;  %3361 = vmatprep.mubr.f32.mxu0 %v3188_v37  ;;  %4325 = vmatprep.mubr.f32.mxu1 %v3186_v20 }
 0x481   : > { %v3190_v38 = vmul.f32 %v2792_v61, %v7518_v41  ;;  %v2794_v47 = vpop.f32.mrb[157].mxu1  ;;  %3362 = vmatmul.mubr.f32.gmra.mrb[186].mxu0 %v3187_v34  ;;  %4326 = vmatmul.mubr.f32.gmra.mrb[212].mxu1 %v3189_v10  ;;  %v7536_v34 = vld [vmem:[#allocation55_spill] sm:$0xff]  ;;  %v7539_v61 = vld [vmem:[#allocation80_spill] sm:$0xff] }
 0x482   : > { %v3191_v30 = vmul.f32 %v2794_v47, %v7519_v2  ;;  %v7540_v2 = vld [vmem:[#allocation30_spill] sm:$0xff] }
 0x484   : > { %v2798_v6 = vpop.f32.mrb[158].mxu1  ;;  %v4250_v60 = vpop.f32.mrb[150].mxu0  ;;  %3366 = vmatprep.mubr.f32.mxu0 %v3191_v30 }
 0x485   : > { %v3193_v18 = vmul.f32 %v2798_v6, %v7520_v36  ;;  %v3195_v40 = vmul.f32 %v4250_v60, %v7521_v17  ;;  %v2800_v35 = vpop.f32.mrb[159].mxu1  ;;  %v3043_v53 = vpop.f32.mrb[151].mxu0  ;;  %3367 = vmatmul.mubr.f32.gmra.mrb[188].mxu0 %v3190_v38  ;;  %v7541_v6 = vld [vmem:[#allocation79_spill] sm:$0xff] }
 0x486   : > { %v3194_v54 = vmul.f32 %v2800_v35, %v7522_v62  ;;  %v3192_v42 = vmul.f32 %v3043_v53, %v7523_v3  ;;  %v7543_v35 = vld [vmem:[#allocation33_spill] sm:$0xff]  ;;  %v7544_v3 = vld [vmem:[#allocation64_spill] sm:$0xff] }
 0x488   : > { %v2804_v9 = vpop.f32.mrb[160].mxu1  ;;  %3371 = vmatprep.mubr.f32.mxu0 %v3194_v54  ;;  %4328 = vmatprep.mubr.f32.mxu1 %v3192_v42 }
 0x489   : > { %v3196_v49 = vmul.f32 %v2804_v9, %v7524_v25  ;;  %v2806_v0 = vpop.f32.mrb[161].mxu1  ;;  %3372 = vmatmul.mubr.f32.gmra.mrb[190].mxu0 %v3193_v18  ;;  %4329 = vmatmul.mubr.f32.gmra.mrb[214].mxu1 %v3195_v40  ;;  %v7542_v18 = vld [vmem:[#allocation61_spill] sm:$0xff]  ;;  %v7545_v9 = vld [vmem:[#allocation82_spill] sm:$0xff] }
 0x48a   : > { %v3197_v46 = vmul.f32 %v2806_v0, %v7525_v50  ;;  %v7546_v50 = vld [vmem:[#allocation36_spill] sm:$0xff] }
 0x48c   : > { %v2810_v27 = vpop.f32.mrb[162].mxu1  ;;  %v4253_v48 = vpop.f32.mrb[152].mxu0  ;;  %3376 = vmatprep.mubr.f32.mxu0 %v3197_v46 }
 0x48d   : > { %v3199_v1 = vmul.f32 %v2810_v27, %v7526_v21  ;;  %v3201_v58 = vmul.f32 %v4253_v48, %v7527_v59  ;;  %v2812_v31 = vpop.f32.mrb[163].mxu1  ;;  %v3053_v51 = vpop.f32.mrb[153].mxu0  ;;  %3377 = vmatmul.mubr.f32.gmra.mrb[192].mxu0 %v3196_v49  ;;  %v7547_v27 = vld [vmem:[#allocation81_spill] sm:$0xff] }
 0x48e   : > { %v3200_v63 = vmul.f32 %v2812_v31, %v7528_v52  ;;  %v3198_v8 = vmul.f32 %v3053_v51, %v7529_v57  ;;  %v7549_v31 = vld [vmem:[#allocation39_spill] sm:$0xff]  ;;  %v7550_v57 = vld [vmem:[#allocation70_spill] sm:$0xff] }
 0x490   : > { %v2816_v33 = vpop.f32.mrb[164].mxu1  ;;  %3381 = vmatprep.mubr.f32.mxu0 %v3200_v63  ;;  %4331 = vmatprep.mubr.f32.mxu1 %v3198_v8 }
 0x491   : > { %v3202_v26 = vmul.f32 %v2816_v33, %v7530_v28  ;;  %v2818_v12 = vpop.f32.mrb[165].mxu1  ;;  %3382 = vmatmul.mubr.f32.gmra.mrb[194].mxu0 %v3199_v1  ;;  %4332 = vmatmul.mubr.f32.gmra.mrb[216].mxu1 %v3201_v58  ;;  %v7548_v1 = vld [vmem:[#allocation67_spill] sm:$0xff]  ;;  %v7551_v33 = vld [vmem:[#allocation84_spill] sm:$0xff] }
 0x492   : > { %v3203_v13 = vmul.f32 %v2818_v12, %v7531_v11  ;;  %v7552_v11 = vld [vmem:[#allocation2_spill] sm:$0xff] }
 0x494   : > { %v2822_v43 = vpop.f32.mrb[166].mxu1  ;;  %v4256_v5 = vpop.f32.mrb[154].mxu0  ;;  %3386 = vmatprep.mubr.f32.mxu0 %v3203_v13 }
 0x495   : > { %v3205_v32 = vmul.f32 %v2822_v43, %v7532_v14  ;;  %v3207_v7 = vmul.f32 %v4256_v5, %v7533_v39  ;;  %v2824_v19 = vpop.f32.mrb[167].mxu1  ;;  %v3063_v15 = vpop.f32.mrb[155].mxu0  ;;  %3387 = vmatmul.mubr.f32.gmra.mrb[196].mxu0 %v3202_v26  ;;  %v7553_v43 = vld [vmem:[#allocation83_spill] sm:$0xff] }
 0x496   : > { %v3206_v29 = vmul.f32 %v2824_v19, %v7534_v4  ;;  %v3204_v45 = vmul.f32 %v3063_v15, %v7535_v22  ;;  %v7555_v19 = vld [vmem:[#allocation4_spill] sm:$0xff] }
 0x497   : > { %v7556_v22 = vld [vmem:[#allocation76_spill] sm:$0xff] }
 0x498   : > { %v2828_v44 = vpop.f32.mrb[168].mxu1  ;;  %3391 = vmatprep.mubr.f32.mxu0 %v3206_v29  ;;  %4334 = vmatprep.mubr.f32.mxu1 %v3204_v45 }
 0x499   : > { %v3208_v23 = vmul.f32 %v2828_v44, %v7536_v34  ;;  %v2830_v10 = vpop.f32.mrb[169].mxu1  ;;  %3392 = vmatmul.mubr.f32.gmra.mrb[198].mxu0 %v3205_v32  ;;  %4335 = vmatmul.mubr.f32.gmra.mrb[218].mxu1 %v3207_v7  ;;  %v7554_v32 = vld [vmem:[#allocation73_spill] sm:$0xff]  ;;  %v7557_v44 = vld [vmem:[#allocation86_spill] sm:$0xff] }
 0x49a   : > { %v3209_v55 = vmul.f32 %v2830_v10, %v7537_v16  ;;  %v7558_v16 = vld [vmem:[#allocation6_spill] sm:$0xff] }
 0x49c   : > { %v2834_v56 = vpop.f32.mrb[170].mxu1  ;;  %v4259_v37 = vpop.f32.mrb[156].mxu0  ;;  %3396 = vmatprep.mubr.f32.mxu0 %v3209_v55 }
 0x49d   : > { %v3211_v20 = vmul.f32 %v2834_v56, %v7538_v24  ;;  %v3213_v41 = vmul.f32 %v4259_v37, %v7539_v61  ;;  %v2836_v38 = vpop.f32.mrb[171].mxu1  ;;  %v3073_v47 = vpop.f32.mrb[157].mxu0  ;;  %3397 = vmatmul.mubr.f32.gmra.mrb[200].mxu0 %v3208_v23  ;;  %v7559_v56 = vld [vmem:[#allocation85_spill] sm:$0xff] }
 0x49e   : > { %v3212_v30 = vmul.f32 %v2836_v38, %v7540_v2  ;;  %v3210_v60 = vmul.f32 %v3073_v47, %v7541_v6  ;;  %v7561_v38 = vld [vmem:[#allocation8_spill] sm:$0xff]  ;;  %v7562_v6 = vld [vmem:[#allocation14_spill] sm:$0xff] }
 0x4a0   : > { %v2840_v36 = vpop.f32.mrb[172].mxu1  ;;  %3401 = vmatprep.mubr.f32.mxu0 %v3212_v30  ;;  %4337 = vmatprep.mubr.f32.mxu1 %v3210_v60 }
 0x4a1   : > { %v3214_v17 = vmul.f32 %v2840_v36, %v7542_v18  ;;  %v2842_v40 = vpop.f32.mrb[173].mxu1  ;;  %3402 = vmatmul.mubr.f32.gmra.mrb[202].mxu0 %v3211_v20  ;;  %4338 = vmatmul.mubr.f32.gmra.mrb[220].mxu1 %v3213_v41  ;;  %v7560_v20 = vld [vmem:[#allocation11_spill] sm:$0xff]  ;;  %v7563_v36 = vld [vmem:[#allocation88_spill] sm:$0xff] }
 0x4a2   : > { %v3215_v53 = vmul.f32 %v2842_v40, %v7543_v35  ;;  %v7564_v35 = vld [vmem:[#allocation10_spill] sm:$0xff] }
 0x4a4   : > { %v2846_v62 = vpop.f32.mrb[174].mxu1  ;;  %v4262_v54 = vpop.f32.mrb[158].mxu0  ;;  %3406 = vmatprep.mubr.f32.mxu0 %v3215_v53 }
 0x4a5   : > { %v3217_v42 = vmul.f32 %v2846_v62, %v7544_v3  ;;  %v3219_v25 = vmul.f32 %v4262_v54, %v7545_v9  ;;  %v2848_v49 = vpop.f32.mrb[175].mxu1  ;;  %v3083_v0 = vpop.f32.mrb[159].mxu0  ;;  %3407 = vmatmul.mubr.f32.gmra.mrb[204].mxu0 %v3214_v17  ;;  %v7565_v62 = vld [vmem:[#allocation87_spill] sm:$0xff] }
 0x4a6   : > { %v3218_v46 = vmul.f32 %v2848_v49, %v7546_v50  ;;  %v3216_v48 = vmul.f32 %v3083_v0, %v7547_v27  ;;  %v7567_v49 = vld [vmem:[#allocation13_spill] sm:$0xff]  ;;  %v7568_v27 = vld [vmem:[#allocation20_spill] sm:$0xff] }
 0x4a8   : > { %v2852_v21 = vpop.f32.mrb[176].mxu1  ;;  %3411 = vmatprep.mubr.f32.mxu0 %v3218_v46  ;;  %4340 = vmatprep.mubr.f32.mxu1 %v3216_v48 }
 0x4a9   : > { %v3220_v59 = vmul.f32 %v2852_v21, %v7548_v1  ;;  %v2854_v58 = vpop.f32.mrb[177].mxu1  ;;  %3412 = vmatmul.mubr.f32.gmra.mrb[206].mxu0 %v3217_v42  ;;  %4341 = vmatmul.mubr.f32.gmra.mrb[222].mxu1 %v3219_v25  ;;  %v7566_v42 = vld [vmem:[#allocation17_spill] sm:$0xff]  ;;  %v7569_v21 = vld [vmem:[#allocation90_spill] sm:$0xff] }
 0x4aa   : > { %v3221_v51 = vmul.f32 %v2854_v58, %v7549_v31  ;;  %v7570_v31 = vld [vmem:[#allocation16_spill] sm:$0xff] }
 0x4ac   : > { %v2858_v52 = vpop.f32.mrb[178].mxu1  ;;  %v4265_v63 = vpop.f32.mrb[160].mxu0  ;;  %3416 = vmatprep.mubr.f32.mxu0 %v3221_v51 }
 0x4ad   : > { %v3223_v8 = vmul.f32 %v2858_v52, %v7550_v57  ;;  %v3225_v28 = vmul.f32 %v4265_v63, %v7551_v33  ;;  %v2860_v26 = vpop.f32.mrb[179].mxu1  ;;  %v3093_v12 = vpop.f32.mrb[161].mxu0  ;;  %3417 = vmatmul.mubr.f32.gmra.mrb[208].mxu0 %v3220_v59  ;;  %v7571_v52 = vld [vmem:[#allocation89_spill] sm:$0xff] }
 0x4ae   : > { %v3224_v13 = vmul.f32 %v2860_v26, %v7552_v11  ;;  %v3222_v5 = vmul.f32 %v3093_v12, %v7553_v43  ;;  %v7573_v26 = vld [vmem:[#allocation19_spill] sm:$0xff]  ;;  %v7574_v43 = vld [vmem:[#allocation24_spill] sm:$0xff] }
 0x4b0   : > { %v2864_v14 = vpop.f32.mrb[180].mxu1  ;;  %3421 = vmatprep.mubr.f32.mxu0 %v3224_v13  ;;  %4343 = vmatprep.mubr.f32.mxu1 %v3222_v5 }
 0x4b1   : > { %v3226_v39 = vmul.f32 %v2864_v14, %v7554_v32  ;;  %v2866_v7 = vpop.f32.mrb[181].mxu1  ;;  %3422 = vmatmul.mubr.f32.gmra.mrb[210].mxu0 %v3223_v8  ;;  %4344 = vmatmul.mubr.f32.gmra.mrb[224].mxu1 %v3225_v28  ;;  %v7572_v8 = vld [vmem:[#allocation22_spill] sm:$0xff]  ;;  %v7575_v14 = vld [vmem:[#allocation5_spill] sm:$0xff] }
 0x4b2   : > { %v3227_v15 = vmul.f32 %v2866_v7, %v7555_v19  ;;  %v7576_v19 = vld [vmem:[#allocation91_spill] sm:$0xff] }
 0x4b4   : > { %v2870_v4 = vpop.f32.mrb[182].mxu1  ;;  %v4268_v29 = vpop.f32.mrb[162].mxu0  ;;  %3426 = vmatprep.mubr.f32.mxu0 %v3227_v15 }
 0x4b5   : > { %v3229_v45 = vmul.f32 %v2870_v4, %v7556_v22  ;;  %v3231_v34 = vmul.f32 %v4268_v29, %v7557_v44  ;;  %v2872_v23 = vpop.f32.mrb[183].mxu1  ;;  %v3103_v10 = vpop.f32.mrb[163].mxu0  ;;  %3427 = vmatmul.mubr.f32.gmra.mrb[212].mxu0 %v3226_v39  ;;  %v7577_v4 = vld [vmem:[#allocation3_spill] sm:$0xff] }
 0x4b6   : > { %v3230_v55 = vmul.f32 %v2872_v23, %v7558_v16  ;;  %v3228_v37 = vmul.f32 %v3103_v10, %v7559_v56  ;;  %v7579_v23 = vld [vmem:[#allocation92_spill] sm:$0xff] }
 0x4b7   : > { %v7580_v56 = vld [vmem:[#allocation28_spill] sm:$0xff] }
 0x4b8   : > { %v2876_v24 = vpop.f32.mrb[184].mxu1  ;;  %3431 = vmatprep.mubr.f32.mxu0 %v3230_v55  ;;  %4346 = vmatprep.mubr.f32.mxu1 %v3228_v37 }
 0x4b9   : > { %v3232_v61 = vmul.f32 %v2876_v24, %v7560_v20  ;;  %v2878_v41 = vpop.f32.mrb[185].mxu1  ;;  %3432 = vmatmul.mubr.f32.gmra.mrb[214].mxu0 %v3229_v45  ;;  %4347 = vmatmul.mubr.f32.gmra.mrb[226].mxu1 %v3231_v34  ;;  %v7578_v45 = vld [vmem:[#allocation26_spill] sm:$0xff]  ;;  %v7581_v24 = vld [vmem:[#allocation9_spill] sm:$0xff] }
 0x4ba   : > { %v3233_v47 = vmul.f32 %v2878_v41, %v7561_v38  ;;  %v7582_v38 = vld [vmem:[#allocation93_spill] sm:$0xff] }
 0x4bc   : > { %v2882_v2 = vpop.f32.mrb[186].mxu1  ;;  %v4271_v30 = vpop.f32.mrb[164].mxu0  ;;  %3436 = vmatprep.mubr.f32.mxu0 %v3233_v47 }
 0x4bd   : > { %v3235_v60 = vmul.f32 %v2882_v2, %v7562_v6  ;;  %v3237_v18 = vmul.f32 %v4271_v30, %v7563_v36  ;;  %v2884_v17 = vpop.f32.mrb[187].mxu1  ;;  %v3113_v40 = vpop.f32.mrb[165].mxu0  ;;  %3437 = vmatmul.mubr.f32.gmra.mrb[216].mxu0 %v3232_v61  ;;  %v7583_v2 = vld [vmem:[#allocation7_spill] sm:$0xff] }
 0x4be   : > { %v3236_v53 = vmul.f32 %v2884_v17, %v7564_v35  ;;  %v3234_v54 = vmul.f32 %v3113_v40, %v7565_v62  ;;  %v7585_v17 = vld [vmem:[#allocation94_spill] sm:$0xff] }
 0x4bf   : > { %v7586_v62 = vld [vmem:[#allocation34_spill] sm:$0xff] }
 0x4c0   : > { %v2888_v3 = vpop.f32.mrb[188].mxu1  ;;  %3441 = vmatprep.mubr.f32.mxu0 %v3236_v53  ;;  %4349 = vmatprep.mubr.f32.mxu1 %v3234_v54 }
 0x4c1   : > { %v3238_v9 = vmul.f32 %v2888_v3, %v7566_v42  ;;  %v2890_v25 = vpop.f32.mrb[189].mxu1  ;;  %3442 = vmatmul.mubr.f32.gmra.mrb[218].mxu0 %v3235_v60  ;;  %4350 = vmatmul.mubr.f32.gmra.mrb[228].mxu1 %v3237_v18  ;;  %v7584_v60 = vld [vmem:[#allocation31_spill] sm:$0xff] }
 0x4c2   : > { %v3239_v0 = vmul.f32 %v2890_v25, %v7567_v49  ;;  %v7587_v3 = vld [vmem:[#allocation15_spill] sm:$0xff] }
 0x4c3   : > { %v7588_v49 = vld [vmem:[#allocation95_spill] sm:$0xff] }
 0x4c4   : > { %v2894_v50 = vpop.f32.mrb[190].mxu1  ;;  %v4274_v46 = vpop.f32.mrb[166].mxu0  ;;  %3446 = vmatprep.mubr.f32.mxu0 %v3239_v0 }
 0x4c5   : > { %v3241_v48 = vmul.f32 %v2894_v50, %v7568_v27  ;;  %v3243_v1 = vmul.f32 %v4274_v46, %v7569_v21  ;;  %v2896_v59 = vpop.f32.mrb[191].mxu1  ;;  %v3123_v58 = vpop.f32.mrb[167].mxu0  ;;  %3447 = vmatmul.mubr.f32.gmra.mrb[220].mxu0 %v3238_v9  ;;  %v7589_v50 = vld [vmem:[#allocation12_spill] sm:$0xff] }
 0x4c6   : > { %v3242_v51 = vmul.f32 %v2896_v59, %v7570_v31  ;;  %v3240_v63 = vmul.f32 %v3123_v58, %v7571_v52  ;;  %v7591_v59 = vld [vmem:[#allocation96_spill] sm:$0xff] }
 0x4c7   : > { %v7592_v52 = vld [vmem:[#allocation40_spill] sm:$0xff] }
 0x4c8   : > { %v2900_v57 = vpop.f32.mrb[192].mxu1  ;;  %3451 = vmatprep.mubr.f32.mxu0 %v3242_v51  ;;  %4352 = vmatprep.mubr.f32.mxu1 %v3240_v63 }
 0x4c9   : > { %v3244_v33 = vmul.f32 %v2900_v57, %v7572_v8  ;;  %v2902_v28 = vpop.f32.mrb[193].mxu1  ;;  %3452 = vmatmul.mubr.f32.gmra.mrb[222].mxu0 %v3241_v48  ;;  %4353 = vmatmul.mubr.f32.gmra.mrb[230].mxu1 %v3243_v1  ;;  %v7590_v48 = vld [vmem:[#allocation37_spill] sm:$0xff] }
 0x4ca   : > { %v3245_v12 = vmul.f32 %v2902_v28, %v7573_v26  ;;  %v7593_v57 = vld [vmem:[#allocation21_spill] sm:$0xff] }
 0x4cb   : > { %v7594_v26 = vld [vmem:[#allocation97_spill] sm:$0xff] }
 0x4cc   : > { %v2906_v11 = vpop.f32.mrb[194].mxu1  ;;  %v4277_v13 = vpop.f32.mrb[168].mxu0  ;;  %3456 = vmatprep.mubr.f32.mxu0 %v3245_v12 }
 0x4cd   : > { %v3247_v5 = vmul.f32 %v2906_v11, %v7574_v43  ;;  %v3249_v32 = vmul.f32 %v4277_v13, %v7575_v14  ;;  %v2908_v39 = vpop.f32.mrb[195].mxu1  ;;  %v3133_v7 = vpop.f32.mrb[169].mxu0  ;;  %3457 = vmatmul.mubr.f32.gmra.mrb[224].mxu0 %v3244_v33  ;;  %v7595_v11 = vld [vmem:[#allocation18_spill] sm:$0xff]  ;;  %v450_v43 = vld [vmem:[%s7205_s3 + $0x308] sm:$0xff] }
 0x4ce   : > { %v3248_v15 = vmul.f32 %v2908_v39, %v7576_v19  ;;  %v3246_v29 = vmul.f32 %v3133_v7, %v7577_v4 }
 0x4d0   : > { %v2912_v22 = vpop.f32.mrb[196].mxu1  ;;  %3461 = vmatprep.mubr.f32.mxu0 %v3248_v15  ;;  %4355 = vmatprep.mubr.f32.mxu1 %v3246_v29 }
 0x4d1   : > { %v3250_v44 = vmul.f32 %v2912_v22, %v7578_v45  ;;  %v2914_v34 = vpop.f32.mrb[197].mxu1  ;;  %3462 = vmatmul.mubr.f32.gmra.mrb[226].mxu0 %v3247_v5  ;;  %4356 = vmatmul.mubr.f32.gmra.mrb[232].mxu1 %v3249_v32  ;;  %v7596_v5 = vld [vmem:[#allocation98_spill] sm:$0xff] }
 0x4d2   : > { %v3251_v10 = vmul.f32 %v2914_v34, %v7579_v23  ;;  %v7597_v14 = vsub.s32 0, %v7596_v5 }
 0x4d4   : > { %v2918_v16 = vpop.f32.mrb[198].mxu1  ;;  %v4280_v55 = vpop.f32.mrb[170].mxu0  ;;  %3466 = vmatprep.mubr.f32.mxu0 %v3251_v10  ;;  %v7095_v32 = vrot.slane %v450_v43, %v7597_v14 }
 0x4d5   : > { %v3253_v37 = vmul.f32 %v2918_v16, %v7580_v56  ;;  %v3255_v20 = vmul.f32 %v4280_v55, %v7581_v24  ;;  %v2920_v61 = vpop.f32.mrb[199].mxu1  ;;  %v3143_v41 = vpop.f32.mrb[171].mxu0  ;;  %3467 = vmatmul.mubr.f32.gmra.mrb[228].mxu0 %v3250_v44 }
 0x4d6   : > { %v3254_v47 = vmul.f32 %v2920_v61, %v7582_v38  ;;  %v3252_v30 = vmul.f32 %v3143_v41, %v7583_v2 }
 0x4d8   : > { %v2924_v6 = vpop.f32.mrb[200].mxu1  ;;  %3471 = vmatprep.mubr.f32.mxu0 %v3254_v47  ;;  %4358 = vmatprep.mubr.f32.mxu1 %v3252_v30 }
 0x4d9   : > { %v3256_v36 = vmul.f32 %v2924_v6, %v7584_v60  ;;  %v2926_v18 = vpop.f32.mrb[201].mxu1  ;;  %3472 = vmatmul.mubr.f32.gmra.mrb[230].mxu0 %v3253_v37  ;;  %4359 = vmatmul.mubr.f32.gmra.mrb[234].mxu1 %v3255_v20 }
 0x4da   : > { %v3257_v40 = vmul.f32 %v2926_v18, %v7585_v17 }
 0x4dc   : > { %3476 = vmatprep.mubr.f32.mxu0 %v3257_v40  ;;  %v2930_v35 = vpop.f32.mrb[202].mxu1  ;;  %v4283_v53 = vpop.f32.mrb[172].mxu0 }
 0x4dd   : > { %3477 = vmatmul.mubr.f32.gmra.mrb[232].mxu0 %v3256_v36  ;;  %v3259_v54 = vmul.f32 %v2930_v35, %v7586_v62  ;;  %v3261_v42 = vmul.f32 %v4283_v53, %v7587_v3  ;;  %v2932_v9 = vpop.f32.mrb[203].mxu1  ;;  %v3153_v25 = vpop.f32.mrb[173].mxu0 }
 0x4de   : > { %v3260_v0 = vmul.f32 %v2932_v9, %v7588_v49  ;;  %v3258_v46 = vmul.f32 %v3153_v25, %v7589_v50 }
 0x4e0   : > { %v2936_v27 = vpop.f32.mrb[204].mxu1  ;;  %3481 = vmatprep.mubr.f32.mxu0 %v3260_v0  ;;  %4361 = vmatprep.mubr.f32.mxu1 %v3258_v46 }
 0x4e1   : > { %v3262_v21 = vmul.f32 %v2936_v27, %v7590_v48  ;;  %v2938_v1 = vpop.f32.mrb[205].mxu1  ;;  %3482 = vmatmul.mubr.f32.gmra.mrb[234].mxu0 %v3259_v54  ;;  %4362 = vmatmul.mubr.f32.gmra.mrb[236].mxu1 %v3261_v42 }
 0x4e2   : > { %v3263_v58 = vmul.f32 %v2938_v1, %v7591_v59 }
 0x4e4   : > { %v2942_v31 = vpop.f32.mrb[206].mxu1  ;;  %v4286_v51 = vpop.f32.mrb[174].mxu0  ;;  %3486 = vmatprep.mubr.f32.mxu0 %v3263_v58 }
 0x4e5   : > { %v3265_v63 = vmul.f32 %v2942_v31, %v7592_v52  ;;  %v3267_v8 = vmul.f32 %v4286_v51, %v7593_v57  ;;  %v2944_v33 = vpop.f32.mrb[207].mxu1  ;;  %v3163_v28 = vpop.f32.mrb[175].mxu0  ;;  %3487 = vmatmul.mubr.f32.gmra.mrb[236].mxu0 %v3262_v21 }
 0x4e6   : > { %v3266_v12 = vmul.f32 %v2944_v33, %v7594_v26  ;;  %v3264_v13 = vmul.f32 %v3163_v28, %v7595_v11 }
 0x4e8   : > { %3491 = vmatprep.mubr.f32.mxu0 %v3266_v12  ;;  %4364 = vmatprep.mubr.f32.mxu1 %v3264_v13 }
 0x4e9   : > { %3492 = vmatmul.mubr.f32.gmra.mrb[238].mxu0 %v3265_v63  ;;  %4365 = vmatmul.mubr.f32.gmra.mrb[238].mxu1 %v3267_v8 }
 0x53f   : > { %v3338_v39 = vpop.f32.mrb[176].mxu0 }
 0x540   : > { %v3340_v7 = vpop.f32.mrb[177].mxu0  ;;  %v3339_v19 = vadd.f32 %v3338_v39, %v7095_v32 }
 0x543   : > { %v3343_v15 = vpop.f32.mrb[178].mxu0  ;;  %v4321_v4 = vpop.f32.mrb[208].mxu1 }
 0x544   : > { %v3344_v29 = vadd.f32 %v3343_v15, %v7095_v32  ;;  %v3345_v22 = vpop.f32.mrb[179].mxu0  ;;  %v3563_v45 = vpop.f32.mrb[209].mxu1 }
 0x545   : > { %v3564_v44 = vadd.f32 %v3563_v45, %v3339_v19 }
 0x546   : > { %v3569_v34 = vadd.f32 %v4321_v4, %v3344_v29 }
 0x547   : > { %3722 = vst.msk [vmem:[%s7103_s9] sm:$0xff] %vm579_vm1, %v3564_v44  ;;  %v3348_v23 = vpop.f32.mrb[180].mxu0 }
 0x548   : > { %3723 = vst.msk [vmem:[%s7103_s9 + $0x8] sm:$0xff] %vm579_vm1, %v3569_v34  ;;  %v3350_v10 = vpop.f32.mrb[181].mxu0  ;;  %v3349_v16 = vadd.f32 %v3348_v23, %v7095_v32 }
 0x54b   : > { %v3353_v55 = vpop.f32.mrb[182].mxu0  ;;  %v4324_v56 = vpop.f32.mrb[210].mxu1 }
 0x54c   : > { %v3354_v37 = vadd.f32 %v3353_v55, %v7095_v32  ;;  %v3355_v24 = vpop.f32.mrb[183].mxu0  ;;  %v3573_v20 = vpop.f32.mrb[211].mxu1 }
 0x54d   : > { %v3574_v61 = vadd.f32 %v3573_v20, %v3349_v16 }
 0x54e   : > { %v3579_v41 = vadd.f32 %v4324_v56, %v3354_v37 }
 0x54f   : > { %3724 = vst.msk [vmem:[%s7103_s9 + $0x10] sm:$0xff] %vm579_vm1, %v3574_v61 }
 0x550   : > { %v3358_v38 = vpop.f32.mrb[184].mxu0  ;;  %3725 = vst.msk [vmem:[%s7103_s9 + $0x18] sm:$0xff] %vm579_vm1, %v3579_v41 }
 0x551   : > { %v3360_v47 = vpop.f32.mrb[185].mxu0  ;;  %v3359_v2 = vadd.f32 %v3358_v38, %v7095_v32 }
 0x554   : > { %v3363_v30 = vpop.f32.mrb[186].mxu0  ;;  %v4327_v6 = vpop.f32.mrb[212].mxu1 }
 0x555   : > { %v3364_v60 = vadd.f32 %v3363_v30, %v7095_v32  ;;  %v3365_v36 = vpop.f32.mrb[187].mxu0  ;;  %v3583_v18 = vpop.f32.mrb[213].mxu1 }
 0x556   : > { %v3584_v17 = vadd.f32 %v3583_v18, %v3359_v2 }
 0x557   : > { %v3589_v40 = vadd.f32 %v4327_v6, %v3364_v60 }
 0x558   : > { %3726 = vst.msk [vmem:[%s7103_s9 + $0x20] sm:$0xff] %vm579_vm1, %v3584_v17  ;;  %v3368_v35 = vpop.f32.mrb[188].mxu0 }
 0x559   : > { %3727 = vst.msk [vmem:[%s7103_s9 + $0x28] sm:$0xff] %vm579_vm1, %v3589_v40  ;;  %v3370_v53 = vpop.f32.mrb[189].mxu0  ;;  %v3369_v62 = vadd.f32 %v3368_v35, %v7095_v32 }
 0x55c   : > { %v3373_v54 = vpop.f32.mrb[190].mxu0  ;;  %v4330_v3 = vpop.f32.mrb[214].mxu1 }
 0x55d   : > { %v3374_v42 = vadd.f32 %v3373_v54, %v7095_v32  ;;  %v3375_v9 = vpop.f32.mrb[191].mxu0  ;;  %v3593_v25 = vpop.f32.mrb[215].mxu1 }
 0x55e   : > { %v3594_v49 = vadd.f32 %v3593_v25, %v3369_v62 }
 0x55f   : > { %v3599_v0 = vadd.f32 %v4330_v3, %v3374_v42 }
 0x560   : > { %3728 = vst.msk [vmem:[%s7103_s9 + $0x30] sm:$0xff] %vm579_vm1, %v3594_v49  ;;  %v3378_v50 = vpop.f32.mrb[192].mxu0 }
 0x561   : > { %3729 = vst.msk [vmem:[%s7103_s9 + $0x38] sm:$0xff] %vm579_vm1, %v3599_v0  ;;  %v3380_v46 = vpop.f32.mrb[193].mxu0  ;;  %v3379_v27 = vadd.f32 %v3378_v50, %v7095_v32 }
 0x564   : > { %v3383_v48 = vpop.f32.mrb[194].mxu0  ;;  %v4333_v21 = vpop.f32.mrb[216].mxu1 }
 0x565   : > { %v3384_v1 = vadd.f32 %v3383_v48, %v7095_v32  ;;  %v3385_v59 = vpop.f32.mrb[195].mxu0  ;;  %v3603_v58 = vpop.f32.mrb[217].mxu1 }
 0x566   : > { %v3604_v31 = vadd.f32 %v3603_v58, %v3379_v27 }
 0x567   : > { %v3609_v51 = vadd.f32 %v4333_v21, %v3384_v1 }
 0x568   : > { %3730 = vst.msk [vmem:[%s7103_s9 + $0x40] sm:$0xff] %vm579_vm1, %v3604_v31  ;;  %v3388_v52 = vpop.f32.mrb[196].mxu0 }
 0x569   : > { %3731 = vst.msk [vmem:[%s7103_s9 + $0x48] sm:$0xff] %vm579_vm1, %v3609_v51  ;;  %v3390_v63 = vpop.f32.mrb[197].mxu0  ;;  %v3389_v57 = vadd.f32 %v3388_v52, %v7095_v32 }
 0x56c   : > { %v3393_v8 = vpop.f32.mrb[198].mxu0  ;;  %v4336_v33 = vpop.f32.mrb[218].mxu1 }
 0x56d   : > { %v3394_v28 = vadd.f32 %v3393_v8, %v7095_v32  ;;  %v3395_v26 = vpop.f32.mrb[199].mxu0  ;;  %v3613_v12 = vpop.f32.mrb[219].mxu1 }
 0x56e   : > { %v3614_v11 = vadd.f32 %v3613_v12, %v3389_v57 }
 0x56f   : > { %v3619_v13 = vadd.f32 %v4336_v33, %v3394_v28 }
 0x570   : > { %3732 = vst.msk [vmem:[%s7103_s9 + $0x50] sm:$0xff] %vm579_vm1, %v3614_v11  ;;  %v3398_v43 = vpop.f32.mrb[200].mxu0 }
 0x571   : > { %3733 = vst.msk [vmem:[%s7103_s9 + $0x58] sm:$0xff] %vm579_vm1, %v3619_v13  ;;  %v3400_v5 = vpop.f32.mrb[201].mxu0  ;;  %v3399_v14 = vadd.f32 %v3398_v43, %v7095_v32 }
 0x574   : > { %v3403_v39 = vpop.f32.mrb[202].mxu0  ;;  %v4339_v7 = vpop.f32.mrb[220].mxu1 }
 0x575   : > { %v3404_v19 = vadd.f32 %v3403_v39, %v7095_v32  ;;  %v3405_v15 = vpop.f32.mrb[203].mxu0  ;;  %v3623_v4 = vpop.f32.mrb[221].mxu1 }
 0x576   : > { %v3624_v29 = vadd.f32 %v3623_v4, %v3399_v14 }
 0x577   : > { %v3629_v22 = vadd.f32 %v4339_v7, %v3404_v19 }
 0x578   : > { %3734 = vst.msk [vmem:[%s7103_s9 + $0x60] sm:$0xff] %vm579_vm1, %v3624_v29  ;;  %v3408_v45 = vpop.f32.mrb[204].mxu0 }
 0x579   : > { %3735 = vst.msk [vmem:[%s7103_s9 + $0x68] sm:$0xff] %vm579_vm1, %v3629_v22  ;;  %v3410_v44 = vpop.f32.mrb[205].mxu0  ;;  %v3409_v34 = vadd.f32 %v3408_v45, %v7095_v32 }
 0x57c   : > { %v3413_v23 = vpop.f32.mrb[206].mxu0  ;;  %v4342_v10 = vpop.f32.mrb[222].mxu1 }
 0x57d   : > { %v3414_v16 = vadd.f32 %v3413_v23, %v7095_v32  ;;  %v3415_v55 = vpop.f32.mrb[207].mxu0  ;;  %v3633_v56 = vpop.f32.mrb[223].mxu1 }
 0x57e   : > { %v3634_v37 = vadd.f32 %v3633_v56, %v3409_v34 }
 0x57f   : > { %v3639_v24 = vadd.f32 %v4342_v10, %v3414_v16 }
 0x580   : > { %3736 = vst.msk [vmem:[%s7103_s9 + $0x70] sm:$0xff] %vm579_vm1, %v3634_v37  ;;  %v3418_v20 = vpop.f32.mrb[208].mxu0 }
 0x581   : > { %3737 = vst.msk [vmem:[%s7103_s9 + $0x78] sm:$0xff] %vm579_vm1, %v3639_v24  ;;  %v3420_v61 = vpop.f32.mrb[209].mxu0  ;;  %v3419_v41 = vadd.f32 %v3418_v20, %v7095_v32 }
 0x584   : > { %v3423_v38 = vpop.f32.mrb[210].mxu0  ;;  %v4345_v47 = vpop.f32.mrb[224].mxu1 }
 0x585   : > { %v3424_v2 = vadd.f32 %v3423_v38, %v7095_v32  ;;  %v3425_v30 = vpop.f32.mrb[211].mxu0  ;;  %v3643_v6 = vpop.f32.mrb[225].mxu1 }
 0x586   : > { %v3644_v60 = vadd.f32 %v3643_v6, %v3419_v41 }
 0x587   : > { %v3649_v36 = vadd.f32 %v4345_v47, %v3424_v2 }
 0x588   : > { %3738 = vst.msk [vmem:[%s7103_s9 + $0x80] sm:$0xff] %vm579_vm1, %v3644_v60  ;;  %v3428_v18 = vpop.f32.mrb[212].mxu0 }
 0x589   : > { %3739 = vst.msk [vmem:[%s7103_s9 + $0x88] sm:$0xff] %vm579_vm1, %v3649_v36  ;;  %v3430_v17 = vpop.f32.mrb[213].mxu0  ;;  %v3429_v40 = vadd.f32 %v3428_v18, %v7095_v32 }
 0x58c   : > { %v3433_v35 = vpop.f32.mrb[214].mxu0  ;;  %v4348_v53 = vpop.f32.mrb[226].mxu1 }
 0x58d   : > { %v3434_v62 = vadd.f32 %v3433_v35, %v7095_v32  ;;  %v3435_v54 = vpop.f32.mrb[215].mxu0  ;;  %v3653_v3 = vpop.f32.mrb[227].mxu1 }
 0x58e   : > { %v3654_v42 = vadd.f32 %v3653_v3, %v3429_v40 }
 0x58f   : > { %v3659_v9 = vadd.f32 %v4348_v53, %v3434_v62 }
 0x590   : > { %3740 = vst.msk [vmem:[%s7103_s9 + $0x90] sm:$0xff] %vm579_vm1, %v3654_v42  ;;  %v3438_v25 = vpop.f32.mrb[216].mxu0 }
 0x591   : > { %3741 = vst.msk [vmem:[%s7103_s9 + $0x98] sm:$0xff] %vm579_vm1, %v3659_v9  ;;  %v3440_v49 = vpop.f32.mrb[217].mxu0  ;;  %v3439_v0 = vadd.f32 %v3438_v25, %v7095_v32 }
 0x594   : > { %v3443_v50 = vpop.f32.mrb[218].mxu0  ;;  %v4351_v46 = vpop.f32.mrb[228].mxu1 }
 0x595   : > { %v3444_v27 = vadd.f32 %v3443_v50, %v7095_v32  ;;  %v3445_v48 = vpop.f32.mrb[219].mxu0  ;;  %v3663_v21 = vpop.f32.mrb[229].mxu1 }
 0x596   : > { %v3664_v1 = vadd.f32 %v3663_v21, %v3439_v0 }
 0x597   : > { %v3669_v59 = vadd.f32 %v4351_v46, %v3444_v27 }
 0x598   : > { %3742 = vst.msk [vmem:[%s7103_s9 + $0xa0] sm:$0xff] %vm579_vm1, %v3664_v1  ;;  %v3448_v58 = vpop.f32.mrb[220].mxu0 }
 0x599   : > { %3743 = vst.msk [vmem:[%s7103_s9 + $0xa8] sm:$0xff] %vm579_vm1, %v3669_v59  ;;  %v3450_v31 = vpop.f32.mrb[221].mxu0  ;;  %v3449_v51 = vadd.f32 %v3448_v58, %v7095_v32 }
 0x59c   : > { %v3453_v52 = vpop.f32.mrb[222].mxu0  ;;  %v4354_v63 = vpop.f32.mrb[230].mxu1 }
 0x59d   : > { %v3454_v57 = vadd.f32 %v3453_v52, %v7095_v32  ;;  %v3455_v8 = vpop.f32.mrb[223].mxu0  ;;  %v3673_v33 = vpop.f32.mrb[231].mxu1 }
 0x59e   : > { %v3674_v28 = vadd.f32 %v3673_v33, %v3449_v51 }
 0x59f   : > { %v3679_v26 = vadd.f32 %v4354_v63, %v3454_v57 }
 0x5a0   : > { %3744 = vst.msk [vmem:[%s7103_s9 + $0xb0] sm:$0xff] %vm579_vm1, %v3674_v28  ;;  %v3458_v12 = vpop.f32.mrb[224].mxu0 }
 0x5a1   : > { %3745 = vst.msk [vmem:[%s7103_s9 + $0xb8] sm:$0xff] %vm579_vm1, %v3679_v26  ;;  %v3460_v11 = vpop.f32.mrb[225].mxu0  ;;  %v3459_v13 = vadd.f32 %v3458_v12, %v7095_v32 }
 0x5a4   : > { %v3463_v43 = vpop.f32.mrb[226].mxu0  ;;  %v4357_v5 = vpop.f32.mrb[232].mxu1 }
 0x5a5   : > { %v3464_v14 = vadd.f32 %v3463_v43, %v7095_v32  ;;  %v3465_v39 = vpop.f32.mrb[227].mxu0  ;;  %v3683_v7 = vpop.f32.mrb[233].mxu1 }
 0x5a6   : > { %v3684_v19 = vadd.f32 %v3683_v7, %v3459_v13 }
 0x5a7   : > { %v3689_v15 = vadd.f32 %v4357_v5, %v3464_v14 }
 0x5a8   : > { %3746 = vst.msk [vmem:[%s7103_s9 + $0xc0] sm:$0xff] %vm579_vm1, %v3684_v19  ;;  %v3468_v4 = vpop.f32.mrb[228].mxu0 }
 0x5a9   : > { %3747 = vst.msk [vmem:[%s7103_s9 + $0xc8] sm:$0xff] %vm579_vm1, %v3689_v15  ;;  %v3470_v29 = vpop.f32.mrb[229].mxu0  ;;  %v3469_v22 = vadd.f32 %v3468_v4, %v7095_v32 }
 0x5ac   : > { %v3473_v45 = vpop.f32.mrb[230].mxu0  ;;  %v4360_v44 = vpop.f32.mrb[234].mxu1 }
 0x5ad   : > { %v3474_v34 = vadd.f32 %v3473_v45, %v7095_v32  ;;  %v3475_v23 = vpop.f32.mrb[231].mxu0  ;;  %v3693_v10 = vpop.f32.mrb[235].mxu1 }
 0x5ae   : > { %v3694_v16 = vadd.f32 %v3693_v10, %v3469_v22 }
 0x5af   : > { %v3699_v55 = vadd.f32 %v4360_v44, %v3474_v34 }
 0x5b0   : > { %3748 = vst.msk [vmem:[%s7103_s9 + $0xd0] sm:$0xff] %vm579_vm1, %v3694_v16  ;;  %v3478_v56 = vpop.f32.mrb[232].mxu0 }
 0x5b1   : > { %3749 = vst.msk [vmem:[%s7103_s9 + $0xd8] sm:$0xff] %vm579_vm1, %v3699_v55  ;;  %v3480_v37 = vpop.f32.mrb[233].mxu0  ;;  %v3479_v24 = vadd.f32 %v3478_v56, %v7095_v32 }
 0x5b4   : > { %v3483_v20 = vpop.f32.mrb[234].mxu0  ;;  %v4363_v61 = vpop.f32.mrb[236].mxu1 }
 0x5b5   : > { %v3484_v41 = vadd.f32 %v3483_v20, %v7095_v32  ;;  %v3485_v38 = vpop.f32.mrb[235].mxu0  ;;  %v3703_v47 = vpop.f32.mrb[237].mxu1 }
 0x5b6   : > { %v3704_v2 = vadd.f32 %v3703_v47, %v3479_v24 }
 0x5b7   : > { %v3709_v30 = vadd.f32 %v4363_v61, %v3484_v41 }
 0x5b8   : > { %3750 = vst.msk [vmem:[%s7103_s9 + $0xe0] sm:$0xff] %vm579_vm1, %v3704_v2  ;;  %v3488_v6 = vpop.f32.mrb[236].mxu0 }
 0x5b9   : > { %3751 = vst.msk [vmem:[%s7103_s9 + $0xe8] sm:$0xff] %vm579_vm1, %v3709_v30  ;;  %v3490_v60 = vpop.f32.mrb[237].mxu0  ;;  %v3489_v36 = vadd.f32 %v3488_v6, %v7095_v32 }
 0x5bc   : > { %v3493_v18 = vpop.f32.mrb[238].mxu0  ;;  %v4366_v17 = vpop.f32.mrb[238].mxu1 }
 0x5bd   : > { %v3494_v40 = vadd.f32 %v3493_v18, %v7095_v32  ;;  %v3495_v35 = vpop.f32.mrb[239].mxu0  ;;  %v3713_v53 = vpop.f32.mrb[239].mxu1 }
 0x5be   : > { %v3714_v62 = vadd.f32 %v3713_v53, %v3489_v36 }
 0x5bf   : > { %v3719_v54 = vadd.f32 %v4366_v17, %v3494_v40 }
 0x5c0   : > { %3752 = vst.msk [vmem:[%s7103_s9 + $0xf0] sm:$0xff] %vm579_vm1, %v3714_v62 }
 0x5c1   : > { %3753 = vst.msk [vmem:[%s7103_s9 + $0xf8] sm:$0xff] %vm579_vm1, %v3719_v54 }
 0x5c2 PF: > { %s14_s15 = sadd.s32 1, %s4721_s15  }
 0x5c3   : > { %p11_p4 = scmp.ge.s32.totalorder %s14_s15, 10  }
 0x5c5   :  { %13 = sbr.rel (!%p11_p4) target bundleno = 1 (0x1), region = 69 }

</bundles_post_ra>
